<compile_context>
chip_gen: v5e
topology: v5e:2x2
jax: 0.10.0
libtpu: 0.0.40
codegen_flags: <defaults>
</compile_context>

<pallas_src>
import functools
import math

import jax
import jax.numpy as jnp
from jax.experimental import pallas as pl
from jax.experimental.pallas import tpu as pltpu

BN_EPS = 1e-5


# ----------------------------------------------------------------------------
# Fused InvertedResidual kernel
# ----------------------------------------------------------------------------
def _inverted_residual_kernel(*refs, expand, use_res, stride, H, W, Ho, Wo):
    if expand:
        (x_ref, w1_ref, b1_ref, wdw_ref, b2_ref, w3_ref, b3_ref,
         o_ref, pad_ref) = refs
    else:
        x_ref, wdw_ref, b2_ref, w3_ref, b3_ref, o_ref, pad_ref = refs

    chid = pad_ref.shape[-1]
    x2 = x_ref[0]                                    # (rows, Cin) bf16

    # ---- expand 1x1 conv + folded BN + ReLU6 (MXU, f32 accumulation) -------
    if expand:
        h = jnp.dot(x2, w1_ref[...], preferred_element_type=jnp.float32)
        h = jnp.clip(h + b1_ref[...], 0.0, 6.0)
    else:
        h = x2.astype(jnp.float32)

    # ---- stage zero-padded hidden activation in VMEM scratch (f32) ---------
    pad_ref[...] = jnp.zeros_like(pad_ref)
    if stride == 1:
        pad_ref[pl.ds(1, H), pl.ds(1, W), :] = h.reshape(H, W, chid)
    else:
        # rows of x were pre-ordered (row-phase, col-phase, i, j) by the wrapper
        h4 = h.reshape(4, Ho, Wo, chid)
        for pr in range(2):
            for pc in range(2):
                pad_ref[pr * 2 + pc, pl.ds(1, Ho), pl.ds(1, Wo), :] = h4[pr * 2 + pc]

    # ---- depthwise 3x3 + folded BN + ReLU6: 9 static-sliced taps (VPU, f32) -
    wdw = wdw_ref[...]                               # (9, 1, chid)
    acc = jnp.zeros((Ho, Wo, chid), jnp.float32)
    if stride == 1:
        for kh in range(3):
            for kw in range(3):
                tap = pad_ref[pl.ds(kh, Ho), pl.ds(kw, Wo), :]
                acc = acc + tap * wdw[kh * 3 + kw]
    else:
        # tap k -> (phase, start-offset) inside the top/left-padded phase buffer
        phase = ((1, 0), (0, 1), (1, 1))
        for kh in range(3):
            pr, r0 = phase[kh]
            for kw in range(3):
                pc, c0 = phase[kw]
                tap = pad_ref[pr * 2 + pc, pl.ds(r0, Ho), pl.ds(c0, Wo), :]
                acc = acc + tap * wdw[kh * 3 + kw]
    d = jnp.clip(acc + b2_ref[...], 0.0, 6.0)

    # ---- project 1x1 conv + folded BN (+ fused residual) --------------------
    d2 = d.reshape(Ho * Wo, chid).astype(jnp.bfloat16)
    out = jnp.dot(d2, w3_ref[...], preferred_element_type=jnp.float32)
    out = out + b3_ref[...]
    if use_res:
        out = out + x2.astype(jnp.float32)
    o_ref[0] = out.astype(o_ref.dtype)


# ----------------------------------------------------------------------------
# Wrapper
# ----------------------------------------------------------------------------
def inverted_residual(x_nchw, p):
    """Forward pass of one InvertedResidual block.  x_nchw: (N, Cin, H, W)."""
    stride, expand, use_res = p['stride'], p['expand'], p['use_res']
    cin, cout, chid = p['inp'], p['oup'], p['hidden']
    N, C, H, W = x_nchw.shape
    assert C == cin
    Ho = (H + 2 - 3) // stride + 1
    Wo = (W + 2 - 3) // stride + 1

    x = jnp.transpose(x_nchw, (0, 2, 3, 1)).astype(jnp.bfloat16)   # NHWC bf16
    if stride == 1:
        x2d = x.reshape(N, H * W, cin)
        pad_scratch = pltpu.VMEM((H + 2, W + 2, chid), jnp.float32)
    else:
        assert H % 2 == 0 and W % 2 == 0
        # even/odd spatial phase split -> strided depthwise becomes static slices
        x2d = (x.reshape(N, Ho, 2, Wo, 2, cin)
                .transpose(0, 2, 4, 1, 3, 5)
                .reshape(N, 4 * Ho * Wo, cin))
        pad_scratch = pltpu.VMEM((4, Ho + 1, Wo + 1, chid), jnp.float32)
    rows_in = x2d.shape[1]

    operands = [x2d]
    in_specs = [pl.BlockSpec((1, rows_in, cin), lambda n: (n, 0, 0))]
    if expand:
        operands += [p['w1'], p['b1']]
        in_specs += [pl.BlockSpec((cin, chid), lambda n: (0, 0)),
                     pl.BlockSpec((1, chid), lambda n: (0, 0))]
    operands += [p['wdw'], p['b2'], p['w3'], p['b3']]
    in_specs += [pl.BlockSpec((9, 1, chid), lambda n: (0, 0, 0)),
                 pl.BlockSpec((1, chid), lambda n: (0, 0)),
                 pl.BlockSpec((chid, cout), lambda n: (0, 0)),
                 pl.BlockSpec((1, cout), lambda n: (0, 0))]

    # Generous footprint estimate (double-buffered blocks + weights + scratch +
    # in-flight temporaries), clamped to [16 MiB, 28 MiB] so it is safe on v7x
    # (64 MiB physical VMEM) as well as v5e/v6e.
    est = (2 * rows_in * cin * 2 + 2 * Ho * Wo * cout * 2
           + cin * chid * 2 + chid * cout * 2
           + (9 + 2) * chid * 4 + cout * 4
           + (H + 2) * (W + 2) * chid * 4
           + 8 * rows_in * chid * 4)
    vmem_limit = int(min(max(2 * est, 16 * 2**20), 28 * 2**20))

    kernel = functools.partial(_inverted_residual_kernel,
                               expand=expand, use_res=use_res, stride=stride,
                               H=H, W=W, Ho=Ho, Wo=Wo)
    out = pl.pallas_call(
        kernel,
        out_shape=jax.ShapeDtypeStruct((N, Ho * Wo, cout), jnp.bfloat16),
        grid=(N,),
        in_specs=in_specs,
        out_specs=pl.BlockSpec((1, Ho * Wo, cout), lambda n: (n, 0, 0)),
        scratch_shapes=[pad_scratch],
        compiler_params=pltpu.CompilerParams(
            dimension_semantics=("parallel",),
            vmem_limit_bytes=vmem_limit),
    )(*operands)
    return jnp.transpose(out.reshape(N, Ho, Wo, cout), (0, 3, 1, 2))  # NCHW


# ----------------------------------------------------------------------------
# Parameters (deterministic, mirrors MobileNetV2 kaiming init; BN folded eval)
# ----------------------------------------------------------------------------
def _bn_fold(c):
    gamma = jnp.ones((c,), jnp.float32)
    beta = jnp.zeros((c,), jnp.float32)
    mean = jnp.zeros((c,), jnp.float32)
    var = jnp.ones((c,), jnp.float32)
    scale = gamma / jnp.sqrt(var + BN_EPS)
    bias = beta - mean * scale
    return scale, bias


def make_inverted_residual_params(key, inp, oup, stride, expand_ratio):
    hidden = int(round(inp * expand_ratio))
    p = dict(stride=stride, inp=inp, oup=oup, hidden=hidden,
             use_res=(stride == 1 and inp == oup),
             expand=(expand_ratio != 1))
    k1, k2, k3 = jax.random.split(key, 3)
    if p['expand']:
        w1 = jax.random.normal(k1, (hidden, inp), jnp.float32) * math.sqrt(2.0 / hidden)
        s1, b1 = _bn_fold(hidden)
        p['w1'] = (w1 * s1[:, None]).T.astype(jnp.bfloat16)          # (inp, hidden)
        p['b1'] = b1.reshape(1, hidden)
    wdw = jax.random.normal(k2, (hidden, 3, 3), jnp.float32) * math.sqrt(2.0 / (9 * hidden))
    s2, b2 = _bn_fold(hidden)
    p['wdw'] = (wdw * s2[:, None, None]).transpose(1, 2, 0).reshape(9, 1, hidden)
    p['b2'] = b2.reshape(1, hidden)
    w3 = jax.random.normal(k3, (oup, hidden), jnp.float32) * math.sqrt(2.0 / oup)
    s3, b3 = _bn_fold(oup)
    p['w3'] = (w3 * s3[:, None]).T.astype(jnp.bfloat16)              # (hidden, oup)
    p['b3'] = b3.reshape(1, oup)
    return p


# ----------------------------------------------------------------------------
# Pure-JAX reference (same bf16 cast points, for correctness checking)
# ----------------------------------------------------------------------------
def inverted_residual_ref(x_nchw, p):
    x = jnp.transpose(x_nchw, (0, 2, 3, 1)).astype(jnp.bfloat16)
    N, H, W, cin = x.shape
    if p['expand']:
        h = jnp.einsum('nhwc,cd->nhwd', x, p['w1'],
                       preferred_element_type=jnp.float32)
        h = jnp.clip(h + p['b1'].reshape(1, 1, 1, -1), 0.0, 6.0)
    else:
        h = x.astype(jnp.float32)
    s = p['stride']
    Ho = (H + 2 - 3) // s + 1
    Wo = (W + 2 - 3) // s + 1
    hp = jnp.pad(h, ((0, 0), (1, 1), (1, 1), (0, 0)))
    wdw = p['wdw'].reshape(9, -1)
    acc = jnp.zeros((N, Ho, Wo, h.shape[-1]), jnp.float32)
    for kh in range(3):
        for kw in range(3):
            tap = hp[:, kh:kh + (Ho - 1) * s + 1:s, kw:kw + (Wo - 1) * s + 1:s, :]
            acc = acc + tap * wdw[kh * 3 + kw]
    d = jnp.clip(acc + p['b2'].reshape(1, 1, 1, -1), 0.0, 6.0).astype(jnp.bfloat16)
    out = jnp.einsum('nhwc,cd->nhwd', d, p['w3'],
                     preferred_element_type=jnp.float32)
    out = out + p['b3'].reshape(1, 1, 1, -1)
    if p['use_res']:
        out = out + x.astype(jnp.float32)
    return jnp.transpose(out, (0, 3, 1, 2))


def _check(y, r, name):
    err = float(jnp.max(jnp.abs(y.astype(jnp.float32) - r)))
    assert err < 5e-2, (name, err)


if __name__ == "__main__":
    key = jax.random.PRNGKey(0)
    k1, k2, k3, k4 = jax.random.split(key, 4)

    # Block 1: expand_ratio=6, stride=1, inp==oup -> expand path + residual.
    x1 = jax.random.normal(k1, (2, 32, 16, 16), jnp.float32)
    p1 = make_inverted_residual_params(k2, inp=32, oup=32, stride=1, expand_ratio=6)
    y1 = jax.block_until_ready(inverted_residual(x1, p1))
    assert y1.shape == (2, 32, 16, 16), y1.shape
    assert bool(jnp.all(jnp.isfinite(y1.astype(jnp.float32))))
    _check(y1, inverted_residual_ref(x1, p1), "block1")

    # Block 2: expand_ratio=1, stride=2 -> no expand conv, strided depthwise.
    x2 = jax.random.normal(k3, (2, 32, 16, 16), jnp.float32)
    p2 = make_inverted_residual_params(k4, inp=32, oup=16, stride=2, expand_ratio=1)
    y2 = jax.block_until_ready(inverted_residual(x2, p2))
    assert y2.shape == (2, 16, 8, 8), y2.shape
    assert bool(jnp.all(jnp.isfinite(y2.astype(jnp.float32))))
    _check(y2, inverted_residual_ref(x2, p2), "block2")

    print("KERNEL_OK")
</pallas_src>

<mosaic_0001>
module attributes {stable_mosaic.version = 11 : i64} {
  func.func @_inverted_residual_kernel(%arg0: i32, %arg1: memref<1x256x32xbf16, #tpu.memory_space<vmem>>, %arg2: memref<32x192xbf16, #tpu.memory_space<vmem>>, %arg3: memref<1x192xf32, #tpu.memory_space<vmem>>, %arg4: memref<9x1x192xf32, #tpu.memory_space<vmem>>, %arg5: memref<1x192xf32, #tpu.memory_space<vmem>>, %arg6: memref<192x32xbf16, #tpu.memory_space<vmem>>, %arg7: memref<1x32xf32, #tpu.memory_space<vmem>>, %arg8: memref<1x256x32xbf16, #tpu.memory_space<vmem>>, %arg9: memref<18x18x192xf32, #tpu.memory_space<vmem>>) attributes {dimension_semantics = [#tpu.dimension_semantics<parallel>], iteration_bounds = array<i64: 2>, scalar_prefetch = 0 : i64, scratch_operands = 1 : i64, tpu.core_type = #tpu.core_type<tc>, window_params = [{transform_indices = @transform_0, window_bounds = array<i64: 1, 256, 32>}, {pipeline_mode = #tpu.pipeline_mode<synchronous>, transform_indices = @transform_1, window_bounds = array<i64: 32, 192>}, {pipeline_mode = #tpu.pipeline_mode<synchronous>, transform_indices = @transform_2, window_bounds = array<i64: 1, 192>}, {pipeline_mode = #tpu.pipeline_mode<synchronous>, transform_indices = @transform_3, window_bounds = array<i64: 9, 1, 192>}, {pipeline_mode = #tpu.pipeline_mode<synchronous>, transform_indices = @transform_4, window_bounds = array<i64: 1, 192>}, {pipeline_mode = #tpu.pipeline_mode<synchronous>, transform_indices = @transform_5, window_bounds = array<i64: 192, 32>}, {pipeline_mode = #tpu.pipeline_mode<synchronous>, transform_indices = @transform_6, window_bounds = array<i64: 1, 32>}, {transform_indices = @transform_7, window_bounds = array<i64: 1, 256, 32>}]} {
    %c0 = arith.constant 0 : index
    %c0_0 = arith.constant 0 : index
    %c0_1 = arith.constant 0 : index
    %0 = vector.load %arg1[%c0, %c0_0, %c0_1] : memref<1x256x32xbf16, #tpu.memory_space<vmem>>, vector<1x256x32xbf16>
    %1 = vector.shape_cast %0 : vector<1x256x32xbf16> to vector<256x32xbf16>
    %c0_2 = arith.constant 0 : index
    %c0_3 = arith.constant 0 : index
    %2 = vector.load %arg2[%c0_2, %c0_3] : memref<32x192xbf16, #tpu.memory_space<vmem>>, vector<32x192xbf16>
    %cst = arith.constant dense<0.000000e+00> : vector<256x192xf32>
    %3 = tpu.matmul %1, %2, %cst {dimension_numbers = #tpu.dot_dimension_numbers<[1], [0], [0], [1], [0, 0, 1, 1], [], []>} : vector<256x32xbf16>, vector<32x192xbf16>, vector<256x192xf32> -> vector<256x192xf32>
    %c0_4 = arith.constant 0 : index
    %c0_5 = arith.constant 0 : index
    %4 = vector.load %arg3[%c0_4, %c0_5] : memref<1x192xf32, #tpu.memory_space<vmem>>, vector<1x192xf32>
    %5 = vector.broadcast %4 : vector<1x192xf32> to vector<256x192xf32>
    %6 = arith.addf %3, %5 : vector<256x192xf32>
    %cst_6 = arith.constant 0.000000e+00 : f32
    %cst_7 = arith.constant 6.000000e+00 : f32
    %7 = vector.broadcast %cst_6 : f32 to vector<256x192xf32>
    %8 = arith.maximumf %7, %6 : vector<256x192xf32>
    %9 = vector.broadcast %cst_7 : f32 to vector<256x192xf32>
    %10 = arith.minimumf %9, %8 : vector<256x192xf32>
    %cst_8 = arith.constant 0.000000e+00 : f32
    %11 = vector.broadcast %cst_8 : f32 to vector<18x18x192xf32>
    %c0_9 = arith.constant 0 : index
    %c0_10 = arith.constant 0 : index
    %c0_11 = arith.constant 0 : index
    %12 = vector.load %arg9[%c0_9, %c0_10, %c0_11] : memref<18x18x192xf32, #tpu.memory_space<vmem>>, vector<18x18x192xf32>
    tpu.vector_store %arg9[%c0_9, %c0_10, %c0_11], %11 {strides = array<i32>} : memref<18x18x192xf32, #tpu.memory_space<vmem>>, vector<18x18x192xf32>,
    %13 = vector.shape_cast %10 : vector<256x192xf32> to vector<16x16x192xf32>
    %c1 = arith.constant 1 : index
    %c1_12 = arith.constant 1 : index
    %c0_13 = arith.constant 0 : index
    %14 = vector.load %arg9[%c1, %c1_12, %c0_13] : memref<18x18x192xf32, #tpu.memory_space<vmem>>, vector<16x16x192xf32>
    tpu.vector_store %arg9[%c1, %c1_12, %c0_13], %13 {strides = array<i32>} : memref<18x18x192xf32, #tpu.memory_space<vmem>>, vector<16x16x192xf32>,
    %c0_14 = arith.constant 0 : index
    %c0_15 = arith.constant 0 : index
    %c0_16 = arith.constant 0 : index
    %15 = vector.load %arg4[%c0_14, %c0_15, %c0_16] : memref<9x1x192xf32, #tpu.memory_space<vmem>>, vector<9x1x192xf32>
    %cst_17 = arith.constant 0.000000e+00 : f32
    %16 = vector.broadcast %cst_17 : f32 to vector<16x16x192xf32>
    %c0_18 = arith.constant 0 : index
    %c0_19 = arith.constant 0 : index
    %c0_20 = arith.constant 0 : index
    %17 = vector.load %arg9[%c0_18, %c0_19, %c0_20] : memref<18x18x192xf32, #tpu.memory_space<vmem>>, vector<16x16x192xf32>
    %18 = vector.extract_strided_slice %15 {offsets = [0, 0, 0], sizes = [1, 1, 192], strides = [1, 1, 1]} : vector<9x1x192xf32> to vector<1x1x192xf32>
    %19 = vector.shape_cast %18 : vector<1x1x192xf32> to vector<1x192xf32>
    %20 = vector.shape_cast %19 : vector<1x192xf32> to vector<1x1x192xf32>
    %21 = vector.broadcast %20 : vector<1x1x192xf32> to vector<16x16x192xf32>
    %22 = arith.mulf %17, %21 : vector<16x16x192xf32>
    %23 = arith.addf %16, %22 : vector<16x16x192xf32>
    %c0_21 = arith.constant 0 : index
    %c1_22 = arith.constant 1 : index
    %c0_23 = arith.constant 0 : index
    %24 = vector.load %arg9[%c0_21, %c1_22, %c0_23] : memref<18x18x192xf32, #tpu.memory_space<vmem>>, vector<16x16x192xf32>
    %25 = vector.extract_strided_slice %15 {offsets = [1, 0, 0], sizes = [1, 1, 192], strides = [1, 1, 1]} : vector<9x1x192xf32> to vector<1x1x192xf32>
    %26 = vector.shape_cast %25 : vector<1x1x192xf32> to vector<1x192xf32>
    %27 = vector.shape_cast %26 : vector<1x192xf32> to vector<1x1x192xf32>
    %28 = vector.broadcast %27 : vector<1x1x192xf32> to vector<16x16x192xf32>
    %29 = arith.mulf %24, %28 : vector<16x16x192xf32>
    %30 = arith.addf %23, %29 : vector<16x16x192xf32>
    %c0_24 = arith.constant 0 : index
    %c2 = arith.constant 2 : index
    %c0_25 = arith.constant 0 : index
    %31 = vector.load %arg9[%c0_24, %c2, %c0_25] : memref<18x18x192xf32, #tpu.memory_space<vmem>>, vector<16x16x192xf32>
    %32 = vector.extract_strided_slice %15 {offsets = [2, 0, 0], sizes = [1, 1, 192], strides = [1, 1, 1]} : vector<9x1x192xf32> to vector<1x1x192xf32>
    %33 = vector.shape_cast %32 : vector<1x1x192xf32> to vector<1x192xf32>
    %34 = vector.shape_cast %33 : vector<1x192xf32> to vector<1x1x192xf32>
    %35 = vector.broadcast %34 : vector<1x1x192xf32> to vector<16x16x192xf32>
    %36 = arith.mulf %31, %35 : vector<16x16x192xf32>
    %37 = arith.addf %30, %36 : vector<16x16x192xf32>
    %c1_26 = arith.constant 1 : index
    %c0_27 = arith.constant 0 : index
    %c0_28 = arith.constant 0 : index
    %38 = vector.load %arg9[%c1_26, %c0_27, %c0_28] : memref<18x18x192xf32, #tpu.memory_space<vmem>>, vector<16x16x192xf32>
    %39 = vector.extract_strided_slice %15 {offsets = [3, 0, 0], sizes = [1, 1, 192], strides = [1, 1, 1]} : vector<9x1x192xf32> to vector<1x1x192xf32>
    %40 = vector.shape_cast %39 : vector<1x1x192xf32> to vector<1x192xf32>
    %41 = vector.shape_cast %40 : vector<1x192xf32> to vector<1x1x192xf32>
    %42 = vector.broadcast %41 : vector<1x1x192xf32> to vector<16x16x192xf32>
    %43 = arith.mulf %38, %42 : vector<16x16x192xf32>
    %44 = arith.addf %37, %43 : vector<16x16x192xf32>
    %c1_29 = arith.constant 1 : index
    %c1_30 = arith.constant 1 : index
    %c0_31 = arith.constant 0 : index
    %45 = vector.load %arg9[%c1_29, %c1_30, %c0_31] : memref<18x18x192xf32, #tpu.memory_space<vmem>>, vector<16x16x192xf32>
    %46 = vector.extract_strided_slice %15 {offsets = [4, 0, 0], sizes = [1, 1, 192], strides = [1, 1, 1]} : vector<9x1x192xf32> to vector<1x1x192xf32>
    %47 = vector.shape_cast %46 : vector<1x1x192xf32> to vector<1x192xf32>
    %48 = vector.shape_cast %47 : vector<1x192xf32> to vector<1x1x192xf32>
    %49 = vector.broadcast %48 : vector<1x1x192xf32> to vector<16x16x192xf32>
    %50 = arith.mulf %45, %49 : vector<16x16x192xf32>
    %51 = arith.addf %44, %50 : vector<16x16x192xf32>
    %c1_32 = arith.constant 1 : index
    %c2_33 = arith.constant 2 : index
    %c0_34 = arith.constant 0 : index
    %52 = vector.load %arg9[%c1_32, %c2_33, %c0_34] : memref<18x18x192xf32, #tpu.memory_space<vmem>>, vector<16x16x192xf32>
    %53 = vector.extract_strided_slice %15 {offsets = [5, 0, 0], sizes = [1, 1, 192], strides = [1, 1, 1]} : vector<9x1x192xf32> to vector<1x1x192xf32>
    %54 = vector.shape_cast %53 : vector<1x1x192xf32> to vector<1x192xf32>
    %55 = vector.shape_cast %54 : vector<1x192xf32> to vector<1x1x192xf32>
    %56 = vector.broadcast %55 : vector<1x1x192xf32> to vector<16x16x192xf32>
    %57 = arith.mulf %52, %56 : vector<16x16x192xf32>
    %58 = arith.addf %51, %57 : vector<16x16x192xf32>
    %c2_35 = arith.constant 2 : index
    %c0_36 = arith.constant 0 : index
    %c0_37 = arith.constant 0 : index
    %59 = vector.load %arg9[%c2_35, %c0_36, %c0_37] : memref<18x18x192xf32, #tpu.memory_space<vmem>>, vector<16x16x192xf32>
    %60 = vector.extract_strided_slice %15 {offsets = [6, 0, 0], sizes = [1, 1, 192], strides = [1, 1, 1]} : vector<9x1x192xf32> to vector<1x1x192xf32>
    %61 = vector.shape_cast %60 : vector<1x1x192xf32> to vector<1x192xf32>
    %62 = vector.shape_cast %61 : vector<1x192xf32> to vector<1x1x192xf32>
    %63 = vector.broadcast %62 : vector<1x1x192xf32> to vector<16x16x192xf32>
    %64 = arith.mulf %59, %63 : vector<16x16x192xf32>
    %65 = arith.addf %58, %64 : vector<16x16x192xf32>
    %c2_38 = arith.constant 2 : index
    %c1_39 = arith.constant 1 : index
    %c0_40 = arith.constant 0 : index
    %66 = vector.load %arg9[%c2_38, %c1_39, %c0_40] : memref<18x18x192xf32, #tpu.memory_space<vmem>>, vector<16x16x192xf32>
    %67 = vector.extract_strided_slice %15 {offsets = [7, 0, 0], sizes = [1, 1, 192], strides = [1, 1, 1]} : vector<9x1x192xf32> to vector<1x1x192xf32>
    %68 = vector.shape_cast %67 : vector<1x1x192xf32> to vector<1x192xf32>
    %69 = vector.shape_cast %68 : vector<1x192xf32> to vector<1x1x192xf32>
    %70 = vector.broadcast %69 : vector<1x1x192xf32> to vector<16x16x192xf32>
    %71 = arith.mulf %66, %70 : vector<16x16x192xf32>
    %72 = arith.addf %65, %71 : vector<16x16x192xf32>
    %c2_41 = arith.constant 2 : index
    %c2_42 = arith.constant 2 : index
    %c0_43 = arith.constant 0 : index
    %73 = vector.load %arg9[%c2_41, %c2_42, %c0_43] : memref<18x18x192xf32, #tpu.memory_space<vmem>>, vector<16x16x192xf32>
    %74 = vector.extract_strided_slice %15 {offsets = [8, 0, 0], sizes = [1, 1, 192], strides = [1, 1, 1]} : vector<9x1x192xf32> to vector<1x1x192xf32>
    %75 = vector.shape_cast %74 : vector<1x1x192xf32> to vector<1x192xf32>
    %76 = vector.shape_cast %75 : vector<1x192xf32> to vector<1x1x192xf32>
    %77 = vector.broadcast %76 : vector<1x1x192xf32> to vector<16x16x192xf32>
    %78 = arith.mulf %73, %77 : vector<16x16x192xf32>
    %79 = arith.addf %72, %78 : vector<16x16x192xf32>
    %c0_44 = arith.constant 0 : index
    %c0_45 = arith.constant 0 : index
    %80 = vector.load %arg5[%c0_44, %c0_45] : memref<1x192xf32, #tpu.memory_space<vmem>>, vector<1x192xf32>
    %81 = vector.shape_cast %80 : vector<1x192xf32> to vector<1x1x192xf32>
    %82 = vector.broadcast %81 : vector<1x1x192xf32> to vector<16x16x192xf32>
    %83 = arith.addf %79, %82 : vector<16x16x192xf32>
    %cst_46 = arith.constant 0.000000e+00 : f32
    %cst_47 = arith.constant 6.000000e+00 : f32
    %84 = vector.broadcast %cst_46 : f32 to vector<16x16x192xf32>
    %85 = arith.maximumf %84, %83 : vector<16x16x192xf32>
    %86 = vector.broadcast %cst_47 : f32 to vector<16x16x192xf32>
    %87 = arith.minimumf %86, %85 : vector<16x16x192xf32>
    %88 = vector.shape_cast %87 : vector<16x16x192xf32> to vector<256x192xf32>
    %89 = arith.truncf %88 : vector<256x192xf32> to vector<256x192xbf16>
    %c0_48 = arith.constant 0 : index
    %c0_49 = arith.constant 0 : index
    %90 = vector.load %arg6[%c0_48, %c0_49] : memref<192x32xbf16, #tpu.memory_space<vmem>>, vector<192x32xbf16>
    %cst_50 = arith.constant dense<0.000000e+00> : vector<256x32xf32>
    %91 = tpu.matmul %89, %90, %cst_50 {dimension_numbers = #tpu.dot_dimension_numbers<[1], [0], [0], [1], [0, 0, 1, 1], [], []>} : vector<256x192xbf16>, vector<192x32xbf16>, vector<256x32xf32> -> vector<256x32xf32>
    %c0_51 = arith.constant 0 : index
    %c0_52 = arith.constant 0 : index
    %92 = vector.load %arg7[%c0_51, %c0_52] : memref<1x32xf32, #tpu.memory_space<vmem>>, vector<1x32xf32>
    %93 = vector.broadcast %92 : vector<1x32xf32> to vector<256x32xf32>
    %94 = arith.addf %91, %93 : vector<256x32xf32>
    %95 = arith.extf %1 : vector<256x32xbf16> to vector<256x32xf32>
    %96 = arith.addf %94, %95 : vector<256x32xf32>
    %97 = arith.truncf %96 : vector<256x32xf32> to vector<256x32xbf16>
    %c0_53 = arith.constant 0 : index
    %c0_54 = arith.constant 0 : index
    %c0_55 = arith.constant 0 : index
    %98 = vector.load %arg8[%c0_53, %c0_54, %c0_55] : memref<1x256x32xbf16, #tpu.memory_space<vmem>>, vector<1x256x32xbf16>
    %99 = vector.shape_cast %98 : vector<1x256x32xbf16> to vector<256x32xbf16>
    %100 = vector.shape_cast %97 : vector<256x32xbf16> to vector<1x256x32xbf16>
    tpu.vector_store %arg8[%c0_53, %c0_54, %c0_55], %100 {strides = array<i32>} : memref<1x256x32xbf16, #tpu.memory_space<vmem>>, vector<1x256x32xbf16>,
    return
  }
  func.func @transform_0(%arg0: i32) -> (i32, i32, i32) {
    %c0_i32 = arith.constant 0 : i32
    %c0_i32_0 = arith.constant 0 : i32
    %c0_i32_1 = arith.constant 0 : i32
    return %arg0, %c0_i32, %c0_i32_0 : i32, i32, i32
  }
  func.func @transform_1(%arg0: i32) -> (i32, i32) {
    %c0_i32 = arith.constant 0 : i32
    %c0_i32_0 = arith.constant 0 : i32
    %c0_i32_1 = arith.constant 0 : i32
    return %c0_i32, %c0_i32_0 : i32, i32
  }
  func.func @transform_2(%arg0: i32) -> (i32, i32) {
    %c0_i32 = arith.constant 0 : i32
    %c0_i32_0 = arith.constant 0 : i32
    %c0_i32_1 = arith.constant 0 : i32
    return %c0_i32, %c0_i32_0 : i32, i32
  }
  func.func @transform_3(%arg0: i32) -> (i32, i32, i32) {
    %c0_i32 = arith.constant 0 : i32
    %c0_i32_0 = arith.constant 0 : i32
    %c0_i32_1 = arith.constant 0 : i32
    %c0_i32_2 = arith.constant 0 : i32
    return %c0_i32, %c0_i32_0, %c0_i32_1 : i32, i32, i32
  }
  func.func @transform_4(%arg0: i32) -> (i32, i32) {
    %c0_i32 = arith.constant 0 : i32
    %c0_i32_0 = arith.constant 0 : i32
    %c0_i32_1 = arith.constant 0 : i32
    return %c0_i32, %c0_i32_0 : i32, i32
  }
  func.func @transform_5(%arg0: i32) -> (i32, i32) {
    %c0_i32 = arith.constant 0 : i32
    %c0_i32_0 = arith.constant 0 : i32
    %c0_i32_1 = arith.constant 0 : i32
    return %c0_i32, %c0_i32_0 : i32, i32
  }
  func.func @transform_6(%arg0: i32) -> (i32, i32) {
    %c0_i32 = arith.constant 0 : i32
    %c0_i32_0 = arith.constant 0 : i32
    %c0_i32_1 = arith.constant 0 : i32
    return %c0_i32, %c0_i32_0 : i32, i32
  }
  func.func @transform_7(%arg0: i32) -> (i32, i32, i32) {
    %c0_i32 = arith.constant 0 : i32
    %c0_i32_0 = arith.constant 0 : i32
    %c0_i32_1 = arith.constant 0 : i32
    return %arg0, %c0_i32, %c0_i32_0 : i32, i32, i32
  }
}

</mosaic_0001>

<bundles_post_ra>
// kernel: tpu_custom_call.1
= control target key start
LH: loop header
LB: loop body
LE: loop exit
PB: predicated region body
PF: predicated region fallthrough
CT: control target
= control target key end

     0   :  { %s6172_s24 = smov 0   ;;  %s8826_s0 = inlined_call_operand.vmem [shape: bf16[2,256,32], index: 0, kind: input, shape index: {}]   ;;  %s8827_s1 = inlined_call_operand.vmem [shape: bf16[32,192], index: 1, kind: input, shape index: {}]   ;;  %s8828_s2 = inlined_call_operand.vmem [shape: f32[1,192], index: 2, kind: input, shape index: {}]   ;;  %s8829_s3 = inlined_call_operand.vmem [shape: f32[9,1,192], index: 3, kind: input, shape index: {}]   ;;  %s8830_s4 = inlined_call_operand.vmem [shape: f32[1,192], index: 4, kind: input, shape index: {}]   ;;  %s8831_s5 = inlined_call_operand.vmem [shape: bf16[192,32], index: 5, kind: input, shape index: {}]   ;;  %s8832_s6 = inlined_call_operand.vmem [shape: f32[1,32], index: 6, kind: input, shape index: {}]   ;;  %s8833_s7 = inlined_call_operand.vmem [shape: bf16[2,256,32], index: 7, kind: output, shape index: {}]  }
   0x1 LB: > { %s5880_s25 = sadd.s32 4294967295, %s6129_s24   ;;  %p5884_p0 = scmp.ge.s32.totalorder %s6129_s24, 1  ;;  %s6129_s24 = sphi %s6172_s24, %s17_s24  }
   0x2   : > { %p237_p1 = scmp.lt.s32.totalorder %s6129_s24, 3 }
   0x4   : > { %p238_p2 = pnand %p5884_p0, %p237_p1 }
   0x6   : > { %241 = sbr.rel (%p238_p2) target bundleno = 1035 (0x40b), region = 48 }
   0xb   : > { %v5963_v0 = vld [vmem:[%s8827_s1 + $0x10] sm:$0xf]  ;;  %v6088_v1 = vld [vmem:[%s8827_s1 + $0x14] sm:$0xf0]  ;;  %v6087_v2 = vld [vmem:[%s8827_s1 + $0x14] sm:$0xf] }
   0xc   : > { %v5964_v3 = vor.u32 %v6088_v1, %v5963_v0  ;;  %v5965_v4 = vld [vmem:[%s8827_s1 + $0x18] sm:$0xf0]  ;;  %v5955_v5 = vld [vmem:[%s8827_s1] sm:$0xf]  ;;  %v6086_v6 = vld [vmem:[%s8827_s1 + $0x4] sm:$0xf0] }
   0xd   : > { %v5968_v7 = vor.u32 %v6087_v2, %v5965_v4  ;;  %v6085_v8 = vld [vmem:[%s8827_s1 + $0x4] sm:$0xf]  ;;  %v5957_v9 = vld [vmem:[%s8827_s1 + $0x8] sm:$0xf0]  ;;  %p269_p3 = scmp.lt.s32.totalorder %s5880_s25, 1  ;;  %v5956_v10 = vor.u32 %v6086_v6, %v5955_v5  ;;  %vm422_vm0 = vcmask 261120  }
   0xe   : > { %477 = vmatpush.bf16.msra.mxu0 %v5964_v3  ;;  %v5960_v11 = vor.u32 %v6085_v8, %v5957_v9  ;;  %v6131_v19 = vmov 0.0   ;;  %v316_v21 = vld [vmem:[%s8828_s2] sm:$0x3]  ;;  %vm1146_vm1 = vcmask 523265   ;;  %vm778_vm2 = vcmask 523264  }
   0xf   : > { %566 = vmatpush.bf16.msra.mxu1 %v5968_v7  ;;  %s8914_s25 = smov (!%p269_p3, %s5880_s25), 1  ;;  %785 = vst [vmem:[#allocation2 + $0x30] sm:$0xff] %v6131_v19  ;;  %v6266_v22 = vperm.slane %v316_v21, 0  ;;  %v6270_v23 = vperm.slane %v316_v21, 1  ;;  %v1244_v42 = vld [vmem:[%s8829_s3 + $0x2] sm:$0x3] }
  0x10   : > { %s6067_s19 = sshll.u32 %s8914_s25, 7  ;;  %777 = vst [vmem:[#allocation2] sm:$0xff] %v6131_v19  ;;  %v6334_v43 = vperm.slane %v1244_v42, 1  ;;  %v1245_v48 = vld [vmem:[%s8829_s3 + $0x4] sm:$0x3]  ;;  %vm951_vm3 = vcmask 1040384  }
  0x11   : > { %s6212_s22 = scalar_lea.vmem %s8826_s0, %s6067_s19  ;;  %782 = vst [vmem:[#allocation2 + $0x20] sm:$0x3] %v6131_v19  ;;  %v6350_v51 = vperm.slane %v1245_v48, 1  ;;  %v6366_v57 = vld [vmem:[%s8829_s3] sm:$0x3]  ;;  %vm1710_vm4 = vcmask 1046528   ;;  %s8029_s14 = scalar_lea.vmem %s8833_s7, %s6067_s19 }
  0x12   : > { %478 = vmatpush.bf16.msra.mxu0 %v5956_v10  ;;  %v6069_v12 = vld [vmem:[%s6212_s22] sm:$0xff]  ;;  %v6070_v13 = vld [vmem:[%s6212_s22 + $0x8] sm:$0xff]  ;;  %v6071_v14 = vld [vmem:[%s6212_s22 + $0x10] sm:$0xff]  ;;  %789 = vst [vmem:[#allocation2 + $0x50] sm:$0x3] %v6131_v19  ;;  %v6373_v58 = vperm.slane %v6366_v57, 1 }
  0x13   : > { %567 = vmatpush.bf16.msra.mxu1 %v5960_v11  ;;  %v6072_v15 = vld [vmem:[%s6212_s22 + $0x18] sm:$0xff]  ;;  %v6073_v16 = vld [vmem:[%s6212_s22 + $0x20] sm:$0xff]  ;;  %v6074_v17 = vld [vmem:[%s6212_s22 + $0x28] sm:$0xff]  ;;  %791 = vst [vmem:[#allocation2 + $0x60] sm:$0xff] %v6131_v19  ;;  %v6394_v5 = vperm.slane %v1244_v42, 0  ;;  %v6396_v6 = vperm.slane %v1245_v48, 0 }
  0x14   : > { %v6075_v18 = vld [vmem:[%s6212_s22 + $0x30] sm:$0xff]  ;;  %795 = vst [vmem:[#allocation2 + $0x80] sm:$0x3] %v6131_v19  ;;  %v6076_v20 = vld [vmem:[%s6212_s22 + $0x38] sm:$0xff]  ;;  %v6077_v24 = vld [vmem:[%s6212_s22 + $0x40] sm:$0xff]  ;;  %vm2260_vm5 = vcmask 1045504  }
  0x15   : > { %5969 = vmatmul.msk.bf16.vlgmr.msra.gmra.mxu0 %vm422_vm0, %v6069_v12  ;;  %797 = vst [vmem:[#allocation2 + $0x90] sm:$0xff] %v6131_v19  ;;  %v6078_v52 = vld [vmem:[%s6212_s22 + $0x48] sm:$0xff]  ;;  %v6403_v7 = vld [vmem:[%s8829_s3 + $0x6] sm:$0x3]  ;;  %vm783_vm6 = vcmask 517120   ;;  %vm1151_vm7 = vcmask 516096  }
  0x16   : > { %5985 = vmatmul.msk.bf16.vlgmr.msra.gmra.mxu1 %vm422_vm0, %v6069_v12  ;;  %801 = vst [vmem:[#allocation2 + $0xb0] sm:$0x3] %v6131_v19  ;;  %v6408_v8 = vld [vmem:[%s8829_s3 + $0x8] sm:$0x3]  ;;  %v6416_v12 = vld [vmem:[%s8829_s3 + $0xa] sm:$0x3] }
  0x17   : > { %803 = vst [vmem:[#allocation2 + $0xc0] sm:$0xff] %v6131_v19  ;;  %vm5792_vm8 = vcmask 257024  }
  0x18   : > { %807 = vst [vmem:[#allocation2 + $0xe0] sm:$0x3] %v6131_v19 }
  0x19   : > { %809 = vst [vmem:[#allocation2 + $0xf0] sm:$0xff] %v6131_v19 }
  0x1a   : > { %813 = vst [vmem:[#allocation2 + $0x110] sm:$0x3] %v6131_v19 }
  0x1b   : > { %815 = vst [vmem:[#allocation2 + $0x120] sm:$0xff] %v6131_v19 }
  0x1c   : > { %819 = vst [vmem:[#allocation2 + $0x140] sm:$0x3] %v6131_v19 }
  0x1d   : > { %821 = vst [vmem:[#allocation2 + $0x150] sm:$0xff] %v6131_v19 }
  0x1e   : > { %825 = vst [vmem:[#allocation2 + $0x170] sm:$0x3] %v6131_v19 }
  0x1f   : > { %827 = vst [vmem:[#allocation2 + $0x180] sm:$0xff] %v6131_v19 }
  0x20   : > { %831 = vst [vmem:[#allocation2 + $0x1a0] sm:$0x3] %v6131_v19 }
  0x21   : > { %833 = vst [vmem:[#allocation2 + $0x1b0] sm:$0xff] %v6131_v19 }
  0x22   : > { %837 = vst [vmem:[#allocation2 + $0x1d0] sm:$0x3] %v6131_v19 }
  0x23   : > { %839 = vst [vmem:[#allocation2 + $0x1e0] sm:$0xff] %v6131_v19 }
  0x24   : > { %843 = vst [vmem:[#allocation2 + $0x200] sm:$0x3] %v6131_v19 }
  0x25   : > { %5970 = vmatmul.msk.bf16.gmra.mxu0 %vm422_vm0, %v6070_v13  ;;  %845 = vst [vmem:[#allocation2 + $0x210] sm:$0xff] %v6131_v19 }
  0x26   : > { %5986 = vmatmul.msk.bf16.gmra.mxu1 %vm422_vm0, %v6070_v13  ;;  %849 = vst [vmem:[#allocation2 + $0x230] sm:$0x3] %v6131_v19 }
  0x27   : > { %851 = vst [vmem:[#allocation2 + $0x240] sm:$0xff] %v6131_v19 }
  0x28   : > { %855 = vst [vmem:[#allocation2 + $0x260] sm:$0x3] %v6131_v19 }
  0x29   : > { %857 = vst [vmem:[#allocation2 + $0x270] sm:$0xff] %v6131_v19 }
  0x2a   : > { %861 = vst [vmem:[#allocation2 + $0x290] sm:$0x3] %v6131_v19 }
  0x2b   : > { %863 = vst [vmem:[#allocation2 + $0x2a0] sm:$0xff] %v6131_v19 }
  0x2c   : > { %867 = vst [vmem:[#allocation2 + $0x2c0] sm:$0x3] %v6131_v19 }
  0x2d   : > { %869 = vst [vmem:[#allocation2 + $0x2d0] sm:$0xff] %v6131_v19 }
  0x2e   : > { %873 = vst [vmem:[#allocation2 + $0x2f0] sm:$0x3] %v6131_v19 }
  0x2f   : > { %875 = vst [vmem:[#allocation2 + $0x300] sm:$0xff] %v6131_v19 }
  0x30   : > { %879 = vst [vmem:[#allocation2 + $0x320] sm:$0x3] %v6131_v19 }
  0x31   : > { %881 = vst [vmem:[#allocation2 + $0x330] sm:$0xff] %v6131_v19 }
  0x32   : > { %885 = vst [vmem:[#allocation2 + $0x350] sm:$0x3] %v6131_v19 }
  0x33   : > { %786 = vst.msk [vmem:[#allocation2 + $0x38] sm:$0xff] %vm778_vm2, %v6131_v19 }
  0x34   : > { %779 = vst.msk [vmem:[#allocation2 + $0x8] sm:$0xff] %vm778_vm2, %v6131_v19 }
  0x35   : > { %5971 = vmatmul.msk.bf16.gmra.mxu0 %vm422_vm0, %v6071_v14  ;;  %781 = vst.msk [vmem:[#allocation2 + $0x18] sm:$0xff] %vm778_vm2, %v6131_v19 }
  0x36   : > { %5987 = vmatmul.msk.bf16.gmra.mxu1 %vm422_vm0, %v6071_v14  ;;  %788 = vst.msk [vmem:[#allocation2 + $0x48] sm:$0xff] %vm778_vm2, %v6131_v19  ;;  %v6419_v14 = vperm.slane %v6408_v8, 1 }
  0x37   : > { %792 = vst.msk [vmem:[#allocation2 + $0x68] sm:$0xff] %vm778_vm2, %v6131_v19 }
  0x38   : > { %794 = vst.msk [vmem:[#allocation2 + $0x78] sm:$0xff] %vm778_vm2, %v6131_v19 }
  0x39   : > { %798 = vst.msk [vmem:[#allocation2 + $0x98] sm:$0xff] %vm778_vm2, %v6131_v19 }
  0x3a   : > { %800 = vst.msk [vmem:[#allocation2 + $0xa8] sm:$0xff] %vm778_vm2, %v6131_v19 }
  0x3b   : > { %804 = vst.msk [vmem:[#allocation2 + $0xc8] sm:$0xff] %vm778_vm2, %v6131_v19  ;;  %v1450_v46 = vld [vmem:[#allocation2 + $0x8] sm:$0xfe] }
  0x3c   : > { %806 = vst.msk [vmem:[#allocation2 + $0xd8] sm:$0xff] %vm778_vm2, %v6131_v19  ;;  %v6338_v45 = vld [vmem:[#allocation2 + $0x18] sm:$0xff]  ;;  %v1519_v53 = vmul.f32 %v6334_v43, %v1450_v46  ;;  %v2000_v55 = vld [vmem:[#allocation2 + $0x8] sm:$0xfc] }
  0x3d   : > { %810 = vst.msk [vmem:[#allocation2 + $0xf8] sm:$0xff] %vm778_vm2, %v6131_v19  ;;  %v6358_v54 = vmul.f32 %v6334_v43, %v6338_v45  ;;  %v1253_v61 = vld [vmem:[#allocation2 + $0x8] sm:$0xff]  ;;  %v2069_v62 = vmul.f32 %v6350_v51, %v2000_v55  ;;  %v6390_v2 = vmul.f32 %v6350_v51, %v6338_v45 }
  0x3e   : > { %812 = vst.msk [vmem:[#allocation2 + $0x108] sm:$0xff] %vm778_vm2, %v6131_v19  ;;  %v1714_v0 = vrot.slane %v1519_v53, 1  ;;  %v1322_v9 = vmul.f32 %v6373_v58, %v1253_v61 }
  0x3f   : > { %816 = vst.msk [vmem:[#allocation2 + $0x128] sm:$0xff] %vm778_vm2, %v6131_v19  ;;  %v8841_v1 = vrot.slane %v6358_v54, 1  ;;  %v2264_v13 = vrot.slane %v2069_v62, 2  ;;  %v8840_v21 = vrot.slane %v6390_v2, 2  ;;  %v6485_v62 = vperm.slane %v6366_v57, 0 }
  0x40   : > { %818 = vst.msk [vmem:[#allocation2 + $0x138] sm:$0xff] %vm778_vm2, %v6131_v19 }
  0x41   : > { %822 = vst.msk [vmem:[#allocation2 + $0x158] sm:$0xff] %vm778_vm2, %v6131_v19  ;;  %v2266_v42 = vsel %vm2260_vm5, %v2264_v13, %v8840_v21  ;;  %v6080_v21 = vld [vmem:[%s6212_s22 + $0x58] sm:$0xff] }
  0x42   : > { %824 = vst.msk [vmem:[#allocation2 + $0x168] sm:$0xff] %vm778_vm2, %v6131_v19 }
  0x43   : > { %828 = vst.msk [vmem:[#allocation2 + $0x188] sm:$0xff] %vm778_vm2, %v6131_v19 }
  0x44   : > { %830 = vst.msk [vmem:[#allocation2 + $0x198] sm:$0xff] %vm778_vm2, %v6131_v19 }
  0x45   : > { %5972 = vmatmul.msk.bf16.gmra.mxu0 %vm422_vm0, %v6072_v15  ;;  %834 = vst.msk [vmem:[#allocation2 + $0x1b8] sm:$0xff] %vm778_vm2, %v6131_v19 }
  0x46   : > { %5988 = vmatmul.msk.bf16.gmra.mxu1 %vm422_vm0, %v6072_v15  ;;  %836 = vst.msk [vmem:[#allocation2 + $0x1c8] sm:$0xff] %vm778_vm2, %v6131_v19 }
  0x47   : > { %840 = vst.msk [vmem:[#allocation2 + $0x1e8] sm:$0xff] %vm778_vm2, %v6131_v19 }
  0x48   : > { %842 = vst.msk [vmem:[#allocation2 + $0x1f8] sm:$0xff] %vm778_vm2, %v6131_v19 }
  0x49   : > { %8863 = vst [vmem:[#allocation3_spill] sm:$0xff] %v6373_v58 }
  0x4a   : > { %846 = vst.msk [vmem:[#allocation2 + $0x218] sm:$0xff] %vm778_vm2, %v6131_v19 }
  0x4b   : > { %848 = vst.msk [vmem:[#allocation2 + $0x228] sm:$0xff] %vm778_vm2, %v6131_v19 }
  0x4c   : > { %852 = vst.msk [vmem:[#allocation2 + $0x248] sm:$0xff] %vm778_vm2, %v6131_v19 }
  0x4d   : > { %8864 = vst [vmem:[#allocation4_spill] sm:$0xff] %v6394_v5 }
  0x4e   : > { %8865 = vst [vmem:[#allocation5_spill] sm:$0xff] %v6396_v6 }
  0x4f   : > { %854 = vst.msk [vmem:[#allocation2 + $0x258] sm:$0xff] %vm778_vm2, %v6131_v19 }
  0x50   : > { %858 = vst.msk [vmem:[#allocation2 + $0x278] sm:$0xff] %vm778_vm2, %v6131_v19 }
  0x51   : > { %8866 = vst [vmem:[#allocation6_spill] sm:$0xff] %v6419_v14 }
  0x52   : > { %860 = vst.msk [vmem:[#allocation2 + $0x288] sm:$0xff] %vm778_vm2, %v6131_v19 }
  0x53   : > { %864 = vst.msk [vmem:[#allocation2 + $0x2a8] sm:$0xff] %vm778_vm2, %v6131_v19 }
  0x54   : > { %866 = vst.msk [vmem:[#allocation2 + $0x2b8] sm:$0xff] %vm778_vm2, %v6131_v19 }
  0x55   : > { %5973 = vmatmul.msk.bf16.gmra.mxu0 %vm422_vm0, %v6073_v16  ;;  %870 = vst.msk [vmem:[#allocation2 + $0x2d8] sm:$0xff] %vm778_vm2, %v6131_v19 }
  0x56   : > { %5989 = vmatmul.msk.bf16.gmra.mxu1 %vm422_vm0, %v6073_v16  ;;  %872 = vst.msk [vmem:[#allocation2 + $0x2e8] sm:$0xff] %vm778_vm2, %v6131_v19 }
  0x57   : > { %876 = vst.msk [vmem:[#allocation2 + $0x308] sm:$0xff] %vm778_vm2, %v6131_v19 }
  0x58   : > { %878 = vst.msk [vmem:[#allocation2 + $0x318] sm:$0xff] %vm778_vm2, %v6131_v19 }
  0x59   : > { %882 = vst.msk [vmem:[#allocation2 + $0x338] sm:$0xff] %vm778_vm2, %v6131_v19 }
  0x5a   : > { %884 = vst.msk [vmem:[#allocation2 + $0x348] sm:$0xff] %vm778_vm2, %v6131_v19 }
  0x5b   : > { %790 = vst.msk [vmem:[#allocation2 + $0x58] sm:$0x3] %vm783_vm6, %v6131_v19 }
  0x5c   : > { %784 = vst.msk [vmem:[#allocation2 + $0x28] sm:$0x3] %vm783_vm6, %v6131_v19 }
  0x5d   : > { %796 = vst.msk [vmem:[#allocation2 + $0x88] sm:$0x3] %vm783_vm6, %v6131_v19 }
  0x5e   : > { %802 = vst.msk [vmem:[#allocation2 + $0xb8] sm:$0x3] %vm783_vm6, %v6131_v19 }
  0x5f   : > { %808 = vst.msk [vmem:[#allocation2 + $0xe8] sm:$0x3] %vm783_vm6, %v6131_v19 }
  0x60   : > { %814 = vst.msk [vmem:[#allocation2 + $0x118] sm:$0x3] %vm783_vm6, %v6131_v19 }
  0x61   : > { %820 = vst.msk [vmem:[#allocation2 + $0x148] sm:$0x3] %vm783_vm6, %v6131_v19 }
  0x62   : > { %826 = vst.msk [vmem:[#allocation2 + $0x178] sm:$0x3] %vm783_vm6, %v6131_v19 }
  0x63   : > { %832 = vst.msk [vmem:[#allocation2 + $0x1a8] sm:$0x3] %vm783_vm6, %v6131_v19 }
  0x64   : > { %838 = vst.msk [vmem:[#allocation2 + $0x1d8] sm:$0x3] %vm783_vm6, %v6131_v19 }
  0x65   : > { %5974 = vmatmul.msk.bf16.gmra.mxu0 %vm422_vm0, %v6074_v17  ;;  %844 = vst.msk [vmem:[#allocation2 + $0x208] sm:$0x3] %vm783_vm6, %v6131_v19 }
  0x66   : > { %5990 = vmatmul.msk.bf16.gmra.mxu1 %vm422_vm0, %v6074_v17  ;;  %850 = vst.msk [vmem:[#allocation2 + $0x238] sm:$0x3] %vm783_vm6, %v6131_v19 }
  0x67   : > { %856 = vst.msk [vmem:[#allocation2 + $0x268] sm:$0x3] %vm783_vm6, %v6131_v19 }
  0x68   : > { %862 = vst.msk [vmem:[#allocation2 + $0x298] sm:$0x3] %vm783_vm6, %v6131_v19 }
  0x69   : > { %868 = vst.msk [vmem:[#allocation2 + $0x2c8] sm:$0x3] %vm783_vm6, %v6131_v19 }
  0x6a   : > { %874 = vst.msk [vmem:[#allocation2 + $0x2f8] sm:$0x3] %vm783_vm6, %v6131_v19 }
  0x6b   : > { %880 = vst.msk [vmem:[#allocation2 + $0x328] sm:$0x3] %vm783_vm6, %v6131_v19 }
  0x6c   : > { %886 = vst.msk [vmem:[#allocation2 + $0x358] sm:$0x3] %vm783_vm6, %v6131_v19 }
  0x75   : > { %5975 = vmatmul.msk.bf16.gmra.mxu0 %vm422_vm0, %v6075_v18 }
  0x76   : > { %5991 = vmatmul.msk.bf16.gmra.mxu1 %vm422_vm0, %v6075_v18 }
  0x85   : > { %5976 = vmatmul.msk.bf16.gmra.mxu0 %vm422_vm0, %v6076_v20 }
  0x86   : > { %5992 = vmatmul.msk.bf16.gmra.mxu1 %vm422_vm0, %v6076_v20  ;;  %v1716_v20 = vsel %vm1710_vm4, %v1714_v0, %v8841_v1 }
  0x92   : > { %v480_v25 = vpop.f32.mrf.mxu0 }
  0x93   : > { %v481_v26 = vadd.f32 %v480_v25, %v6266_v22  ;;  %v569_v27 = vpop.f32.mrf.mxu1 }
  0x94   : > { %v570_v28 = vadd.f32 %v569_v27, %v6270_v23  ;;  %v6439_v27 = vperm.slane %v6403_v7, 1 }
  0x95   : > { %v649_v29 = vmax.f32 %v481_v26, 0.0  ;;  %5977 = vmatmul.msk.bf16.gmra.mxu0 %vm422_vm0, %v6077_v24 }
  0x96   : > { %v650_v30 = vmax.f32 %v570_v28, 0.0  ;;  %5993 = vmatmul.msk.bf16.gmra.mxu1 %vm422_vm0, %v6077_v24  ;;  %8867 = vst [vmem:[#allocation7_spill] sm:$0xff] %v6439_v27  ;;  %v6442_v28 = vperm.slane %v6416_v12, 1 }
  0x97   : > { %v6283_v31 = vmin.f32 %v649_v29, 6.0 }
  0x98   : > { %v6287_v32 = vmin.f32 %v650_v30, 6.0  ;;  %8868 = vst [vmem:[#allocation8_spill] sm:$0xff] %v6442_v28 }
  0x99   : > { %v952_v33 = vrot.slane %v6283_v31, 7 }
  0x9a   : > { %v953_v34 = vrot.slane %v6287_v32, 7  ;;  %v482_v35 = vpop.f32.mrf.mxu0 }
  0x9b   : > { %1145 = vst [vmem:[#allocation2 + $0x30] sm:$0xfe] %v952_v33  ;;  %v483_v36 = vadd.f32 %v482_v35, %v6266_v22  ;;  %v571_v37 = vpop.f32.mrf.mxu1 }
  0x9c   : > { %1147 = vst.msk [vmem:[#allocation2 + $0x38] sm:$0xfe] %vm1146_vm1, %v953_v34  ;;  %v572_v39 = vadd.f32 %v571_v37, %v6270_v23 }
  0x9d   : > { %v651_v38 = vmax.f32 %v483_v36, 0.0 }
  0x9e   : > { %v652_v41 = vmax.f32 %v572_v39, 0.0 }
  0x9f   : > { %v6327_v40 = vmin.f32 %v651_v38, 6.0 }
  0xa0   : > { %v6348_v50 = vmin.f32 %v652_v41, 6.0 }
  0xa1   : > { %v954_v49 = vrot.slane %v6327_v40, 7 }
  0xa2   : > { %v485_v44 = vpop.f32.mrf.mxu0  ;;  %v956_v60 = vrot.slane %v6348_v50, 7  ;;  %v1453_v3 = vld [vmem:[#allocation2 + $0x30] sm:$0xfe] }
  0xa3   : > { %v574_v47 = vpop.f32.mrf.mxu1  ;;  %v486_v56 = vadd.f32 %v485_v44, %v6266_v22  ;;  %v6380_v59 = vsel %vm951_vm3, %v952_v33, %v954_v49  ;;  %v1524_v15 = vmul.f32 %v6394_v5, %v1453_v3  ;;  %v2747_v24 = vld [vmem:[#allocation2 + $0x38] sm:$0xfe]  ;;  %v2003_v31 = vld [vmem:[#allocation2 + $0x30] sm:$0xfc]  ;;  %v1936_v33 = vadd.f32 %v1716_v20, %v1322_v9  ;;  %1150 = vst [vmem:[#allocation2 + $0x50] sm:$0x1] %v954_v49 }
  0xa4   : > { %v575_v63 = vadd.f32 %v574_v47, %v6270_v23  ;;  %v6424_v16 = vmul.f32 %v6394_v5, %v6380_v59  ;;  %v3296_v30 = vld [vmem:[#allocation2 + $0x38] sm:$0xfc]  ;;  %v6451_v36 = vmul.f32 %v6419_v14, %v2747_v24  ;;  %v1256_v47 = vld [vmem:[#allocation2 + $0x30] sm:$0xff]  ;;  %v2074_v48 = vmul.f32 %v6396_v6, %v2003_v31  ;;  %1148 = vst [vmem:[#allocation2 + $0x40] sm:$0xff] %v6380_v59 }
  0xa5   : > { %5978 = vmatmul.msk.bf16.gmra.mxu0 %vm422_vm0, %v6078_v52  ;;  %v653_v4 = vmax.f32 %v486_v56, 0.0  ;;  %v6448_v35 = vld [vmem:[#allocation2 + $0x38] sm:$0xff]  ;;  %v1721_v37 = vrot.slane %v1524_v15, 1  ;;  %v6466_v46 = vmul.f32 %v6442_v28, %v3296_v30  ;;  %v957_v53 = vsel %vm951_vm3, %v953_v34, %v956_v60  ;;  %v6079_v56 = vld [vmem:[%s6212_s22 + $0x50] sm:$0xff]  ;;  %1152 = vst.msk [vmem:[#allocation2 + $0x58] sm:$0x1] %vm1151_vm7, %v956_v60 }
  0xa6   : > { %5994 = vmatmul.msk.bf16.gmra.mxu1 %vm422_vm0, %v6078_v52  ;;  %v654_v17 = vmax.f32 %v575_v63, 0.0  ;;  %v8838_v38 = vrot.slane %v6424_v16, 1  ;;  %v6471_v52 = vmul.f32 %v6396_v6, %v6380_v59  ;;  %v2619_v61 = vmul.f32 %v6439_v27, %v6448_v35  ;;  %v1454_v13 = vld [vmem:[#allocation2 + $0x38] sm:$0xfe]  ;;  %1149 = vst.msk [vmem:[#allocation2 + $0x48] sm:$0xff] %vm778_vm2, %v957_v53 }
  0xa7   : > { %v6435_v25 = vmin.f32 %v653_v4, 6.0  ;;  %v2486_v4 = vadd.f32 %v2266_v42, %v1936_v33  ;;  %v2004_v15 = vld [vmem:[#allocation2 + $0x38] sm:$0xfc]  ;;  %v2271_v20 = vrot.slane %v2074_v48, 2  ;;  %v6525_v49 = vperm.slane %v6408_v8, 0  ;;  %v6099_v8 = vld [vmem:[%s8831_s5 + $0x50] sm:$0xff] }
  0xa8   : > { %v6456_v39 = vmin.f32 %v654_v17, 6.0  ;;  %v1723_v34 = vsel %vm1710_vm4, %v1721_v37, %v8838_v38  ;;  %v8836_v24 = vrot.slane %v6471_v52, 2  ;;  %v6096_v30 = vld [vmem:[%s8831_s5 + $0x38] sm:$0xff]  ;;  %v6528_v37 = vmul.f32 %v6334_v43, %v1454_v13  ;;  %v1249_v48 = vld [vmem:[%s8829_s3 + $0xc] sm:$0x3] }
  0xa9   : > { %v8839_v55 = vrot.slane %v6435_v25, 7  ;;  %v6100_v31 = vld [vmem:[%s8831_s5 + $0x58] sm:$0xff]  ;;  %8869 = vst [vmem:[#allocation9_spill] sm:$0xff] %v6525_v49  ;;  %v6531_v42 = vmul.f32 %v6350_v51, %v2004_v15  ;;  %6101 = vmatpush.bf16.msra.mxu2 %v6096_v30  ;;  %v6551_v53 = vmul.f32 %v6485_v62, %v6380_v59  ;;  %5518 = vmatpush.bf16.msrb.mxu0 %v6096_v30  ;;  %v6566_v59 = vperm.slane %v6403_v7, 0  ;;  %v6575_v60 = vld [vmem:[%s8829_s3 + $0x10] sm:$0x3] }
  0xaa   : > { %v487_v10 = vpop.f32.mrf.mxu0  ;;  %v8837_v57 = vrot.slane %v6456_v39, 7  ;;  %5611 = vmatpush.bf16.msra.mxu3 %v6100_v31  ;;  %v6094_v30 = vld [vmem:[%s8831_s5 + $0x28] sm:$0xff]  ;;  %v8882_v19 = vrot.slane %v6424_v16, 1 }
  0xab   : > { %v576_v11 = vpop.f32.mrf.mxu1  ;;  %v488_v18 = vadd.f32 %v487_v10, %v6266_v22  ;;  %8870 = vst [vmem:[#allocation10_spill] sm:$0xff] %v6531_v42  ;;  %v6098_v31 = vld [vmem:[%s8831_s5 + $0x48] sm:$0xff] }
  0xac   : > { %v577_v26 = vadd.f32 %v576_v11, %v6270_v23  ;;  %v1325_v11 = vmul.f32 %v6485_v62, %v1256_v47  ;;  %v6095_v47 = vld [vmem:[%s8831_s5 + $0x30] sm:$0xff]  ;;  %v2749_v1 = vld [vmem:[#allocation2 + $0x58] sm:$0x1] }
  0xad   : > { %v655_v29 = vmax.f32 %v488_v18, 0.0  ;;  %6102 = vmatpush.bf16.msra.mxu2 %v6095_v47  ;;  %5519 = vmatpush.bf16.msrb.mxu0 %v6095_v47  ;;  %v6637_v47 = vld [vmem:[#allocation2 + $0x48] sm:$0xff] }
  0xae   : > { %v656_v44 = vmax.f32 %v577_v26, 0.0  ;;  %v1939_v33 = vadd.f32 %v1723_v34, %v1325_v11  ;;  %v6560_v34 = vadd.f32 %v2619_v61, %v2486_v4  ;;  %v6584_v4 = vperm.slane %v6416_v12, 0  ;;  %5612 = vmatpush.bf16.msra.mxu3 %v6099_v8 }
  0xaf   : > { %v6458_v41 = vmin.f32 %v655_v29, 6.0  ;;  %v6588_v11 = vperm.slane %v1249_v48, 1  ;;  %v6673_v32 = vmul.f32 %v6637_v47, %v6373_v58 }
  0xb0   : > { %v6501_v17 = vmin.f32 %v656_v44, 6.0  ;;  %8872 = vst [vmem:[#allocation12_spill] sm:$0xff] %v6584_v4 }
  0xb1   : > { %v8834_v63 = vrot.slane %v6458_v41, 7  ;;  %6103 = vmatpush.bf16.msra.mxu2 %v6094_v30  ;;  %5520 = vmatpush.bf16.msrb.mxu0 %v6094_v30 }
  0xb2   : > { %v490_v0 = vpop.f32.mrf.mxu0  ;;  %5613 = vmatpush.bf16.msra.mxu3 %v6098_v31  ;;  %v3367_v31 = vmul.f32 %v6442_v28, %v6637_v47 }
  0xb3   : > { %v579_v3 = vpop.f32.mrf.mxu1  ;;  %v491_v9 = vadd.f32 %v490_v0, %v6266_v22  ;;  %v6522_v40 = vsel %vm951_vm3, %v8839_v55, %v8834_v63  ;;  %v8835_v0 = vrot.slane %v6501_v17, 7 }
  0xb4   : > { %v580_v10 = vadd.f32 %v579_v3, %v6270_v23  ;;  %v1250_v3 = vld [vmem:[%s8829_s3 + $0xe] sm:$0x3]  ;;  %v6581_v61 = vmul.f32 %v6525_v49, %v6522_v40  ;;  %1155 = vst [vmem:[#allocation2 + $0x70] sm:$0xff] %v6522_v40 }
  0xb5   : > { %v657_v26 = vmax.f32 %v491_v9, 0.0  ;;  %5979 = vmatmul.msk.bf16.gmra.mxu0 %vm422_vm0, %v6079_v56  ;;  %v6590_v13 = vperm.slane %v1250_v3, 1  ;;  %v6615_v8 = vsel %vm951_vm3, %v8837_v57, %v8835_v0  ;;  %v6093_v57 = vld [vmem:[%s8831_s5 + $0x20] sm:$0xff] }
  0xb6   : > { %v658_v29 = vmax.f32 %v580_v10, 0.0  ;;  %5995 = vmatmul.msk.bf16.gmra.mxu1 %vm422_vm0, %v6079_v56  ;;  %v6547_v56 = vmul.f32 %v6373_v58, %v6338_v45  ;;  %v2273_v45 = vsel %vm2260_vm5, %v2271_v20, %v8836_v24  ;;  %8871 = vst [vmem:[#allocation11_spill] sm:$0xff] %v6581_v61  ;;  %v6623_v20 = vmul.f32 %v6448_v35, %v6373_v58  ;;  %v6097_v35 = vld [vmem:[%s8831_s5 + $0x40] sm:$0xff] }
  0xb7   : > { %v6534_v44 = vmin.f32 %v657_v26, 6.0  ;;  %v6577_v9 = vadd.f32 %v2273_v45, %v1939_v33  ;;  %v6606_v33 = vperm.slane %v6575_v60, 1  ;;  %v1455_v45 = vld [vmem:[#allocation2 + $0x50] sm:$0x1]  ;;  %v6647_v24 = vperm.slane %v1250_v3, 0  ;;  %6104 = vmatpush.bf16.msra.mxu2 %v6093_v57  ;;  %5614 = vmatpush.bf16.msra.mxu3 %v6097_v35  ;;  %1156 = vst.msk [vmem:[#allocation2 + $0x78] sm:$0xff] %vm778_vm2, %v6615_v8 }
  0xb8   : > { %v6570_v50 = vmin.f32 %v658_v29, 6.0  ;;  %v6640_v38 = vmul.f32 %v6394_v5, %v1455_v45  ;;  %v2818_v45 = vmul.f32 %v6419_v14, %v6637_v47  ;;  %v1452_v3 = vld [vmem:[#allocation2 + $0x28] sm:$0x1]  ;;  %v3560_v61 = vrot.slane %v3367_v31, 2  ;;  %5521 = vmatpush.bf16.msrb.mxu0 %v6093_v57  ;;  %v6092_v57 = vld [vmem:[%s8831_s5 + $0x18] sm:$0xff] }
  0xb9   : > { %v8887_v8 = vrot.slane %v6501_v17, 7 }
  0xba   : > { %v492_v7 = vpop.f32.mrf.mxu0  ;;  %v3011_v58 = vrot.slane %v2818_v45, 1  ;;  %v6697_v45 = vmul.f32 %v6637_v47, %v6334_v43 }
  0xbb   : > { %v581_v10 = vpop.f32.mrf.mxu1  ;;  %v493_v12 = vadd.f32 %v492_v7, %v6266_v22  ;;  %v2005_v7 = vld [vmem:[#allocation2 + $0x50] sm:$0x3]  ;;  %6105 = vmatpush.bf16.msra.mxu2 %v6092_v57  ;;  %1158 = vst.msk [vmem:[#allocation2 + $0x88] sm:$0x1] %vm1151_vm7, %v8887_v8 }
  0xbc   : > { %v582_v29 = vadd.f32 %v581_v10, %v6270_v23  ;;  %v6619_v10 = vmul.f32 %v6566_v59, %v6522_v40  ;;  %5522 = vmatpush.bf16.msrb.mxu0 %v6092_v57  ;;  %v1725_v57 = vrot.slane %v6697_v45, 1 }
  0xbd   : > { %v659_v63 = vmax.f32 %v493_v12, 0.0  ;;  %v6643_v12 = vmul.f32 %v6396_v6, %v2005_v7  ;;  %v2002_v7 = vld [vmem:[#allocation2 + $0x28] sm:$0x3]  ;;  %v1523_v6 = vmul.f32 %v6334_v43, %v1452_v3  ;;  %v8874_v3 = vrot.slane %v6534_v44, 7 }
  0xbe   : > { %v660_v0 = vmax.f32 %v582_v29, 0.0  ;;  %v6645_v29 = vperm.slane %v1249_v48, 0  ;;  %v6660_v48 = vmul.f32 %v6584_v4, %v6522_v40  ;;  %v2073_v5 = vmul.f32 %v6350_v51, %v2002_v7 }
  0xbf   : > { %v6651_v55 = vmin.f32 %v659_v63, 6.0  ;;  %v6666_v63 = vmul.f32 %v6439_v27, %v6637_v47  ;;  %v3298_v27 = vld [vmem:[#allocation2 + $0x58] sm:$0x3] }
  0xc0   : > { %v6653_v18 = vmin.f32 %v660_v0, 6.0  ;;  %v2820_v0 = vmul.f32 %v6419_v14, %v2749_v1  ;;  %v3369_v4 = vmul.f32 %v6442_v28, %v3298_v27  ;;  %v6714_v28 = vld [vmem:[%s8830_s4] sm:$0x3] }
  0xc1   : > { %v8857_v15 = vrot.slane %v6651_v55, 7 }
  0xc2   : > { %8873 = vst [vmem:[#allocation13_spill] sm:$0xff] %v6653_v18  ;;  %v495_v1 = vpop.f32.mrf.mxu0  ;;  %v3015_v42 = vrot.slane %v2820_v0, 1  ;;  %v8875_v27 = vrot.slane %v6653_v18, 7  ;;  %v8876_v0 = vrot.slane %v6570_v50, 7 }
  0xc3   : > { %v584_v14 = vpop.f32.mrf.mxu1  ;;  %v6691_v7 = vsel %vm951_vm3, %v8874_v3, %v8857_v15  ;;  %v496_v30 = vadd.f32 %v495_v1, %v6266_v22  ;;  %v1719_v3 = vrot.slane %v1523_v6, 1  ;;  %v2269_v1 = vrot.slane %v2073_v5, 2 }
  0xc4   : > { %v585_v26 = vadd.f32 %v584_v14, %v6270_v23  ;;  %v6706_v31 = vsel %vm951_vm3, %v8876_v0, %v8875_v27  ;;  %v8877_v14 = vrot.slane %v6451_v36, 1  ;;  %v3016_v5 = vsel %vm1710_vm4, %v3011_v58, %v3015_v42  ;;  %1161 = vst [vmem:[#allocation2 + $0xa0] sm:$0xff] %v6691_v7 }
  0xc5   : > { %v661_v49 = vmax.f32 %v496_v30, 0.0  ;;  %5980 = vmatmul.msk.bf16.gmra.mxu0 %vm422_vm0, %v6080_v21  ;;  %v8878_v36 = vrot.slane %v6358_v54, 1  ;;  %v8879_v27 = vrot.slane %v6390_v2, 2  ;;  %v6741_v2 = vperm.slane %v6714_v28, 1  ;;  %1162 = vst.msk [vmem:[#allocation2 + $0xa8] sm:$0xff] %vm778_vm2, %v6706_v31  ;;  %v8893_v31 = vld [vmem:[#allocation9_spill] sm:$0xff] }
  0xc6   : > { %v3012_v15 = vsel %vm1710_vm4, %v8877_v14, %v3011_v58  ;;  %v662_v18 = vmax.f32 %v585_v26, 0.0  ;;  %5996 = vmatmul.msk.bf16.gmra.mxu1 %vm422_vm0, %v6080_v21  ;;  %v8880_v26 = vrot.slane %v6466_v46, 2  ;;  %v3564_v21 = vrot.slane %v3369_v4, 2  ;;  %v1456_v14 = vld [vmem:[#allocation2 + $0x58] sm:$0x1] }
  0xc7   : > { %v3232_v6 = vadd.f32 %v3012_v15, %v6560_v34  ;;  %v1720_v35 = vsel %vm1710_vm4, %v8878_v36, %v1719_v3  ;;  %v2270_v30 = vsel %vm2260_vm5, %v8879_v27, %v2269_v1  ;;  %v6735_v58 = vmin.f32 %v661_v49, 6.0 }
  0xc8   : > { %v3561_v0 = vsel %vm2260_vm5, %v8880_v26, %v3560_v61  ;;  %v6737_v42 = vmin.f32 %v662_v18, 6.0  ;;  %v1938_v54 = vadd.f32 %v1720_v35, %v6547_v56  ;;  %v3565_v46 = vsel %vm2260_vm5, %v3560_v61, %v3564_v21 }
  0xc9   : > { %v6746_v34 = vadd.f32 %v3561_v0, %v3232_v6  ;;  %v1727_v49 = vrot.slane %v6640_v38, 1  ;;  %v6754_v18 = vmul.f32 %v6647_v24, %v6691_v7  ;;  %v970_v56 = vrot.slane %v6735_v58, 7  ;;  %v6091_v6 = vld [vmem:[%s8831_s5 + $0x10] sm:$0xff] }
  0xca   : > { %v971_v4 = vrot.slane %v6737_v42, 7  ;;  %v2488_v61 = vadd.f32 %v2270_v30, %v1938_v54  ;;  %v6762_v15 = vmul.f32 %v6645_v29, %v6691_v7  ;;  %v8881_v3 = vrot.slane %v6435_v25, 7  ;;  %v497_v38 = vpop.f32.mrf.mxu0  ;;  %6106 = vmatpush.bf16.msra.mxu2 %v6091_v6  ;;  %5523 = vmatpush.bf16.msrb.mxu0 %v6091_v6 }
  0xcb   : > { %v586_v1 = vpop.f32.mrf.mxu1  ;;  %v1728_v36 = vsel %vm1710_vm4, %v8882_v19, %v1727_v49  ;;  %v2277_v35 = vrot.slane %v6643_v12, 2  ;;  %v3567_v27 = vrot.slane %v6660_v48, 2  ;;  %v1529_v30 = vmul.f32 %v6334_v43, %v1456_v14  ;;  %1165 = vst [vmem:[#allocation2 + $0xc0] sm:$0xfe] %v970_v56 }
  0xcc   : > { %1153 = vst [vmem:[#allocation2 + $0x60] sm:$0xfe] %v8881_v3  ;;  %v8883_v25 = vrot.slane %v6456_v39, 7  ;;  %v498_v26 = vadd.f32 %v497_v38, %v6266_v22  ;;  %v587_v0 = vadd.f32 %v586_v1, %v6270_v23  ;;  %v2685_v21 = vadd.f32 %v6666_v63, %v2488_v61 }
  0xcd   : > { %v1941_v16 = vadd.f32 %v1728_v36, %v6551_v53  ;;  %v8884_v12 = vrot.slane %v6471_v52, 2  ;;  %v6788_v39 = vperm.slane %v6575_v60, 0  ;;  %v8885_v49 = vrot.slane %v6458_v41, 7  ;;  %v6090_v52 = vld [vmem:[%s8831_s5 + $0x8] sm:$0xff]  ;;  %1166 = vst.msk [vmem:[#allocation2 + $0xc8] sm:$0xfe] %vm1146_vm1, %v971_v4 }
  0xce   : > { %1154 = vst.msk [vmem:[#allocation2 + $0x68] sm:$0xfe] %vm1146_vm1, %v8883_v25  ;;  %v663_v3 = vmax.f32 %v498_v26, 0.0  ;;  %v664_v63 = vmax.f32 %v587_v0, 0.0  ;;  %v3234_v61 = vadd.f32 %v3016_v5, %v2685_v21  ;;  %v8886_v41 = vrot.slane %v6528_v37, 1  ;;  %6107 = vmatpush.bf16.msra.mxu2 %v6090_v52  ;;  %5524 = vmatpush.bf16.msrb.mxu0 %v6090_v52 }
  0xcf   : > { %v2278_v54 = vsel %vm2260_vm5, %v8884_v12, %v2277_v35  ;;  %1157 = vst [vmem:[#allocation2 + $0x80] sm:$0x1] %v8885_v49  ;;  %v6800_v40 = vmul.f32 %v6788_v39, %v6691_v7  ;;  %v1729_v45 = vrot.slane %v1529_v30, 1  ;;  %v2006_v5 = vld [vmem:[#allocation2 + $0x58] sm:$0x3]  ;;  %v6807_v38 = vmul.f32 %v6637_v47, %v6350_v51  ;;  %v6081_v30 = vld [vmem:[%s6212_s22 + $0x60] sm:$0xff] }
  0xd0   : > { %v2491_v53 = vadd.f32 %v2278_v54, %v1941_v16  ;;  %v1726_v60 = vsel %vm1710_vm4, %v8886_v41, %v1725_v57  ;;  %v6812_v1 = vmin.f32 %v663_v3, 6.0  ;;  %v6814_v19 = vmin.f32 %v664_v63, 6.0  ;;  %v6825_v47 = vld [vmem:[%s8831_s5] sm:$0xff] }
  0xd1   : > { %v3783_v36 = vadd.f32 %v3565_v46, %v3234_v61  ;;  %v6817_v35 = vperm.slane %v6714_v28, 0  ;;  %v8888_v37 = vrot.slane %v6534_v44, 7  ;;  %v1730_v46 = vsel %vm1710_vm4, %v1725_v57, %v1729_v45 }
  0xd2   : > { %v6828_v17 = vadd.f32 %v6619_v10, %v2491_v53  ;;  %v6833_v28 = vadd.f32 %v1726_v60, %v6623_v20  ;;  %v8889_v6 = vrot.slane %v6570_v50, 7  ;;  %v972_v44 = vrot.slane %v6812_v1, 7  ;;  %v500_v54 = vpop.f32.mrf.mxu0  ;;  %6108 = vmatpush.bf16.msra.mxu2 %v6825_v47  ;;  %5525 = vmatpush.bf16.msrb.mxu0 %v6825_v47  ;;  %v8894_v47 = vld [vmem:[#allocation11_spill] sm:$0xff] }
  0xd3   : > { %1159 = vst [vmem:[#allocation2 + $0x90] sm:$0xfe] %v8888_v37  ;;  %v974_v26 = vrot.slane %v6814_v19, 7  ;;  %v2553_v0 = vld [vmem:[#allocation2 + $0x60] sm:$0xff]  ;;  %v6841_v21 = vmul.f32 %v6350_v51, %v2006_v5  ;;  %v2275_v10 = vrot.slane %v6807_v38, 2  ;;  %v589_v50 = vpop.f32.mrf.mxu1  ;;  %v6849_v49 = vadd.f32 %v1730_v46, %v6673_v32  ;;  %v8891_v37 = vld [vmem:[#allocation13_spill] sm:$0xff] }
  0xd4   : > { %1160 = vst.msk [vmem:[#allocation2 + $0x98] sm:$0xfe] %vm1146_vm1, %v8889_v6  ;;  %v2622_v57 = vmul.f32 %v6566_v59, %v2553_v0  ;;  %v6852_v3 = vmul.f32 %v2553_v0, %v6485_v62  ;;  %v8890_v63 = vrot.slane %v6651_v55, 7  ;;  %v6859_v61 = vsel %vm951_vm3, %v970_v56, %v972_v44  ;;  %v2750_v60 = vld [vmem:[#allocation2 + $0x60] sm:$0xfe]  ;;  %v6878_v6 = vld [vmem:[#allocation2 + $0x78] sm:$0xff] }
  0xd5   : > { %v6845_v16 = vld [vmem:[#allocation2 + $0x68] sm:$0xff]  ;;  %v975_v53 = vsel %vm951_vm3, %v971_v4, %v974_v26  ;;  %v501_v45 = vadd.f32 %v500_v54, %v6266_v22  ;;  %v590_v5 = vadd.f32 %v589_v50, %v6270_v23  ;;  %v8892_v46 = vrot.slane %v8891_v37, 7  ;;  %5981 = vmatmul.msk.bf16.gmra.mxu0 %vm422_vm0, %v6081_v30  ;;  %1167 = vst [vmem:[#allocation2 + $0xd0] sm:$0xff] %v6859_v61 }
  0xd6   : > { %v4043_v20 = vld [vmem:[#allocation2 + $0x68] sm:$0xfe]  ;;  %1163 = vst [vmem:[#allocation2 + $0xb0] sm:$0x1] %v8890_v63  ;;  %v3915_v32 = vmul.f32 %v6588_v11, %v6845_v16  ;;  %v2686_v8 = vadd.f32 %v2622_v57, %v6577_v9  ;;  %v2752_v1 = vld [vmem:[#allocation2 + $0x80] sm:$0x1]  ;;  %5997 = vmatmul.msk.bf16.gmra.mxu1 %vm422_vm0, %v6081_v30  ;;  %v3917_v9 = vmul.f32 %v6588_v11, %v6878_v6 }
  0xd7   : > { %v4592_v12 = vld [vmem:[#allocation2 + $0x68] sm:$0xfc]  ;;  %v4112_v41 = vmul.f32 %v6590_v13, %v4043_v20  ;;  %1164 = vst.msk [vmem:[#allocation2 + $0xb8] sm:$0x1] %vm1151_vm7, %v8892_v46  ;;  %v4045_v50 = vld [vmem:[#allocation2 + $0x88] sm:$0x1]  ;;  %v4114_v57 = vmul.f32 %v6590_v13, %v6878_v6  ;;  %v4663_v63 = vmul.f32 %v6606_v33, %v6878_v6  ;;  %v2825_v42 = vmul.f32 %v8893_v31, %v2752_v1 }
  0xd8   : > { %v4661_v55 = vmul.f32 %v6606_v33, %v4592_v12  ;;  %v3979_v0 = vadd.f32 %v3915_v32, %v6746_v34  ;;  %v2821_v12 = vmul.f32 %v8893_v31, %v2750_v60  ;;  %v4594_v34 = vld [vmem:[#allocation2 + $0x88] sm:$0x3]  ;;  %v4116_v58 = vmul.f32 %v6590_v13, %v4045_v50  ;;  %1169 = vst [vmem:[#allocation2 + $0xe0] sm:$0x1] %v972_v44 }
  0xd9   : > { %v4306_v20 = vrot.slane %v4112_v41, 1  ;;  %v4665_v56 = vmul.f32 %v6606_v33, %v4594_v34  ;;  %v665_v32 = vmax.f32 %v501_v45, 0.0  ;;  %v3981_v41 = vadd.f32 %v3917_v9, %v3783_v36  ;;  %1168 = vst.msk [vmem:[#allocation2 + $0xd8] sm:$0xff] %vm778_vm2, %v975_v53  ;;  %v3299_v36 = vld [vmem:[#allocation2 + $0x60] sm:$0xfc] }
  0xda   : > { %v4855_v30 = vrot.slane %v4661_v55, 2  ;;  %v4307_v60 = vrot.slane %v4114_v57, 1  ;;  %v4856_v37 = vrot.slane %v4663_v63, 2  ;;  %v666_v46 = vmax.f32 %v590_v5, 0.0  ;;  %v502_v45 = vpop.f32.mrf.mxu0  ;;  %1170 = vst.msk [vmem:[#allocation2 + $0xe8] sm:$0x1] %vm1151_vm7, %v974_v26 }
  0xdb   : > { %v4311_v25 = vrot.slane %v4116_v58, 1  ;;  %v4860_v54 = vrot.slane %v4665_v56, 2  ;;  %v729_v52 = vmin.f32 %v665_v32, 6.0  ;;  %v591_v34 = vpop.f32.mrf.mxu1  ;;  %v3017_v14 = vrot.slane %v2821_v12, 1  ;;  %v3301_v12 = vld [vmem:[#allocation2 + $0x80] sm:$0x3] }
  0xdc   : > { %v4308_v4 = vsel %vm1710_vm4, %v4306_v20, %v4307_v60  ;;  %v4857_v50 = vsel %vm2260_vm5, %v4855_v30, %v4856_v37  ;;  %v730_v55 = vmin.f32 %v666_v46, 6.0  ;;  %v503_v57 = vadd.f32 %v502_v45, %v6266_v22  ;;  %v8896_v30 = vld [vmem:[#allocation12_spill] sm:$0xff] }
  0xdd   : > { %v4312_v44 = vsel %vm1710_vm4, %v4307_v60, %v4311_v25  ;;  %v4528_v5 = vadd.f32 %v4308_v4, %v3979_v0  ;;  %v4861_v53 = vsel %vm2260_vm5, %v4856_v37, %v4860_v54  ;;  %v976_v1 = vrot.slane %v729_v52, 7  ;;  %v6917_v60 = vld [vmem:[#allocation2 + $0x90] sm:$0xff] }
  0xde   : > { %v4530_v20 = vadd.f32 %v4312_v44, %v3981_v41  ;;  %v977_v9 = vrot.slane %v730_v55, 7  ;;  %v592_v63 = vadd.f32 %v591_v34, %v6270_v23  ;;  %v8895_v56 = vrot.slane %v8894_v47, 1  ;;  %v4046_v34 = vld [vmem:[#allocation2 + $0x90] sm:$0xfe] }
  0xdf   : > { %v5077_v58 = vadd.f32 %v4857_v50, %v4528_v5  ;;  %1171 = vst [vmem:[#allocation2 + $0xf0] sm:$0xfe] %v976_v1  ;;  %v3023_v26 = vrot.slane %v2825_v42, 1  ;;  %v3370_v25 = vmul.f32 %v8896_v30, %v3299_v36  ;;  %v667_v54 = vmax.f32 %v503_v57, 0.0 }
  0xe0   : > { %v3019_v19 = vsel %vm1710_vm4, %v3017_v14, %v8895_v56  ;;  %v5079_v0 = vadd.f32 %v4861_v53, %v4530_v20  ;;  %1172 = vst.msk [vmem:[#allocation2 + $0xf8] sm:$0xfe] %vm1146_vm1, %v977_v9  ;;  %v668_v32 = vmax.f32 %v592_v63, 0.0  ;;  %v8897_v46 = vmov %v8895_v56 }
  0xe1   : > { %v3235_v41 = vadd.f32 %v3019_v19, %v2686_v8  ;;  %v5147_v37 = vadd.f32 %v6741_v2, %v5077_v58  ;;  %v3024_v52 = vsel %vm1710_vm4, %v8897_v46, %v3023_v26  ;;  %v3374_v4 = vmul.f32 %v8896_v30, %v3301_v12  ;;  %v4048_v8 = vld [vmem:[#allocation2 + $0xb0] sm:$0x1]  ;;  %v4595_v58 = vld [vmem:[#allocation2 + $0x90] sm:$0xfc] }
  0xe2   : > { %v3566_v14 = vrot.slane %v3370_v25, 2  ;;  %v5149_v42 = vadd.f32 %v6741_v2, %v5079_v0  ;;  %v731_v50 = vmin.f32 %v667_v54, 6.0  ;;  %v732_v55 = vmin.f32 %v668_v32, 6.0  ;;  %v4597_v26 = vld [vmem:[#allocation2 + $0xb0] sm:$0x3]  ;;  %v6082_v25 = vld [vmem:[%s6212_s22 + $0x68] sm:$0xff] }
  0xe3   : > { %v3237_v45 = vadd.f32 %v3024_v52, %v6828_v17  ;;  %v5211_v36 = vmax.f32 %v5147_v37, 0.0  ;;  %v3572_v5 = vrot.slane %v3374_v4, 2  ;;  %v3918_v53 = vmul.f32 %v6645_v29, %v6917_v60 }
  0xe4   : > { %v3568_v44 = vsel %vm2260_vm5, %v3566_v14, %v3567_v27  ;;  %v5213_v20 = vmax.f32 %v5149_v42, 0.0  ;;  %v978_v57 = vrot.slane %v731_v50, 7  ;;  %v980_v63 = vrot.slane %v732_v55, 7 }
  0xe5   : > { %v3784_v12 = vadd.f32 %v3568_v44, %v3235_v41  ;;  %v5275_v47 = vmin.f32 %v5211_v36, 6.0  ;;  %v3573_v17 = vsel %vm2260_vm5, %v3567_v27, %v3572_v5  ;;  %v4117_v56 = vmul.f32 %v6647_v24, %v4046_v34  ;;  %5982 = vmatmul.msk.bf16.gmra.mxu0 %vm422_vm0, %v6082_v25  ;;  %v2751_v44 = vld [vmem:[#allocation2 + $0x68] sm:$0xfe] }
  0xe6   : > { %v4121_v19 = vmul.f32 %v6647_v24, %v4048_v8  ;;  %v5277_v0 = vmin.f32 %v5213_v20, 6.0  ;;  %v979_v54 = vsel %vm951_vm3, %v976_v1, %v978_v57  ;;  %1175 = vst [vmem:[#allocation2 + $0x110] sm:$0x1] %v978_v57  ;;  %v981_v32 = vsel %vm951_vm3, %v977_v9, %v980_v63  ;;  %5998 = vmatmul.msk.bf16.gmra.mxu1 %vm422_vm0, %v6082_v25  ;;  %v8898_v9 = vld [vmem:[#allocation10_spill] sm:$0xff] }
  0xe7   : > { %v3786_v37 = vadd.f32 %v3573_v17, %v3237_v45  ;;  %1173 = vst [vmem:[#allocation2 + $0x100] sm:$0xff] %v979_v54  ;;  %v3982_v41 = vadd.f32 %v3918_v53, %v3784_v12  ;;  %v4313_v46 = vrot.slane %v4117_v56, 1  ;;  %v4666_v48 = vmul.f32 %v6788_v39, %v4595_v58  ;;  %v505_v54 = vpop.f32.mrf.mxu0 }
  0xe8   : > { %v4319_v52 = vrot.slane %v4121_v19, 1  ;;  %v5339_v27 = vpack.c.bf16 %v5277_v0, %v5275_v47  ;;  %1174 = vst.msk [vmem:[#allocation2 + $0x108] sm:$0xff] %vm778_vm2, %v981_v32  ;;  %v4670_v1 = vmul.f32 %v6788_v39, %v4597_v26  ;;  %v8899_v14 = vrot.slane %v8898_v9, 2  ;;  %v3300_v47 = vld [vmem:[#allocation2 + $0x68] sm:$0xfc] }
  0xe9   : > { %v3984_v4 = vadd.f32 %v6762_v15, %v3786_v37  ;;  %1176 = vst.msk [vmem:[#allocation2 + $0x118] sm:$0x1] %vm1151_vm7, %v980_v63  ;;  %v8900_v50 = vrot.slane %v6754_v18, 1  ;;  %v4862_v8 = vrot.slane %v4666_v48, 2  ;;  %v8902_v15 = vrot.slane %v6841_v21, 2  ;;  %v8904_v21 = vld [vmem:[#allocation7_spill] sm:$0xff] }
  0xea   : > { %v2276_v42 = vsel %vm2260_vm5, %v8899_v14, %v2275_v10  ;;  %6049 = vmatmul.msk.bf16.vlgmr.msra.gmra.mxu3 %vm778_vm2, %v5339_v27  ;;  %v4868_v20 = vrot.slane %v4670_v1, 2  ;;  %v2753_v63 = vld [vmem:[#allocation2 + $0x88] sm:$0x1]  ;;  %v8903_v18 = vrot.slane %v6800_v40, 2  ;;  %v2623_v38 = vmul.f32 %v6845_v16, %v8904_v21 }
  0xeb   : > { %v4315_v55 = vsel %vm1710_vm4, %v4313_v46, %v8900_v50  ;;  %v8901_v45 = vmov %v8900_v50  ;;  %v2280_v36 = vsel %vm2260_vm5, %v2275_v10, %v8902_v15  ;;  %v2490_v57 = vadd.f32 %v2276_v42, %v6833_v28  ;;  %v8906_v28 = vld [vmem:[#allocation6_spill] sm:$0xff]  ;;  %v3302_v0 = vld [vmem:[#allocation2 + $0x88] sm:$0x3] }
  0xec   : > { %v4320_v34 = vsel %vm1710_vm4, %v8901_v45, %v4319_v52  ;;  %v4531_v5 = vadd.f32 %v4315_v55, %v3982_v41  ;;  %v4864_v12 = vsel %vm2260_vm5, %v4862_v8, %v8903_v18  ;;  %v2492_v58 = vadd.f32 %v2280_v36, %v6849_v49  ;;  %v6979_v46 = vld [vmem:[#allocation2 + $0x98] sm:$0xff]  ;;  %v594_v52 = vpop.f32.mrf.mxu1  ;;  %v6987_v55 = vld [vmem:[#allocation2 + $0xa8] sm:$0xff] }
  0xed   : > { %v4533_v53 = vadd.f32 %v4320_v34, %v3984_v4  ;;  %v2625_v10 = vmul.f32 %v6878_v6, %v8904_v21  ;;  %v8905_v17 = vmov %v8903_v18  ;;  %v2822_v26 = vmul.f32 %v8906_v28, %v2751_v44  ;;  %v8907_v4 = vld [vmem:[#allocation8_spill] sm:$0xff]  ;;  %v4047_v36 = vld [vmem:[#allocation2 + $0x98] sm:$0xfe] }
  0xee   : > { %v4869_v56 = vsel %vm2260_vm5, %v8905_v17, %v4868_v20  ;;  %v5080_v19 = vadd.f32 %v4864_v12, %v4531_v5  ;;  %v2824_v25 = vmul.f32 %v6878_v6, %v8906_v28  ;;  %v2687_v32 = vadd.f32 %v2623_v38, %v2490_v57  ;;  %v4049_v57 = vld [vmem:[#allocation2 + $0xb8] sm:$0x1] }
  0xef   : > { %v5082_v49 = vadd.f32 %v4869_v56, %v4533_v53  ;;  %v2689_v37 = vadd.f32 %v2625_v10, %v2492_v58  ;;  %v2826_v41 = vmul.f32 %v8906_v28, %v2753_v63  ;;  %v3020_v48 = vrot.slane %v2822_v26, 1  ;;  %v4596_v63 = vld [vmem:[#allocation2 + $0x98] sm:$0xfc] }
  0xf0   : > { %v5150_v40 = vadd.f32 %v6817_v35, %v5080_v19  ;;  %v3021_v27 = vrot.slane %v2824_v25, 1  ;;  %v3371_v1 = vmul.f32 %v8907_v4, %v3300_v47  ;;  %v3373_v42 = vmul.f32 %v6878_v6, %v8907_v4  ;;  %v4598_v19 = vld [vmem:[#allocation2 + $0xb8] sm:$0x3] }
  0xf1   : > { %v5152_v9 = vadd.f32 %v6817_v35, %v5082_v49  ;;  %v3025_v14 = vrot.slane %v2826_v41, 1  ;;  %v3375_v50 = vmul.f32 %v8907_v4, %v3302_v0  ;;  %v3919_v15 = vmul.f32 %v6588_v11, %v6979_v46 }
  0xf2   : > { %v5214_v45 = vmax.f32 %v5150_v40, 0.0  ;;  %v3022_v34 = vsel %vm1710_vm4, %v3020_v48, %v3021_v27  ;;  %v3569_v8 = vrot.slane %v3371_v1, 2  ;;  %v3570_v20 = vrot.slane %v3373_v42, 2 }
  0xf3   : > { %v5216_v44 = vmax.f32 %v5152_v9, 0.0  ;;  %v3026_v5 = vsel %vm1710_vm4, %v3021_v27, %v3025_v14  ;;  %v3236_v53 = vadd.f32 %v3022_v34, %v2687_v32  ;;  %v3574_v58 = vrot.slane %v3375_v50, 2  ;;  %v507_v14 = vpop.f32.mrf.mxu0 }
  0xf4   : > { %v5278_v18 = vmin.f32 %v5214_v45, 6.0  ;;  %v3238_v12 = vadd.f32 %v3026_v5, %v2689_v37  ;;  %v3921_v38 = vmul.f32 %v6588_v11, %v6987_v55  ;;  %v3571_v47 = vsel %vm2260_vm5, %v3569_v8, %v3570_v20  ;;  %v596_v8 = vpop.f32.mrf.mxu1 }
  0xf5   : > { %v5280_v10 = vmin.f32 %v5216_v44, 6.0  ;;  %v4118_v17 = vmul.f32 %v6590_v13, %v4047_v36  ;;  %v4120_v56 = vmul.f32 %v6590_v13, %v6987_v55  ;;  %v3575_v26 = vsel %vm2260_vm5, %v3570_v20, %v3574_v58  ;;  %v1262_v36 = vld [vmem:[#allocation2 + $0x70] sm:$0xff] }
  0xf6   : > { %v3785_v25 = vadd.f32 %v3571_v47, %v3236_v53  ;;  %v4122_v0 = vmul.f32 %v6590_v13, %v4049_v57  ;;  %v4667_v49 = vmul.f32 %v6606_v33, %v4596_v63  ;;  %v3787_v37 = vadd.f32 %v3575_v26, %v3238_v12  ;;  %v1457_v12 = vld [vmem:[#allocation2 + $0x60] sm:$0xfe]  ;;  %v1459_v26 = vld [vmem:[#allocation2 + $0x80] sm:$0x1] }
  0xf7   : > { %v5340_v32 = vpack.c.bf16 %v5280_v10, %v5278_v18  ;;  %v4316_v41 = vrot.slane %v4118_v17, 1  ;;  %v4317_v40 = vrot.slane %v4120_v56, 1  ;;  %v4669_v1 = vmul.f32 %v6606_v33, %v6987_v55 }
  0xf8   : > { %v3983_v48 = vadd.f32 %v3919_v15, %v3785_v25  ;;  %v4321_v27 = vrot.slane %v4122_v0, 1  ;;  %v4671_v9 = vmul.f32 %v6606_v33, %v4598_v19  ;;  %v3985_v42 = vadd.f32 %v3921_v38, %v3787_v37 }
  0xf9   : > { %5531 = vmatmul.bf16.vlgmr.msra.gmra.mxu2 %v5340_v32  ;;  %v4318_v50 = vsel %vm1710_vm4, %v4316_v41, %v4317_v40  ;;  %v4865_v45 = vrot.slane %v4667_v49, 2  ;;  %v506_v34 = vadd.f32 %v505_v54, %v6266_v22  ;;  %v4866_v15 = vrot.slane %v4669_v1, 2  ;;  %v8908_v49 = vld [vmem:[#allocation4_spill] sm:$0xff] }
  0xfa   : > { %v4322_v44 = vsel %vm1710_vm4, %v4317_v40, %v4321_v27  ;;  %v4532_v5 = vadd.f32 %v4318_v50, %v3983_v48  ;;  %v4870_v53 = vrot.slane %v4671_v9, 2  ;;  %v595_v63 = vadd.f32 %v594_v52, %v6270_v23  ;;  %v2007_v27 = vld [vmem:[#allocation2 + $0x60] sm:$0xfc] }
  0xfb   : > { %v4534_v20 = vadd.f32 %v4322_v44, %v3985_v42  ;;  %v669_v57 = vmax.f32 %v506_v34, 0.0  ;;  %v508_v18 = vadd.f32 %v507_v14, %v6266_v22  ;;  %v4867_v58 = vsel %vm2260_vm5, %v4865_v45, %v4866_v15 }
  0xfc   : > { %v4871_v38 = vsel %vm2260_vm5, %v4866_v15, %v4870_v53  ;;  %v597_v54 = vadd.f32 %v596_v8, %v6270_v23  ;;  %v1331_v10 = vmul.f32 %v6485_v62, %v1262_v36  ;;  %v5081_v47 = vadd.f32 %v4867_v58, %v4532_v5  ;;  %v2009_v53 = vld [vmem:[#allocation2 + $0x80] sm:$0x3] }
  0xfd   : > { %v5083_v17 = vadd.f32 %v4871_v38, %v4534_v20  ;;  %v733_v56 = vmin.f32 %v669_v57, 6.0  ;;  %v670_v19 = vmax.f32 %v595_v63, 0.0  ;;  %v671_v25 = vmax.f32 %v508_v18, 0.0  ;;  %v8909_v20 = vld [vmem:[#allocation5_spill] sm:$0xff] }
  0xfe   : > { %v672_v0 = vmax.f32 %v597_v54, 0.0  ;;  %v1530_v52 = vmul.f32 %v8908_v49, %v1457_v12  ;;  %v1532_v32 = vmul.f32 %v8908_v49, %v1262_v36  ;;  %v5151_v37 = vadd.f32 %v6741_v2, %v5081_v47  ;;  %v2754_v38 = vld [vmem:[#allocation2 + $0x90] sm:$0xfe] }
  0xff   : > { %v5153_v41 = vadd.f32 %v6741_v2, %v5083_v17  ;;  %v982_v40 = vrot.slane %v733_v56, 7  ;;  %v734_v48 = vmin.f32 %v670_v19, 6.0  ;;  %v735_v1 = vmin.f32 %v671_v25, 6.0  ;;  %v2756_v19 = vld [vmem:[#allocation2 + $0xb0] sm:$0x1] }
 0x100   : > { %v736_v9 = vmin.f32 %v672_v0, 6.0  ;;  %v1534_v14 = vmul.f32 %v8908_v49, %v1459_v26  ;;  %v1731_v42 = vrot.slane %v1530_v52, 1  ;;  %v5215_v50 = vmax.f32 %v5151_v37, 0.0  ;;  %v3303_v26 = vld [vmem:[#allocation2 + $0x90] sm:$0xfc] }
 0x101   : > { %v5217_v45 = vmax.f32 %v5153_v41, 0.0  ;;  %1177 = vst [vmem:[#allocation2 + $0x120] sm:$0xfe] %v982_v40  ;;  %v983_v34 = vrot.slane %v734_v48, 7  ;;  %v1732_v8 = vrot.slane %v1532_v32, 1  ;;  %v984_v44 = vrot.slane %v735_v1, 7 }
 0x102   : > { %v986_v5 = vrot.slane %v736_v9, 7  ;;  %v1737_v15 = vrot.slane %v1534_v14, 1  ;;  %v2080_v57 = vmul.f32 %v8909_v20, %v2007_v27  ;;  %v5279_v63 = vmin.f32 %v5215_v50, 6.0  ;;  %v3305_v37 = vld [vmem:[#allocation2 + $0xb0] sm:$0x3] }
 0x103   : > { %v5281_v18 = vmin.f32 %v5217_v45, 6.0  ;;  %1178 = vst.msk [vmem:[#allocation2 + $0x128] sm:$0xfe] %vm1146_vm1, %v983_v34  ;;  %v1733_v12 = vsel %vm1710_vm4, %v1731_v42, %v1732_v8  ;;  %v2082_v58 = vmul.f32 %v8909_v20, %v1262_v36  ;;  %v985_v54 = vsel %vm951_vm3, %v982_v40, %v984_v44  ;;  %v7044_v45 = vld [vmem:[#allocation2 + $0xc0] sm:$0xff] }
 0x104   : > { %1181 = vst [vmem:[#allocation2 + $0x140] sm:$0x1] %v984_v44  ;;  %v987_v47 = vsel %vm951_vm3, %v983_v34, %v986_v5  ;;  %v1738_v17 = vsel %vm1710_vm4, %v1732_v8, %v1737_v15  ;;  %v1943_v56 = vadd.f32 %v1733_v12, %v6852_v3  ;;  %v2084_v52 = vmul.f32 %v8909_v20, %v2009_v53  ;;  %v4050_v15 = vld [vmem:[#allocation2 + $0xc0] sm:$0xfe]  ;;  %v4052_v12 = vld [vmem:[#allocation2 + $0xe0] sm:$0x1] }
 0x105   : > { %v5341_v25 = vpack.c.bf16 %v5281_v18, %v5279_v63  ;;  %1179 = vst [vmem:[#allocation2 + $0x130] sm:$0xff] %v985_v54  ;;  %v1945_v0 = vadd.f32 %v1738_v17, %v1331_v10  ;;  %v2281_v32 = vrot.slane %v2080_v57, 2  ;;  %v2282_v36 = vrot.slane %v2082_v58, 2  ;;  %v4601_v17 = vld [vmem:[#allocation2 + $0xe0] sm:$0x3] }
 0x106   : > { %1180 = vst.msk [vmem:[#allocation2 + $0x138] sm:$0xff] %vm778_vm2, %v987_v47  ;;  %v2626_v41 = vmul.f32 %v6917_v60, %v6566_v59  ;;  %v2628_v40 = vmul.f32 %v6566_v59, %v6691_v7  ;;  %v2827_v3 = vmul.f32 %v8893_v31, %v2754_v38  ;;  %v2287_v10 = vrot.slane %v2084_v52, 2  ;;  %v4599_v47 = vld [vmem:[#allocation2 + $0xc0] sm:$0xfc] }
 0x107   : > { %6050 = vmatmul.msk.bf16.gmra.mxu3 %vm778_vm2, %v5341_v25  ;;  %1182 = vst.msk [vmem:[#allocation2 + $0x148] sm:$0x1] %vm1151_vm7, %v986_v5  ;;  %v2829_v48 = vmul.f32 %v8893_v31, %v6691_v7  ;;  %v2831_v27 = vmul.f32 %v8893_v31, %v2756_v19  ;;  %v3376_v1 = vmul.f32 %v8896_v30, %v3303_v26 }
 0x108   : > { %v2283_v9 = vsel %vm2260_vm5, %v2281_v32, %v2282_v36  ;;  %v3027_v14 = vrot.slane %v2827_v3, 1  ;;  %v3378_v42 = vmul.f32 %v8896_v30, %v6691_v7  ;;  %v3380_v50 = vmul.f32 %v8896_v30, %v3305_v37 }
 0x109   : > { %v2288_v34 = vsel %vm2260_vm5, %v2282_v36, %v2287_v10  ;;  %v2493_v8 = vadd.f32 %v2283_v9, %v1943_v56  ;;  %v3028_v44 = vrot.slane %v2829_v48, 1  ;;  %v3033_v5 = vrot.slane %v2831_v27, 1  ;;  %v1458_v9 = vld [vmem:[#allocation2 + $0x68] sm:$0xfe] }
 0x10a   : > { %v2495_v53 = vadd.f32 %v2288_v34, %v1945_v0  ;;  %v3576_v57 = vrot.slane %v3376_v1, 2  ;;  %v3577_v63 = vrot.slane %v3378_v42, 2  ;;  %v3582_v18 = vrot.slane %v3380_v50, 2 }
 0x10b   : > { %v2690_v58 = vadd.f32 %v2626_v41, %v2493_v8  ;;  %v3029_v38 = vsel %vm1710_vm4, %v3027_v14, %v3028_v44  ;;  %v3034_v7 = vsel %vm1710_vm4, %v3028_v44, %v3033_v5  ;;  %v3922_v54 = vmul.f32 %v6645_v29, %v7044_v45  ;;  %v1460_v8 = vld [vmem:[#allocation2 + $0x88] sm:$0x1] }
 0x10c   : > { %v2692_v19 = vadd.f32 %v2628_v40, %v2495_v53  ;;  %v3578_v56 = vsel %vm2260_vm5, %v3576_v57, %v3577_v63  ;;  %v3583_v26 = vsel %vm2260_vm5, %v3577_v63, %v3582_v18  ;;  %v3924_v25 = vmul.f32 %v6645_v29, %v6859_v61  ;;  %v8910_v53 = vld [vmem:[#allocation3_spill] sm:$0xff]  ;;  %v2008_v57 = vld [vmem:[#allocation2 + $0x68] sm:$0xfc]  ;;  %v2010_v63 = vld [vmem:[#allocation2 + $0x88] sm:$0x3] }
 0x10d   : > { %v3239_v0 = vadd.f32 %v3029_v38, %v2690_v58  ;;  %v4123_v52 = vmul.f32 %v6647_v24, %v4050_v15  ;;  %v4125_v32 = vmul.f32 %v6647_v24, %v6859_v61  ;;  %v4127_v37 = vmul.f32 %v6647_v24, %v4052_v12 }
 0x10e   : > { %v3241_v36 = vadd.f32 %v3034_v7, %v2692_v19  ;;  %v4672_v41 = vmul.f32 %v6788_v39, %v4599_v47  ;;  %v4674_v40 = vmul.f32 %v6788_v39, %v6859_v61  ;;  %v4676_v3 = vmul.f32 %v6788_v39, %v4601_v17  ;;  %v6083_v7 = vld [vmem:[%s6212_s22 + $0x70] sm:$0xff] }
 0x10f   : > { %v3788_v10 = vadd.f32 %v3578_v56, %v3239_v0  ;;  %v4323_v48 = vrot.slane %v4123_v52, 1  ;;  %v4324_v27 = vrot.slane %v4125_v32, 1  ;;  %v4329_v1 = vrot.slane %v4127_v37, 1  ;;  %5983 = vmatmul.msk.bf16.gmra.mxu0 %vm422_vm0, %v6083_v7  ;;  %5999 = vmatmul.msk.bf16.gmra.mxu1 %vm422_vm0, %v6083_v7  ;;  %v599_v7 = vpop.f32.mrf.mxu1 }
 0x110   : > { %v3790_v14 = vadd.f32 %v3583_v26, %v3241_v36  ;;  %v4872_v42 = vrot.slane %v4672_v41, 2  ;;  %v4873_v50 = vrot.slane %v4674_v40, 2  ;;  %v4878_v34 = vrot.slane %v4676_v3, 2 }
 0x111   : > { %v3986_v44 = vadd.f32 %v3922_v54, %v3788_v10  ;;  %v4325_v5 = vsel %vm1710_vm4, %v4323_v48, %v4324_v27  ;;  %v4330_v15 = vsel %vm1710_vm4, %v4324_v27, %v4329_v1  ;;  %v1330_v61 = vmul.f32 %v6845_v16, %v8910_v53  ;;  %v2755_v10 = vld [vmem:[#allocation2 + $0x98] sm:$0xfe] }
 0x112   : > { %v3988_v18 = vadd.f32 %v3924_v25, %v3790_v14  ;;  %v4874_v12 = vsel %vm2260_vm5, %v4872_v42, %v4873_v50  ;;  %v4879_v58 = vsel %vm2260_vm5, %v4873_v50, %v4878_v34  ;;  %v1332_v38 = vmul.f32 %v6878_v6, %v8910_v53  ;;  %v2757_v34 = vld [vmem:[#allocation2 + $0xb8] sm:$0x1] }
 0x113   : > { %v4535_v47 = vadd.f32 %v4325_v5, %v3986_v44  ;;  %v1531_v54 = vmul.f32 %v6334_v43, %v1458_v9  ;;  %v1533_v17 = vmul.f32 %v6878_v6, %v6334_v43  ;;  %v1535_v19 = vmul.f32 %v6334_v43, %v1460_v8  ;;  %v3304_v8 = vld [vmem:[#allocation2 + $0x98] sm:$0xfc] }
 0x114   : > { %v4537_v16 = vadd.f32 %v4330_v15, %v3988_v18  ;;  %v2081_v56 = vmul.f32 %v6350_v51, %v2008_v57  ;;  %v2083_v26 = vmul.f32 %v6878_v6, %v6350_v51  ;;  %v2085_v25 = vmul.f32 %v6350_v51, %v2010_v63  ;;  %v510_v63 = vpop.f32.mrf.mxu0 }
 0x115   : > { %v5084_v0 = vadd.f32 %v4874_v12, %v4535_v47  ;;  %v1734_v52 = vrot.slane %v1531_v54, 1  ;;  %v1735_v32 = vrot.slane %v1533_v17, 1  ;;  %v1739_v37 = vrot.slane %v1535_v19, 1 }
 0x116   : > { %v5086_v36 = vadd.f32 %v4879_v58, %v4537_v16  ;;  %v2284_v41 = vrot.slane %v2081_v56, 2  ;;  %v2285_v40 = vrot.slane %v2083_v26, 2  ;;  %v2289_v3 = vrot.slane %v2085_v25, 2  ;;  %v7097_v16 = vld [vmem:[#allocation2 + $0xc8] sm:$0xff]  ;;  %v7099_v56 = vld [vmem:[#allocation2 + $0xd8] sm:$0xff] }
 0x117   : > { %v5154_v48 = vadd.f32 %v6817_v35, %v5084_v0  ;;  %v1736_v27 = vsel %vm1710_vm4, %v1734_v52, %v1735_v32  ;;  %v1740_v6 = vsel %vm1710_vm4, %v1735_v32, %v1739_v37  ;;  %v2627_v1 = vmul.f32 %v6979_v46, %v8904_v21 }
 0x118   : > { %v5156_v9 = vadd.f32 %v6817_v35, %v5086_v36  ;;  %v1944_v14 = vadd.f32 %v1736_v27, %v1330_v61  ;;  %v1946_v42 = vadd.f32 %v1740_v6, %v1332_v38  ;;  %v2286_v50 = vsel %vm2260_vm5, %v2284_v41, %v2285_v40  ;;  %v3306_v38 = vld [vmem:[#allocation2 + $0xb8] sm:$0x3] }
 0x119   : > { %v5218_v44 = vmax.f32 %v5154_v48, 0.0  ;;  %v2290_v5 = vsel %vm2260_vm5, %v2285_v40, %v2289_v3  ;;  %v2629_v15 = vmul.f32 %v6987_v55, %v8904_v21  ;;  %v2828_v57 = vmul.f32 %v8906_v28, %v2755_v10  ;;  %v4051_v40 = vld [vmem:[#allocation2 + $0xc8] sm:$0xfe]  ;;  %v4053_v3 = vld [vmem:[#allocation2 + $0xe8] sm:$0x1] }
 0x11a   : > { %v5220_v18 = vmax.f32 %v5156_v9, 0.0  ;;  %v2494_v12 = vadd.f32 %v2286_v50, %v1944_v14  ;;  %v2496_v58 = vadd.f32 %v2290_v5, %v1946_v42  ;;  %v2830_v61 = vmul.f32 %v6987_v55, %v8906_v28 }
 0x11b   : > { %v5282_v47 = vmin.f32 %v5218_v44, 6.0  ;;  %v2832_v54 = vmul.f32 %v8906_v28, %v2757_v34  ;;  %v3030_v17 = vrot.slane %v2828_v57, 1  ;;  %v3377_v19 = vmul.f32 %v8907_v4, %v3304_v8 }
 0x11c   : > { %v5284_v26 = vmin.f32 %v5220_v18, 6.0  ;;  %v2691_v25 = vadd.f32 %v2627_v1, %v2494_v12  ;;  %v2693_v0 = vadd.f32 %v2629_v15, %v2496_v58  ;;  %v3031_v52 = vrot.slane %v2830_v61, 1  ;;  %v4600_v1 = vld [vmem:[#allocation2 + $0xc8] sm:$0xfc]  ;;  %v4602_v15 = vld [vmem:[#allocation2 + $0xe8] sm:$0x3] }
 0x11d   : > { %v3035_v32 = vrot.slane %v2832_v54, 1  ;;  %v3379_v37 = vmul.f32 %v6987_v55, %v8907_v4  ;;  %v3381_v36 = vmul.f32 %v8907_v4, %v3306_v38  ;;  %v3579_v41 = vrot.slane %v3377_v19, 2 }
 0x11e   : > { %v5342_v10 = vpack.c.bf16 %v5284_v26, %v5282_v47  ;;  %v3032_v48 = vsel %vm1710_vm4, %v3030_v17, %v3031_v52  ;;  %v3923_v27 = vmul.f32 %v6588_v11, %v7097_v16  ;;  %v3925_v6 = vmul.f32 %v6588_v11, %v7099_v56 }
 0x11f   : > { %v3036_v9 = vsel %vm1710_vm4, %v3031_v52, %v3035_v32  ;;  %v3240_v14 = vadd.f32 %v3032_v48, %v2691_v25  ;;  %v3580_v42 = vrot.slane %v3379_v37, 2  ;;  %v3584_v50 = vrot.slane %v3381_v36, 2 }
 0x120   : > { %5536 = vmatmul.bf16.gmra.mxu2 %v5342_v10  ;;  %v3242_v34 = vadd.f32 %v3036_v9, %v2693_v0  ;;  %v4124_v8 = vmul.f32 %v6590_v13, %v4051_v40  ;;  %v4126_v44 = vmul.f32 %v6590_v13, %v7099_v56  ;;  %v4128_v5 = vmul.f32 %v6590_v13, %v4053_v3  ;;  %v512_v0 = vpop.f32.mrf.mxu0 }
 0x121   : > { %v3581_v57 = vsel %vm2260_vm5, %v3579_v41, %v3580_v42  ;;  %v3585_v18 = vsel %vm2260_vm5, %v3580_v42, %v3584_v50  ;;  %v4673_v12 = vmul.f32 %v6606_v33, %v4600_v1  ;;  %v4675_v58 = vmul.f32 %v6606_v33, %v7099_v56  ;;  %v601_v41 = vpop.f32.mrf.mxu1  ;;  %v1266_v50 = vld [vmem:[#allocation2 + $0xa0] sm:$0xff] }
 0x122   : > { %v3789_v61 = vadd.f32 %v3581_v57, %v3240_v14  ;;  %v3791_v38 = vadd.f32 %v3585_v18, %v3242_v34  ;;  %v4326_v47 = vrot.slane %v4124_v8, 1  ;;  %v4327_v54 = vrot.slane %v4126_v44, 1 }
 0x123   : > { %v4331_v17 = vrot.slane %v4128_v5, 1  ;;  %v4677_v19 = vmul.f32 %v6606_v33, %v4602_v15  ;;  %v4875_v26 = vrot.slane %v4673_v12, 2  ;;  %v4876_v25 = vrot.slane %v4675_v58, 2 }
 0x124   : > { %v3987_v52 = vadd.f32 %v3923_v27, %v3789_v61  ;;  %v3989_v32 = vadd.f32 %v3925_v6, %v3791_v38  ;;  %v4328_v37 = vsel %vm1710_vm4, %v4326_v47, %v4327_v54  ;;  %v511_v36 = vadd.f32 %v510_v63, %v6266_v22  ;;  %v1461_v27 = vld [vmem:[#allocation2 + $0x90] sm:$0xfe] }
 0x125   : > { %v4332_v40 = vsel %vm1710_vm4, %v4327_v54, %v4331_v17  ;;  %v4877_v3 = vsel %vm2260_vm5, %v4875_v26, %v4876_v25  ;;  %v4880_v10 = vrot.slane %v4677_v19, 2  ;;  %v600_v48 = vadd.f32 %v599_v7, %v6270_v23  ;;  %v1463_v7 = vld [vmem:[#allocation2 + $0xb0] sm:$0x1]  ;;  %v2011_v19 = vld [vmem:[#allocation2 + $0x90] sm:$0xfc] }
 0x126   : > { %v4536_v1 = vadd.f32 %v4328_v37, %v3987_v52  ;;  %v4538_v9 = vadd.f32 %v4332_v40, %v3989_v32  ;;  %v673_v14 = vmax.f32 %v511_v36, 0.0  ;;  %v513_v42 = vadd.f32 %v512_v0, %v6266_v22  ;;  %v2013_v52 = vld [vmem:[#allocation2 + $0xb0] sm:$0x3] }
 0x127   : > { %v4881_v6 = vsel %vm2260_vm5, %v4876_v25, %v4880_v10  ;;  %v674_v34 = vmax.f32 %v600_v48, 0.0  ;;  %v602_v63 = vadd.f32 %v601_v41, %v6270_v23  ;;  %v1333_v8 = vmul.f32 %v6917_v60, %v6485_v62 }
 0x128   : > { %v5085_v44 = vadd.f32 %v4877_v3, %v4536_v1  ;;  %v5087_v5 = vadd.f32 %v4881_v6, %v4538_v9  ;;  %v737_v15 = vmin.f32 %v673_v14, 6.0  ;;  %v675_v57 = vmax.f32 %v513_v42, 0.0  ;;  %v7138_v1 = vld [vmem:[#allocation2 + $0xd0] sm:$0xff]  ;;  %v2758_v6 = vld [vmem:[#allocation2 + $0xc0] sm:$0xfe] }
 0x129   : > { %v738_v18 = vmin.f32 %v674_v34, 6.0  ;;  %v676_v12 = vmax.f32 %v602_v63, 0.0  ;;  %v1335_v58 = vmul.f32 %v6485_v62, %v1266_v50  ;;  %v1536_v61 = vmul.f32 %v8908_v49, %v1461_v27 }
 0x12a   : > { %v5155_v38 = vadd.f32 %v6741_v2, %v5085_v44  ;;  %v5157_v47 = vadd.f32 %v6741_v2, %v5087_v5  ;;  %v988_v54 = vrot.slane %v737_v15, 7  ;;  %v739_v17 = vmin.f32 %v675_v57, 6.0  ;;  %v2760_v15 = vld [vmem:[#allocation2 + $0xe0] sm:$0x1]  ;;  %v3307_v57 = vld [vmem:[#allocation2 + $0xc0] sm:$0xfc] }
 0x12b   : > { %v989_v26 = vrot.slane %v738_v18, 7  ;;  %v740_v60 = vmin.f32 %v676_v12, 6.0  ;;  %v1538_v25 = vmul.f32 %v8908_v49, %v1266_v50  ;;  %v1540_v0 = vmul.f32 %v8908_v49, %v1463_v7 }
 0x12c   : > { %v5219_v32 = vmax.f32 %v5155_v38, 0.0  ;;  %v5221_v37 = vmax.f32 %v5157_v47, 0.0  ;;  %1183 = vst [vmem:[#allocation2 + $0x150] sm:$0xfe] %v988_v54  ;;  %v990_v36 = vrot.slane %v739_v17, 7  ;;  %v1741_v41 = vrot.slane %v1536_v61, 1 }
 0x12d   : > { %1184 = vst.msk [vmem:[#allocation2 + $0x158] sm:$0xfe] %vm1146_vm1, %v989_v26  ;;  %v992_v40 = vrot.slane %v740_v60, 7  ;;  %v1742_v3 = vrot.slane %v1538_v25, 1  ;;  %v1747_v10 = vrot.slane %v1540_v0, 1  ;;  %v2086_v48 = vmul.f32 %v8909_v20, %v2011_v19 }
 0x12e   : > { %v5283_v9 = vmin.f32 %v5219_v32, 6.0  ;;  %v5285_v14 = vmin.f32 %v5221_v37, 6.0  ;;  %v991_v42 = vsel %vm951_vm3, %v988_v54, %v990_v36  ;;  %1187 = vst [vmem:[#allocation2 + $0x170] sm:$0x1] %v990_v36  ;;  %v2088_v27 = vmul.f32 %v8909_v20, %v1266_v50  ;;  %v3309_v38 = vld [vmem:[#allocation2 + $0xe0] sm:$0x3] }
 0x12f   : > { %1185 = vst [vmem:[#allocation2 + $0x160] sm:$0xff] %v991_v42  ;;  %v993_v34 = vsel %vm951_vm3, %v989_v26, %v992_v40  ;;  %v1743_v63 = vsel %vm1710_vm4, %v1741_v41, %v1742_v3  ;;  %v1748_v44 = vsel %vm1710_vm4, %v1742_v3, %v1747_v10  ;;  %v2090_v5 = vmul.f32 %v8909_v20, %v2013_v52  ;;  %v7163_v32 = vld [vmem:[#allocation2 + $0xf0] sm:$0xff]  ;;  %v7165_v3 = vld [vmem:[#allocation2 + $0x100] sm:$0xff] }
 0x130   : > { %v5343_v7 = vpack.c.bf16 %v5285_v14, %v5283_v9  ;;  %1186 = vst.msk [vmem:[#allocation2 + $0x168] sm:$0xff] %vm778_vm2, %v993_v34  ;;  %v1947_v18 = vadd.f32 %v1743_v63, %v1333_v8  ;;  %v1949_v12 = vadd.f32 %v1748_v44, %v1335_v58  ;;  %v2291_v61 = vrot.slane %v2086_v48, 2  ;;  %v4054_v42 = vld [vmem:[#allocation2 + $0xf0] sm:$0xfe]  ;;  %v4056_v44 = vld [vmem:[#allocation2 + $0x110] sm:$0x1] }
 0x131   : > { %1188 = vst.msk [vmem:[#allocation2 + $0x178] sm:$0x1] %vm1151_vm7, %v992_v40  ;;  %v2292_v50 = vrot.slane %v2088_v27, 2  ;;  %v2297_v47 = vrot.slane %v2090_v5, 2  ;;  %v2630_v54 = vmul.f32 %v7044_v45, %v6566_v59  ;;  %v2632_v17 = vmul.f32 %v6566_v59, %v7138_v1  ;;  %v4603_v5 = vld [vmem:[#allocation2 + $0xf0] sm:$0xfc] }
 0x132   : > { %6051 = vmatmul.msk.bf16.gmra.mxu3 %vm778_vm2, %v5343_v7  ;;  %v2833_v19 = vmul.f32 %v8893_v31, %v2758_v6  ;;  %v2835_v8 = vmul.f32 %v8893_v31, %v7138_v1  ;;  %v2837_v58 = vmul.f32 %v8893_v31, %v2760_v15  ;;  %v3382_v26 = vmul.f32 %v8896_v30, %v3307_v57  ;;  %v4605_v15 = vld [vmem:[#allocation2 + $0x110] sm:$0x3] }
 0x133   : > { %v2293_v60 = vsel %vm2260_vm5, %v2291_v61, %v2292_v50  ;;  %v2298_v25 = vsel %vm2260_vm5, %v2292_v50, %v2297_v47  ;;  %v3384_v0 = vmul.f32 %v8896_v30, %v7138_v1  ;;  %v3386_v52 = vmul.f32 %v8896_v30, %v3309_v38 }
 0x134   : > { %v2497_v37 = vadd.f32 %v2293_v60, %v1947_v18  ;;  %v2499_v36 = vadd.f32 %v2298_v25, %v1949_v12  ;;  %v3037_v41 = vrot.slane %v2833_v19, 1  ;;  %v3038_v40 = vrot.slane %v2835_v8, 1 }
 0x135   : > { %v3043_v10 = vrot.slane %v2837_v58, 1  ;;  %v3586_v48 = vrot.slane %v3382_v26, 2  ;;  %v3587_v9 = vrot.slane %v3384_v0, 2  ;;  %v3592_v14 = vrot.slane %v3386_v52, 2 }
 0x136   : > { %v2694_v27 = vadd.f32 %v2630_v54, %v2497_v37  ;;  %v2696_v6 = vadd.f32 %v2632_v17, %v2499_v36  ;;  %v3039_v34 = vsel %vm1710_vm4, %v3037_v41, %v3038_v40  ;;  %v3926_v63 = vmul.f32 %v6645_v29, %v7163_v32  ;;  %v1462_v41 = vld [vmem:[#allocation2 + $0x98] sm:$0xfe] }
 0x137   : > { %v3044_v57 = vsel %vm1710_vm4, %v3038_v40, %v3043_v10  ;;  %v3588_v7 = vsel %vm2260_vm5, %v3586_v48, %v3587_v9  ;;  %v3593_v18 = vsel %vm2260_vm5, %v3587_v9, %v3592_v14  ;;  %v3928_v12 = vmul.f32 %v6645_v29, %v7165_v3  ;;  %v1464_v14 = vld [vmem:[#allocation2 + $0xb8] sm:$0x1] }
 0x138   : > { %v3243_v61 = vadd.f32 %v3039_v34, %v2694_v27  ;;  %v3245_v38 = vadd.f32 %v3044_v57, %v2696_v6  ;;  %v4129_v50 = vmul.f32 %v6647_v24, %v4054_v42  ;;  %v4131_v47 = vmul.f32 %v6647_v24, %v7165_v3  ;;  %v2012_v42 = vld [vmem:[#allocation2 + $0x98] sm:$0xfc]  ;;  %v2014_v27 = vld [vmem:[#allocation2 + $0xb8] sm:$0x3] }
 0x139   : > { %v4133_v54 = vmul.f32 %v6647_v24, %v4056_v44  ;;  %v4678_v17 = vmul.f32 %v6788_v39, %v4603_v5  ;;  %v4680_v19 = vmul.f32 %v6788_v39, %v7165_v3  ;;  %v4682_v8 = vmul.f32 %v6788_v39, %v4605_v15  ;;  %v6084_v15 = vld [vmem:[%s6212_s22 + $0x78] sm:$0xff] }
 0x13a   : > { %v3792_v58 = vadd.f32 %v3588_v7, %v3243_v61  ;;  %v3794_v26 = vadd.f32 %v3593_v18, %v3245_v38  ;;  %v4333_v60 = vrot.slane %v4129_v50, 1  ;;  %v4334_v25 = vrot.slane %v4131_v47, 1  ;;  %5984 = vmatmul.msk.bf16.gmra.mxu0 %vm422_vm0, %v6084_v15  ;;  %6000 = vmatmul.msk.bf16.gmra.mxu1 %vm422_vm0, %v6084_v15 }
 0x13b   : > { %v4339_v0 = vrot.slane %v4133_v54, 1  ;;  %v4882_v52 = vrot.slane %v4678_v17, 2  ;;  %v4883_v37 = vrot.slane %v4680_v19, 2  ;;  %v4888_v36 = vrot.slane %v4682_v8, 2 }
 0x13c   : > { %v3990_v40 = vadd.f32 %v3926_v63, %v3792_v58  ;;  %v3992_v10 = vadd.f32 %v3928_v12, %v3794_v26  ;;  %v4335_v48 = vsel %vm1710_vm4, %v4333_v60, %v4334_v25  ;;  %v1334_v9 = vmul.f32 %v6979_v46, %v8910_v53 }
 0x13d   : > { %v4340_v6 = vsel %vm1710_vm4, %v4334_v25, %v4339_v0  ;;  %v4884_v34 = vsel %vm2260_vm5, %v4882_v52, %v4883_v37  ;;  %v4889_v44 = vsel %vm2260_vm5, %v4883_v37, %v4888_v36  ;;  %v1336_v5 = vmul.f32 %v6987_v55, %v8910_v53  ;;  %v2759_v52 = vld [vmem:[#allocation2 + $0xc8] sm:$0xfe]  ;;  %v2761_v37 = vld [vmem:[#allocation2 + $0xe8] sm:$0x1] }
 0x13e   : > { %v4539_v63 = vadd.f32 %v4335_v48, %v3990_v40  ;;  %v4541_v57 = vadd.f32 %v4340_v6, %v3992_v10  ;;  %v1537_v7 = vmul.f32 %v6334_v43, %v1462_v41  ;;  %v1539_v46 = vmul.f32 %v6987_v55, %v6334_v43  ;;  %v3308_v48 = vld [vmem:[#allocation2 + $0xc8] sm:$0xfc] }
 0x13f   : > { %v1541_v18 = vmul.f32 %v6334_v43, %v1464_v14  ;;  %v2087_v12 = vmul.f32 %v6350_v51, %v2012_v42  ;;  %v2089_v61 = vmul.f32 %v6987_v55, %v6350_v51  ;;  %v2091_v38 = vmul.f32 %v6350_v51, %v2014_v27 }
 0x140   : > { %v5088_v50 = vadd.f32 %v4884_v34, %v4539_v63  ;;  %v5090_v47 = vadd.f32 %v4889_v44, %v4541_v57  ;;  %v1744_v54 = vrot.slane %v1537_v7, 1  ;;  %v1745_v17 = vrot.slane %v1539_v46, 1  ;;  %v515_v34 = vpop.f32.mrf.mxu0  ;;  %v3310_v57 = vld [vmem:[#allocation2 + $0xe8] sm:$0x3]  ;;  %v604_v7 = vpop.f32.mrf.mxu1 }
 0x141   : > { %v1749_v19 = vrot.slane %v1541_v18, 1  ;;  %v2294_v8 = vrot.slane %v2087_v12, 2  ;;  %v2295_v58 = vrot.slane %v2089_v61, 2  ;;  %v2299_v26 = vrot.slane %v2091_v38, 2 }
 0x142   : > { %v5158_v60 = vadd.f32 %v6817_v35, %v5088_v50  ;;  %v5160_v25 = vadd.f32 %v6817_v35, %v5090_v47  ;;  %v1746_v55 = vsel %vm1710_vm4, %v1744_v54, %v1745_v17  ;;  %v2631_v0 = vmul.f32 %v7097_v16, %v8904_v21 }
 0x143   : > { %v1750_v36 = vsel %vm1710_vm4, %v1745_v17, %v1749_v19  ;;  %v1948_v41 = vadd.f32 %v1746_v55, %v1334_v9  ;;  %v2296_v40 = vsel %vm2260_vm5, %v2294_v8, %v2295_v58  ;;  %v2300_v10 = vsel %vm2260_vm5, %v2295_v58, %v2299_v26  ;;  %v7222_v26 = vld [vmem:[#allocation2 + $0x108] sm:$0xff] }
 0x144   : > { %v5222_v14 = vmax.f32 %v5158_v60, 0.0  ;;  %v5224_v42 = vmax.f32 %v5160_v25, 0.0  ;;  %v1950_v27 = vadd.f32 %v1750_v36, %v1336_v5  ;;  %v2633_v6 = vmul.f32 %v7099_v56, %v8904_v21  ;;  %v7217_v5 = vld [vmem:[#allocation2 + $0xf8] sm:$0xff] }
 0x145   : > { %v2498_v44 = vadd.f32 %v2296_v40, %v1948_v41  ;;  %v2834_v15 = vmul.f32 %v8906_v28, %v2759_v52  ;;  %v2836_v63 = vmul.f32 %v7099_v56, %v8906_v28  ;;  %v2838_v9 = vmul.f32 %v8906_v28, %v2761_v37  ;;  %v4055_v60 = vld [vmem:[#allocation2 + $0xf8] sm:$0xfe]  ;;  %v4057_v25 = vld [vmem:[#allocation2 + $0x118] sm:$0x1] }
 0x146   : > { %v5286_v46 = vmin.f32 %v5222_v14, 6.0  ;;  %v5288_v18 = vmin.f32 %v5224_v42, 6.0  ;;  %v2500_v12 = vadd.f32 %v2300_v10, %v1950_v27  ;;  %v3383_v61 = vmul.f32 %v8907_v4, %v3308_v48  ;;  %v4604_v36 = vld [vmem:[#allocation2 + $0xf8] sm:$0xfc] }
 0x147   : > { %v2695_v38 = vadd.f32 %v2631_v0, %v2498_v44  ;;  %v3040_v50 = vrot.slane %v2834_v15, 1  ;;  %v3041_v47 = vrot.slane %v2836_v63, 1  ;;  %v3045_v54 = vrot.slane %v2838_v9, 1  ;;  %v4606_v44 = vld [vmem:[#allocation2 + $0x118] sm:$0x3] }
 0x148   : > { %v5344_v17 = vpack.c.bf16 %v5288_v18, %v5286_v46  ;;  %v2697_v19 = vadd.f32 %v2633_v6, %v2500_v12  ;;  %v3385_v8 = vmul.f32 %v7099_v56, %v8907_v4  ;;  %v3387_v58 = vmul.f32 %v8907_v4, %v3310_v57 }
 0x149   : > { %v3042_v55 = vsel %vm1710_vm4, %v3040_v50, %v3041_v47  ;;  %v3046_v52 = vsel %vm1710_vm4, %v3041_v47, %v3045_v54  ;;  %v3589_v37 = vrot.slane %v3383_v61, 2  ;;  %v3927_v0 = vmul.f32 %v6588_v11, %v7217_v5 }
 0x14a   : > { %5541 = vmatmul.bf16.gmra.mxu2 %v5344_v17  ;;  %v3244_v41 = vadd.f32 %v3042_v55, %v2695_v38  ;;  %v3246_v40 = vadd.f32 %v3046_v52, %v2697_v19  ;;  %v3590_v10 = vrot.slane %v3385_v8, 2  ;;  %v3594_v48 = vrot.slane %v3387_v58, 2  ;;  %v517_v17 = vpop.f32.mrf.mxu0 }
 0x14b   : > { %v3929_v14 = vmul.f32 %v6588_v11, %v7222_v26  ;;  %v4130_v42 = vmul.f32 %v6590_v13, %v4055_v60  ;;  %v4132_v27 = vmul.f32 %v6590_v13, %v7222_v26  ;;  %v4134_v6 = vmul.f32 %v6590_v13, %v4057_v25  ;;  %v606_v25 = vpop.f32.mrf.mxu1 }
 0x14c   : > { %v3591_v15 = vsel %vm2260_vm5, %v3589_v37, %v3590_v10  ;;  %v3595_v63 = vsel %vm2260_vm5, %v3590_v10, %v3594_v48  ;;  %v4679_v9 = vmul.f32 %v6606_v33, %v4604_v36  ;;  %v4681_v57 = vmul.f32 %v6606_v33, %v7222_v26 }
 0x14d   : > { %v3793_v46 = vadd.f32 %v3591_v15, %v3244_v41  ;;  %v3795_v18 = vadd.f32 %v3595_v63, %v3246_v40  ;;  %v4336_v12 = vrot.slane %v4130_v42, 1  ;;  %v4337_v61 = vrot.slane %v4132_v27, 1  ;;  %v1465_v42 = vld [vmem:[#allocation2 + $0xc0] sm:$0xfe] }
 0x14e   : > { %v4341_v38 = vrot.slane %v4134_v6, 1  ;;  %v4683_v50 = vmul.f32 %v6606_v33, %v4606_v44  ;;  %v4885_v47 = vrot.slane %v4679_v9, 2  ;;  %v4886_v54 = vrot.slane %v4681_v57, 2  ;;  %v1467_v9 = vld [vmem:[#allocation2 + $0xe0] sm:$0x1] }
 0x14f   : > { %v3991_v19 = vadd.f32 %v3927_v0, %v3793_v46  ;;  %v3993_v8 = vadd.f32 %v3929_v14, %v3795_v18  ;;  %v4338_v58 = vsel %vm1710_vm4, %v4336_v12, %v4337_v61  ;;  %v516_v60 = vadd.f32 %v515_v34, %v6266_v22 }
 0x150   : > { %v4342_v55 = vsel %vm1710_vm4, %v4337_v61, %v4341_v38  ;;  %v4887_v52 = vsel %vm2260_vm5, %v4885_v47, %v4886_v54  ;;  %v4890_v37 = vrot.slane %v4683_v50, 2  ;;  %v605_v36 = vadd.f32 %v604_v7, %v6270_v23  ;;  %v2015_v47 = vld [vmem:[#allocation2 + $0xc0] sm:$0xfc] }
 0x151   : > { %v4540_v41 = vadd.f32 %v4338_v58, %v3991_v19  ;;  %v4542_v40 = vadd.f32 %v4342_v55, %v3993_v8  ;;  %v677_v10 = vmax.f32 %v516_v60, 0.0  ;;  %v518_v48 = vadd.f32 %v517_v17, %v6266_v22  ;;  %v2017_v8 = vld [vmem:[#allocation2 + $0xe0] sm:$0x3] }
 0x152   : > { %v4891_v0 = vsel %vm2260_vm5, %v4886_v54, %v4890_v37  ;;  %v678_v14 = vmax.f32 %v605_v36, 0.0  ;;  %v607_v27 = vadd.f32 %v606_v25, %v6270_v23  ;;  %v1337_v34 = vmul.f32 %v7044_v45, %v6485_v62 }
 0x153   : > { %v5089_v6 = vadd.f32 %v4887_v52, %v4540_v41  ;;  %v5091_v44 = vadd.f32 %v4891_v0, %v4542_v40  ;;  %v741_v15 = vmin.f32 %v677_v10, 6.0  ;;  %v679_v63 = vmax.f32 %v518_v48, 0.0  ;;  %v2762_v0 = vld [vmem:[#allocation2 + $0xf0] sm:$0xfe] }
 0x154   : > { %v742_v7 = vmin.f32 %v678_v14, 6.0  ;;  %v680_v57 = vmax.f32 %v607_v27, 0.0  ;;  %v1339_v46 = vmul.f32 %v7138_v1, %v6485_v62  ;;  %v1542_v18 = vmul.f32 %v8908_v49, %v1465_v42 }
 0x155   : > { %v5159_v12 = vadd.f32 %v6741_v2, %v5089_v6  ;;  %v5161_v61 = vadd.f32 %v6741_v2, %v5091_v44  ;;  %v994_v38 = vrot.slane %v741_v15, 7  ;;  %v743_v50 = vmin.f32 %v679_v63, 6.0  ;;  %v2764_v15 = vld [vmem:[#allocation2 + $0x110] sm:$0x1]  ;;  %v3311_v63 = vld [vmem:[#allocation2 + $0xf0] sm:$0xfc] }
 0x156   : > { %v995_v45 = vrot.slane %v742_v7, 7  ;;  %v744_v54 = vmin.f32 %v680_v57, 6.0  ;;  %v1544_v17 = vmul.f32 %v7138_v1, %v8908_v49  ;;  %v1546_v19 = vmul.f32 %v8908_v49, %v1467_v9 }
 0x157   : > { %v5223_v58 = vmax.f32 %v5159_v12, 0.0  ;;  %v5225_v60 = vmax.f32 %v5161_v61, 0.0  ;;  %1189 = vst [vmem:[#allocation2 + $0x180] sm:$0xfe] %v994_v38  ;;  %v996_v25 = vrot.slane %v743_v50, 7  ;;  %v1751_v55 = vrot.slane %v1542_v18, 1 }
 0x158   : > { %1190 = vst.msk [vmem:[#allocation2 + $0x188] sm:$0xfe] %vm1146_vm1, %v995_v45  ;;  %v998_v52 = vrot.slane %v744_v54, 7  ;;  %v1752_v37 = vrot.slane %v1544_v17, 1  ;;  %v1757_v36 = vrot.slane %v1546_v19, 1  ;;  %v2092_v41 = vmul.f32 %v8909_v20, %v2015_v47 }
 0x159   : > { %v5287_v40 = vmin.f32 %v5223_v58, 6.0  ;;  %v5289_v10 = vmin.f32 %v5225_v60, 6.0  ;;  %v997_v48 = vsel %vm951_vm3, %v994_v38, %v996_v25  ;;  %1193 = vst [vmem:[#allocation2 + $0x1a0] sm:$0x1] %v996_v25  ;;  %v2094_v42 = vmul.f32 %v7138_v1, %v8909_v20  ;;  %v3313_v12 = vld [vmem:[#allocation2 + $0x110] sm:$0x3] }
 0x15a   : > { %1191 = vst [vmem:[#allocation2 + $0x190] sm:$0xff] %v997_v48  ;;  %v999_v14 = vsel %vm951_vm3, %v995_v45, %v998_v52  ;;  %v1753_v27 = vsel %vm1710_vm4, %v1751_v55, %v1752_v37  ;;  %v1758_v6 = vsel %vm1710_vm4, %v1752_v37, %v1757_v36  ;;  %v2096_v44 = vmul.f32 %v8909_v20, %v2017_v8  ;;  %v7284_v58 = vld [vmem:[#allocation2 + $0x120] sm:$0xff]  ;;  %v7286_v37 = vld [vmem:[#allocation2 + $0x130] sm:$0xff] }
 0x15b   : > { %v5345_v9 = vpack.c.bf16 %v5289_v10, %v5287_v40  ;;  %1192 = vst.msk [vmem:[#allocation2 + $0x198] sm:$0xff] %vm778_vm2, %v999_v14  ;;  %v1951_v7 = vadd.f32 %v1753_v27, %v1337_v34  ;;  %v1953_v57 = vadd.f32 %v1758_v6, %v1339_v46  ;;  %v2301_v18 = vrot.slane %v2092_v41, 2  ;;  %v4058_v48 = vld [vmem:[#allocation2 + $0x120] sm:$0xfe]  ;;  %v4060_v6 = vld [vmem:[#allocation2 + $0x140] sm:$0x1] }
 0x15c   : > { %1194 = vst.msk [vmem:[#allocation2 + $0x1a8] sm:$0x1] %vm1151_vm7, %v998_v52  ;;  %v2302_v1 = vrot.slane %v2094_v42, 2  ;;  %v2307_v61 = vrot.slane %v2096_v44, 2  ;;  %v2634_v38 = vmul.f32 %v7163_v32, %v6566_v59  ;;  %v2636_v50 = vmul.f32 %v7165_v3, %v6566_v59  ;;  %v4607_v44 = vld [vmem:[#allocation2 + $0x120] sm:$0xfc] }
 0x15d   : > { %6052 = vmatmul.msk.bf16.gmra.mxu3 %vm778_vm2, %v5345_v9  ;;  %v2839_v47 = vmul.f32 %v8893_v31, %v2762_v0  ;;  %v2841_v34 = vmul.f32 %v7165_v3, %v8893_v31  ;;  %v2843_v46 = vmul.f32 %v8893_v31, %v2764_v15  ;;  %v3388_v45 = vmul.f32 %v8896_v30, %v3311_v63  ;;  %v4609_v15 = vld [vmem:[#allocation2 + $0x140] sm:$0x3] }
 0x15e   : > { %v2303_v54 = vsel %vm2260_vm5, %v2301_v18, %v2302_v1  ;;  %v2308_v17 = vsel %vm2260_vm5, %v2302_v1, %v2307_v61  ;;  %v3390_v19 = vmul.f32 %v7165_v3, %v8896_v30  ;;  %v3392_v8 = vmul.f32 %v8896_v30, %v3313_v12 }
 0x15f   : > { %v2501_v60 = vadd.f32 %v2303_v54, %v1951_v7  ;;  %v2503_v25 = vadd.f32 %v2308_v17, %v1953_v57  ;;  %v3047_v55 = vrot.slane %v2839_v47, 1  ;;  %v3048_v52 = vrot.slane %v2841_v34, 1 }
 0x160   : > { %v3053_v36 = vrot.slane %v2843_v46, 1  ;;  %v3596_v41 = vrot.slane %v3388_v45, 2  ;;  %v3597_v40 = vrot.slane %v3390_v19, 2  ;;  %v3602_v10 = vrot.slane %v3392_v8, 2 }
 0x161   : > { %v2698_v42 = vadd.f32 %v2634_v38, %v2501_v60  ;;  %v2700_v0 = vadd.f32 %v2636_v50, %v2503_v25  ;;  %v3049_v14 = vsel %vm1710_vm4, %v3047_v55, %v3048_v52  ;;  %v3930_v27 = vmul.f32 %v6645_v29, %v7284_v58  ;;  %v1466_v55 = vld [vmem:[#allocation2 + $0xc8] sm:$0xfe] }
 0x162   : > { %v3054_v63 = vsel %vm1710_vm4, %v3048_v52, %v3053_v36  ;;  %v3598_v9 = vsel %vm2260_vm5, %v3596_v41, %v3597_v40  ;;  %v3603_v7 = vsel %vm2260_vm5, %v3597_v40, %v3602_v10  ;;  %v3932_v57 = vmul.f32 %v6645_v29, %v7286_v37  ;;  %v1468_v10 = vld [vmem:[#allocation2 + $0xe8] sm:$0x1] }
 0x163   : > { %v3247_v18 = vadd.f32 %v3049_v14, %v2698_v42  ;;  %v3249_v12 = vadd.f32 %v3054_v63, %v2700_v0  ;;  %v4135_v1 = vmul.f32 %v6647_v24, %v4058_v48  ;;  %v4137_v61 = vmul.f32 %v6647_v24, %v7286_v37  ;;  %v2016_v48 = vld [vmem:[#allocation2 + $0xc8] sm:$0xfc]  ;;  %v2018_v42 = vld [vmem:[#allocation2 + $0xe8] sm:$0x3] }
 0x164   : > { %v4139_v38 = vmul.f32 %v6647_v24, %v4060_v6  ;;  %v4684_v50 = vmul.f32 %v6788_v39, %v4607_v44  ;;  %v4686_v47 = vmul.f32 %v6788_v39, %v7286_v37  ;;  %v4688_v34 = vmul.f32 %v6788_v39, %v4609_v15 }
 0x165   : > { %v3796_v46 = vadd.f32 %v3598_v9, %v3247_v18  ;;  %v3798_v45 = vadd.f32 %v3603_v7, %v3249_v12  ;;  %v4343_v54 = vrot.slane %v4135_v1, 1  ;;  %v4344_v17 = vrot.slane %v4137_v61, 1 }
 0x166   : > { %v4349_v19 = vrot.slane %v4139_v38, 1  ;;  %v4892_v8 = vrot.slane %v4684_v50, 2  ;;  %v4893_v60 = vrot.slane %v4686_v47, 2  ;;  %v4898_v25 = vrot.slane %v4688_v34, 2 }
 0x167   : > { %v3994_v52 = vadd.f32 %v3930_v27, %v3796_v46  ;;  %v3996_v36 = vadd.f32 %v3932_v57, %v3798_v45  ;;  %v4345_v41 = vsel %vm1710_vm4, %v4343_v54, %v4344_v17  ;;  %v1338_v40 = vmul.f32 %v7097_v16, %v8910_v53 }
 0x168   : > { %v4350_v0 = vsel %vm1710_vm4, %v4344_v17, %v4349_v19  ;;  %v4894_v14 = vsel %vm2260_vm5, %v4892_v8, %v4893_v60  ;;  %v4899_v6 = vsel %vm2260_vm5, %v4893_v60, %v4898_v25  ;;  %v1340_v44 = vmul.f32 %v7099_v56, %v8910_v53  ;;  %v2765_v8 = vld [vmem:[#allocation2 + $0x118] sm:$0x1] }
 0x169   : > { %v4543_v15 = vadd.f32 %v4345_v41, %v3994_v52  ;;  %v4545_v27 = vadd.f32 %v4350_v0, %v3996_v36  ;;  %v1543_v63 = vmul.f32 %v6334_v43, %v1466_v55  ;;  %v1545_v9 = vmul.f32 %v7099_v56, %v6334_v43  ;;  %v3312_v36 = vld [vmem:[#allocation2 + $0xf8] sm:$0xfc] }
 0x16a   : > { %v1547_v16 = vmul.f32 %v6334_v43, %v1468_v10  ;;  %v2093_v7 = vmul.f32 %v6350_v51, %v2016_v48  ;;  %v2095_v57 = vmul.f32 %v7099_v56, %v6350_v51  ;;  %v2097_v18 = vmul.f32 %v6350_v51, %v2018_v42  ;;  %v2763_v56 = vld [vmem:[#allocation2 + $0xf8] sm:$0xfe] }
 0x16b   : > { %v5092_v12 = vadd.f32 %v4894_v14, %v4543_v15  ;;  %v5094_v1 = vadd.f32 %v4899_v6, %v4545_v27  ;;  %v1754_v61 = vrot.slane %v1543_v63, 1  ;;  %v1755_v38 = vrot.slane %v1545_v9, 1 }
 0x16c   : > { %v1759_v50 = vrot.slane %v1547_v16, 1  ;;  %v2304_v47 = vrot.slane %v2093_v7, 2  ;;  %v2305_v34 = vrot.slane %v2095_v57, 2  ;;  %v2309_v46 = vrot.slane %v2097_v18, 2  ;;  %v7335_v7 = vld [vmem:[#allocation2 + $0x128] sm:$0xff] }
 0x16d   : > { %v5162_v45 = vadd.f32 %v6817_v35, %v5092_v12  ;;  %v5164_v54 = vadd.f32 %v6817_v35, %v5094_v1  ;;  %v1756_v17 = vsel %vm1710_vm4, %v1754_v61, %v1755_v38  ;;  %v2635_v19 = vmul.f32 %v7217_v5, %v8904_v21 }
 0x16e   : > { %v1760_v60 = vsel %vm1710_vm4, %v1755_v38, %v1759_v50  ;;  %v1952_v25 = vadd.f32 %v1756_v17, %v1338_v40  ;;  %v2306_v55 = vsel %vm2260_vm5, %v2304_v47, %v2305_v34  ;;  %v2310_v52 = vsel %vm2260_vm5, %v2305_v34, %v2309_v46  ;;  %v3314_v40 = vld [vmem:[#allocation2 + $0x118] sm:$0x3]  ;;  %v4059_v34 = vld [vmem:[#allocation2 + $0x128] sm:$0xfe]  ;;  %v4061_v46 = vld [vmem:[#allocation2 + $0x148] sm:$0x1] }
 0x16f   : > { %v5226_v41 = vmax.f32 %v5162_v45, 0.0  ;;  %v5228_v10 = vmax.f32 %v5164_v54, 0.0  ;;  %v1954_v48 = vadd.f32 %v1760_v60, %v1340_v44  ;;  %v2637_v42 = vmul.f32 %v7222_v26, %v8904_v21  ;;  %v7340_v47 = vld [vmem:[#allocation2 + $0x138] sm:$0xff] }
 0x170   : > { %v2502_v0 = vadd.f32 %v2306_v55, %v1952_v25  ;;  %v2840_v14 = vmul.f32 %v8906_v28, %v2763_v56  ;;  %v2842_v6 = vmul.f32 %v7222_v26, %v8906_v28  ;;  %v2844_v15 = vmul.f32 %v8906_v28, %v2765_v8  ;;  %v4608_v56 = vld [vmem:[#allocation2 + $0x128] sm:$0xfc] }
 0x171   : > { %v5290_v27 = vmin.f32 %v5226_v41, 6.0  ;;  %v5292_v63 = vmin.f32 %v5228_v10, 6.0  ;;  %v2504_v9 = vadd.f32 %v2310_v52, %v1954_v48  ;;  %v3389_v16 = vmul.f32 %v8907_v4, %v3312_v36  ;;  %v4610_v48 = vld [vmem:[#allocation2 + $0x148] sm:$0x3] }
 0x172   : > { %v2699_v44 = vadd.f32 %v2635_v19, %v2502_v0  ;;  %v3050_v57 = vrot.slane %v2840_v14, 1  ;;  %v3051_v18 = vrot.slane %v2842_v6, 1  ;;  %v3055_v12 = vrot.slane %v2844_v15, 1  ;;  %v520_v15 = vpop.f32.mrf.mxu0 }
 0x173   : > { %v5346_v1 = vpack.c.bf16 %v5292_v63, %v5290_v27  ;;  %v2701_v61 = vadd.f32 %v2637_v42, %v2504_v9  ;;  %v3391_v38 = vmul.f32 %v7222_v26, %v8907_v4  ;;  %v3393_v50 = vmul.f32 %v8907_v4, %v3314_v40 }
 0x174   : > { %v3052_v45 = vsel %vm1710_vm4, %v3050_v57, %v3051_v18  ;;  %v3056_v54 = vsel %vm1710_vm4, %v3051_v18, %v3055_v12  ;;  %v3599_v17 = vrot.slane %v3389_v16, 2  ;;  %v3931_v19 = vmul.f32 %v6588_v11, %v7335_v7  ;;  %v609_v16 = vpop.f32.mrf.mxu1 }
 0x175   : > { %5546 = vmatmul.bf16.gmra.mxu2 %v5346_v1  ;;  %v3248_v8 = vadd.f32 %v3052_v45, %v2699_v44  ;;  %v3250_v60 = vadd.f32 %v3056_v54, %v2701_v61  ;;  %v3600_v25 = vrot.slane %v3391_v38, 2  ;;  %v3604_v55 = vrot.slane %v3393_v50, 2 }
 0x176   : > { %v3933_v52 = vmul.f32 %v6588_v11, %v7340_v47  ;;  %v4136_v36 = vmul.f32 %v6590_v13, %v4059_v34  ;;  %v4138_v41 = vmul.f32 %v6590_v13, %v7340_v47  ;;  %v4140_v10 = vmul.f32 %v6590_v13, %v4061_v46  ;;  %v1449_v34 = vld [vmem:[#allocation2] sm:$0xfe] }
 0x177   : > { %v3601_v42 = vsel %vm2260_vm5, %v3599_v17, %v3600_v25  ;;  %v3605_v0 = vsel %vm2260_vm5, %v3600_v25, %v3604_v55  ;;  %v4685_v14 = vmul.f32 %v6606_v33, %v4608_v56  ;;  %v4687_v6 = vmul.f32 %v6606_v33, %v7340_v47  ;;  %v1451_v56 = vld [vmem:[#allocation2 + $0x20] sm:$0x1] }
 0x178   : > { %v3797_v40 = vadd.f32 %v3601_v42, %v3248_v8  ;;  %v3799_v27 = vadd.f32 %v3605_v0, %v3250_v60  ;;  %v4346_v63 = vrot.slane %v4136_v36, 1  ;;  %v4347_v9 = vrot.slane %v4138_v41, 1  ;;  %v6119_v55 = vld [vmem:[#allocation2] sm:$0xff] }
 0x179   : > { %v4351_v44 = vrot.slane %v4140_v10, 1  ;;  %v4689_v57 = vmul.f32 %v6606_v33, %v4610_v48  ;;  %v4895_v18 = vrot.slane %v4685_v14, 2  ;;  %v4896_v12 = vrot.slane %v4687_v6, 2 }
 0x17a   : > { %v3995_v1 = vadd.f32 %v3931_v19, %v3797_v40  ;;  %v3997_v61 = vadd.f32 %v3933_v52, %v3799_v27  ;;  %v4348_v38 = vsel %vm1710_vm4, %v4346_v63, %v4347_v9  ;;  %v521_v50 = vadd.f32 %v520_v15, %v6266_v22  ;;  %v1999_v52 = vld [vmem:[#allocation2] sm:$0xfc]  ;;  %v2001_v15 = vld [vmem:[#allocation2 + $0x20] sm:$0x3] }
 0x17b   : > { %v4352_v46 = vsel %vm1710_vm4, %v4347_v9, %v4351_v44  ;;  %v4897_v45 = vsel %vm2260_vm5, %v4895_v18, %v4896_v12  ;;  %v4900_v54 = vrot.slane %v4689_v57, 2  ;;  %v610_v17 = vadd.f32 %v609_v16, %v6270_v23 }
 0x17c   : > { %v4544_v8 = vadd.f32 %v4348_v38, %v3995_v1  ;;  %v4546_v60 = vadd.f32 %v4352_v46, %v3997_v61  ;;  %v681_v25 = vmax.f32 %v521_v50, 0.0  ;;  %v1321_v19 = vmul.f32 %v6119_v55, %v6485_v62  ;;  %v2549_v50 = vld [vmem:[#allocation2 + $0x30] sm:$0xff] }
 0x17d   : > { %v4901_v36 = vsel %vm2260_vm5, %v4896_v12, %v4900_v54  ;;  %v682_v41 = vmax.f32 %v610_v17, 0.0  ;;  %v1518_v10 = vmul.f32 %v8908_v49, %v1449_v34  ;;  %v1520_v48 = vmul.f32 %v6119_v55, %v8908_v49  ;;  %v2551_v34 = vld [vmem:[#allocation2 + $0x40] sm:$0xff]  ;;  %v2746_v46 = vld [vmem:[#allocation2 + $0x30] sm:$0xfe] }
 0x17e   : > { %v5093_v42 = vadd.f32 %v4897_v45, %v4544_v8  ;;  %v5095_v0 = vadd.f32 %v4901_v36, %v4546_v60  ;;  %v7367_v14 = vmin.f32 %v681_v25, 6.0  ;;  %v1522_v6 = vmul.f32 %v8908_v49, %v1451_v56  ;;  %v2748_v8 = vld [vmem:[#allocation2 + $0x50] sm:$0x1] }
 0x17f   : > { %v7370_v40 = vmin.f32 %v682_v41, 6.0  ;;  %v1711_v27 = vrot.slane %v1518_v10, 1  ;;  %v1712_v63 = vrot.slane %v1520_v48, 1  ;;  %v2068_v9 = vmul.f32 %v8909_v20, %v1999_v52 }
 0x180   : > { %v5163_v16 = vadd.f32 %v6741_v2, %v5093_v42  ;;  %v5165_v44 = vadd.f32 %v6741_v2, %v5095_v0  ;;  %v1000_v57 = vrot.slane %v7367_v14, 7  ;;  %v1717_v18 = vrot.slane %v1522_v6, 1  ;;  %v3295_v42 = vld [vmem:[#allocation2 + $0x30] sm:$0xfc]  ;;  %v2768_v14 = vld [vmem:[#allocation2 + $0x140] sm:$0x1] }
 0x181   : > { %v1001_v12 = vrot.slane %v7370_v40, 7  ;;  %v1713_v1 = vsel %vm1710_vm4, %v1711_v27, %v1712_v63  ;;  %v2070_v61 = vmul.f32 %v6119_v55, %v8909_v20  ;;  %v2072_v38 = vmul.f32 %v8909_v20, %v2001_v15 }
 0x182   : > { %v5227_v45 = vmax.f32 %v5163_v16, 0.0  ;;  %v5229_v54 = vmax.f32 %v5165_v44, 0.0  ;;  %1195 = vst [vmem:[#allocation2 + $0x1b0] sm:$0xfe] %v1000_v57  ;;  %v1718_v17 = vsel %vm1710_vm4, %v1712_v63, %v1717_v18  ;;  %v1935_v56 = vadd.f32 %v1713_v1, %v1321_v19  ;;  %v3297_v63 = vld [vmem:[#allocation2 + $0x50] sm:$0x3] }
 0x183   : > { %1196 = vst.msk [vmem:[#allocation2 + $0x1b8] sm:$0xfe] %vm1146_vm1, %v1001_v12  ;;  %v1937_v60 = vadd.f32 %v1718_v17, %v1321_v19  ;;  %v2261_v25 = vrot.slane %v2068_v9, 2  ;;  %v2262_v55 = vrot.slane %v2070_v61, 2  ;;  %v2267_v52 = vrot.slane %v2072_v38, 2  ;;  %v3845_v18 = vld [vmem:[#allocation2 + $0x60] sm:$0xff] }
 0x184   : > { %v5291_v36 = vmin.f32 %v5227_v45, 6.0  ;;  %v5293_v41 = vmin.f32 %v5229_v54, 6.0  ;;  %v2618_v10 = vmul.f32 %v6566_v59, %v2549_v50  ;;  %v2620_v48 = vmul.f32 %v6566_v59, %v2551_v34  ;;  %v3847_v45 = vld [vmem:[#allocation2 + $0x70] sm:$0xff] }
 0x185   : > { %v2263_v0 = vsel %vm2260_vm5, %v2261_v25, %v2262_v55  ;;  %v2268_v6 = vsel %vm2260_vm5, %v2262_v55, %v2267_v52  ;;  %v2815_v15 = vmul.f32 %v8893_v31, %v2746_v46  ;;  %v2817_v27 = vmul.f32 %v8893_v31, %v2551_v34  ;;  %v4042_v55 = vld [vmem:[#allocation2 + $0x60] sm:$0xfe] }
 0x186   : > { %v5347_v19 = vpack.c.bf16 %v5293_v41, %v5291_v36  ;;  %v2485_v9 = vadd.f32 %v2263_v0, %v1935_v56  ;;  %v2487_v16 = vadd.f32 %v2268_v6, %v1937_v60  ;;  %v2819_v44 = vmul.f32 %v8893_v31, %v2748_v8  ;;  %v4044_v36 = vld [vmem:[#allocation2 + $0x80] sm:$0x1]  ;;  %v4591_v41 = vld [vmem:[#allocation2 + $0x60] sm:$0xfc] }
 0x187   : > { %v3007_v1 = vrot.slane %v2815_v15, 1  ;;  %v3008_v61 = vrot.slane %v2817_v27, 1  ;;  %v3364_v38 = vmul.f32 %v8896_v30, %v3295_v42  ;;  %v3366_v50 = vmul.f32 %v8896_v30, %v2551_v34 }
 0x188   : > { %6053 = vmatmul.msk.bf16.gmra.mxu3 %vm778_vm2, %v5347_v19  ;;  %v2682_v54 = vadd.f32 %v2618_v10, %v2485_v9  ;;  %v2684_v46 = vadd.f32 %v2620_v48, %v2487_v16  ;;  %v3013_v17 = vrot.slane %v2819_v44, 1  ;;  %v3368_v25 = vmul.f32 %v8896_v30, %v3297_v63  ;;  %v4593_v63 = vld [vmem:[#allocation2 + $0x80] sm:$0x3] }
 0x189   : > { %v3009_v56 = vsel %vm1710_vm4, %v3007_v1, %v3008_v61  ;;  %v3556_v60 = vrot.slane %v3364_v38, 2  ;;  %v3557_v8 = vrot.slane %v3366_v50, 2  ;;  %v3914_v52 = vmul.f32 %v6645_v29, %v3845_v18  ;;  %v522_v18 = vpop.f32.mrf.mxu0 }
 0x18a   : > { %v3014_v42 = vsel %vm1710_vm4, %v3008_v61, %v3013_v17  ;;  %v3231_v34 = vadd.f32 %v3009_v56, %v2682_v54  ;;  %v3562_v0 = vrot.slane %v3368_v25, 2  ;;  %v3916_v6 = vmul.f32 %v6645_v29, %v3847_v45  ;;  %v611_v54 = vpop.f32.mrf.mxu1 }
 0x18b   : > { %v3233_v10 = vadd.f32 %v3014_v42, %v2684_v46  ;;  %v3558_v48 = vsel %vm2260_vm5, %v3556_v60, %v3557_v8  ;;  %v4111_v15 = vmul.f32 %v6647_v24, %v4042_v55  ;;  %v4113_v27 = vmul.f32 %v6647_v24, %v3847_v45 }
 0x18c   : > { %v3563_v19 = vsel %vm2260_vm5, %v3557_v8, %v3562_v0  ;;  %v3780_v9 = vadd.f32 %v3558_v48, %v3231_v34  ;;  %v4115_v16 = vmul.f32 %v6647_v24, %v4044_v36  ;;  %v4660_v44 = vmul.f32 %v6788_v39, %v4591_v41 }
 0x18d   : > { %v3782_v1 = vadd.f32 %v3563_v19, %v3233_v10  ;;  %v4303_v61 = vrot.slane %v4111_v15, 1  ;;  %v4304_v38 = vrot.slane %v4113_v27, 1  ;;  %v4662_v50 = vmul.f32 %v6788_v39, %v3847_v45  ;;  %v1469_v10 = vld [vmem:[#allocation2 + $0xf0] sm:$0xfe] }
 0x18e   : > { %v3978_v46 = vadd.f32 %v3914_v52, %v3780_v9  ;;  %v4309_v17 = vrot.slane %v4115_v16, 1  ;;  %v4664_v25 = vmul.f32 %v6788_v39, %v4593_v63  ;;  %v4852_v55 = vrot.slane %v4660_v44, 2  ;;  %v2019_v27 = vld [vmem:[#allocation2 + $0xf0] sm:$0xfc] }
 0x18f   : > { %v3980_v56 = vadd.f32 %v3916_v6, %v3782_v1  ;;  %v4305_v60 = vsel %vm1710_vm4, %v4303_v61, %v4304_v38  ;;  %v4853_v8 = vrot.slane %v4662_v50, 2  ;;  %v523_v36 = vadd.f32 %v522_v18, %v6266_v22  ;;  %v1471_v6 = vld [vmem:[#allocation2 + $0x110] sm:$0x1] }
 0x190   : > { %v4310_v41 = vsel %vm1710_vm4, %v4304_v38, %v4309_v17  ;;  %v4527_v42 = vadd.f32 %v4305_v60, %v3978_v46  ;;  %v4858_v34 = vrot.slane %v4664_v25, 2  ;;  %v612_v0 = vadd.f32 %v611_v54, %v6270_v23  ;;  %v2021_v54 = vld [vmem:[#allocation2 + $0x110] sm:$0x3] }
 0x191   : > { %v4529_v45 = vadd.f32 %v4310_v41, %v3980_v56  ;;  %v4854_v52 = vsel %vm2260_vm5, %v4852_v55, %v4853_v8  ;;  %v683_v48 = vmax.f32 %v523_v36, 0.0  ;;  %v1341_v15 = vmul.f32 %v7163_v32, %v6485_v62 }
 0x192   : > { %v4859_v63 = vsel %vm2260_vm5, %v4853_v8, %v4858_v34  ;;  %v5076_v19 = vadd.f32 %v4854_v52, %v4527_v42  ;;  %v684_v9 = vmax.f32 %v612_v0, 0.0  ;;  %v1343_v16 = vmul.f32 %v7165_v3, %v6485_v62 }
 0x193   : > { %v5078_v44 = vadd.f32 %v4859_v63, %v4529_v45  ;;  %v747_v18 = vmin.f32 %v683_v48, 6.0  ;;  %v1548_v1 = vmul.f32 %v8908_v49, %v1469_v10  ;;  %v1550_v61 = vmul.f32 %v7165_v3, %v8908_v49  ;;  %v2766_v45 = vld [vmem:[#allocation2 + $0x120] sm:$0xfe] }
 0x194   : > { %v5146_v38 = vadd.f32 %v6817_v35, %v5076_v19  ;;  %v748_v50 = vmin.f32 %v684_v9, 6.0  ;;  %v1552_v32 = vmul.f32 %v8908_v49, %v1471_v6  ;;  %v2098_v46 = vmul.f32 %v8909_v20, %v2019_v27  ;;  %v3315_v9 = vld [vmem:[#allocation2 + $0x120] sm:$0xfc] }
 0x195   : > { %v5148_v17 = vadd.f32 %v6817_v35, %v5078_v44  ;;  %v1002_v25 = vrot.slane %v747_v18, 7  ;;  %v1761_v55 = vrot.slane %v1548_v1, 1  ;;  %v1762_v56 = vrot.slane %v1550_v61, 1 }
 0x196   : > { %v5210_v60 = vmax.f32 %v5146_v38, 0.0  ;;  %v1004_v8 = vrot.slane %v748_v50, 7  ;;  %v1767_v36 = vrot.slane %v1552_v32, 1  ;;  %v2100_v41 = vmul.f32 %v7165_v3, %v8909_v20  ;;  %v3317_v38 = vld [vmem:[#allocation2 + $0x140] sm:$0x3]  ;;  %v7451_v50 = vld [vmem:[#allocation2 + $0x150] sm:$0xff] }
 0x197   : > { %v5212_v42 = vmax.f32 %v5148_v17, 0.0  ;;  %v7431_v34 = vsel %vm951_vm3, %v1000_v57, %v1002_v25  ;;  %1199 = vst [vmem:[#allocation2 + $0x1d0] sm:$0x1] %v1002_v25  ;;  %v1763_v0 = vsel %vm1710_vm4, %v1761_v55, %v1762_v56  ;;  %v2102_v10 = vmul.f32 %v8909_v20, %v2021_v54 }
 0x198   : > { %v5274_v52 = vmin.f32 %v5210_v60, 6.0  ;;  %1197 = vst [vmem:[#allocation2 + $0x1c0] sm:$0xff] %v7431_v34  ;;  %v1005_v48 = vsel %vm951_vm3, %v1001_v12, %v1004_v8  ;;  %v1768_v3 = vsel %vm1710_vm4, %v1762_v56, %v1767_v36  ;;  %v1955_v6 = vadd.f32 %v1763_v0, %v1341_v15  ;;  %v4062_v36 = vld [vmem:[#allocation2 + $0x150] sm:$0xfe] }
 0x199   : > { %v5276_v27 = vmin.f32 %v5212_v42, 6.0  ;;  %1198 = vst.msk [vmem:[#allocation2 + $0x1c8] sm:$0xff] %vm778_vm2, %v1005_v48  ;;  %v1957_v57 = vadd.f32 %v1768_v3, %v1343_v16  ;;  %v2311_v63 = vrot.slane %v2098_v46, 2  ;;  %v2312_v19 = vrot.slane %v2100_v41, 2 }
 0x19a   : > { %1200 = vst.msk [vmem:[#allocation2 + $0x1d8] sm:$0x1] %vm1151_vm7, %v1004_v8  ;;  %v2317_v44 = vrot.slane %v2102_v10, 2  ;;  %v2638_v18 = vmul.f32 %v7284_v58, %v6566_v59  ;;  %v2640_v40 = vmul.f32 %v7286_v37, %v6566_v59  ;;  %v2845_v12 = vmul.f32 %v8893_v31, %v2766_v45  ;;  %v7457_v8 = vld [vmem:[#allocation2 + $0x160] sm:$0xff]  ;;  %v4064_v45 = vld [vmem:[#allocation2 + $0x170] sm:$0x1] }
 0x19b   : > { %v5338_v15 = vpack.c.bf16 %v5276_v27, %v5274_v52  ;;  %v2313_v1 = vsel %vm2260_vm5, %v2311_v63, %v2312_v19  ;;  %v2847_v16 = vmul.f32 %v7286_v37, %v8893_v31  ;;  %v2849_v61 = vmul.f32 %v8893_v31, %v2768_v14  ;;  %v4611_v14 = vld [vmem:[#allocation2 + $0x150] sm:$0xfc] }
 0x19c   : > { %v2318_v32 = vsel %vm2260_vm5, %v2312_v19, %v2317_v44  ;;  %v2505_v54 = vadd.f32 %v2313_v1, %v1955_v6  ;;  %v3057_v46 = vrot.slane %v2845_v12, 1  ;;  %v3394_v17 = vmul.f32 %v8896_v30, %v3315_v9  ;;  %v4613_v12 = vld [vmem:[#allocation2 + $0x170] sm:$0x3] }
 0x19d   : > { %5526 = vmatmul.bf16.vlgmr.msrb.gmra.mxu0 %v5338_v15  ;;  %v2507_v25 = vadd.f32 %v2318_v32, %v1957_v57  ;;  %v3058_v55 = vrot.slane %v2847_v16, 1  ;;  %v3063_v56 = vrot.slane %v2849_v61, 1  ;;  %v3396_v60 = vmul.f32 %v7286_v37, %v8896_v30 }
 0x19e   : > { %v2702_v41 = vadd.f32 %v2638_v18, %v2505_v54  ;;  %v3398_v42 = vmul.f32 %v8896_v30, %v3317_v38  ;;  %v3606_v0 = vrot.slane %v3394_v17, 2  ;;  %v3934_v10 = vmul.f32 %v6645_v29, %v7451_v50  ;;  %v1470_v17 = vld [vmem:[#allocation2 + $0xf8] sm:$0xfe] }
 0x19f   : > { %v2704_v52 = vadd.f32 %v2640_v40, %v2507_v25  ;;  %v3059_v48 = vsel %vm1710_vm4, %v3057_v46, %v3058_v55  ;;  %v3064_v3 = vsel %vm1710_vm4, %v3058_v55, %v3063_v56  ;;  %v3607_v6 = vrot.slane %v3396_v60, 2 }
 0x1a0   : > { %v3251_v27 = vadd.f32 %v3059_v48, %v2702_v41  ;;  %v3612_v57 = vrot.slane %v3398_v42, 2  ;;  %v3936_v63 = vmul.f32 %v6645_v29, %v7457_v8  ;;  %v4141_v19 = vmul.f32 %v6647_v24, %v4062_v36  ;;  %v1472_v36 = vld [vmem:[#allocation2 + $0x118] sm:$0x1] }
 0x1a1   : > { %v3253_v9 = vadd.f32 %v3064_v3, %v2704_v52  ;;  %v3608_v44 = vsel %vm2260_vm5, %v3606_v0, %v3607_v6  ;;  %v4143_v18 = vmul.f32 %v6647_v24, %v7457_v8  ;;  %v4145_v40 = vmul.f32 %v6647_v24, %v4064_v45  ;;  %v2020_v52 = vld [vmem:[#allocation2 + $0xf8] sm:$0xfc] }
 0x1a2   : > { %v3613_v15 = vsel %vm2260_vm5, %v3607_v6, %v3612_v57  ;;  %v3800_v1 = vadd.f32 %v3608_v44, %v3251_v27  ;;  %v4353_v16 = vrot.slane %v4141_v19, 1  ;;  %v4690_v61 = vmul.f32 %v6788_v39, %v4611_v14 }
 0x1a3   : > { %v3802_v38 = vadd.f32 %v3613_v15, %v3253_v9  ;;  %v4354_v32 = vrot.slane %v4143_v18, 1  ;;  %v4359_v54 = vrot.slane %v4145_v40, 1  ;;  %v4692_v46 = vmul.f32 %v6788_v39, %v7457_v8 }
 0x1a4   : > { %v3998_v25 = vadd.f32 %v3934_v10, %v3800_v1  ;;  %v4694_v55 = vmul.f32 %v6788_v39, %v4613_v12  ;;  %v4902_v56 = vrot.slane %v4690_v61, 2  ;;  %v1342_v60 = vmul.f32 %v7217_v5, %v8910_v53 }
 0x1a5   : > { %v4000_v41 = vadd.f32 %v3936_v63, %v3802_v38  ;;  %v4355_v42 = vsel %vm1710_vm4, %v4353_v16, %v4354_v32  ;;  %v4360_v0 = vsel %vm1710_vm4, %v4354_v32, %v4359_v54  ;;  %v4903_v45 = vrot.slane %v4692_v46, 2  ;;  %v2022_v63 = vld [vmem:[#allocation2 + $0x118] sm:$0x3]  ;;  %v2767_v54 = vld [vmem:[#allocation2 + $0x128] sm:$0xfe] }
 0x1a6   : > { %v4547_v48 = vadd.f32 %v4355_v42, %v3998_v25  ;;  %v4908_v3 = vrot.slane %v4694_v55, 2  ;;  %v1344_v6 = vmul.f32 %v7222_v26, %v8910_v53  ;;  %v1549_v10 = vmul.f32 %v6334_v43, %v1470_v17  ;;  %v2769_v42 = vld [vmem:[#allocation2 + $0x148] sm:$0x1] }
 0x1a7   : > { %v4549_v14 = vadd.f32 %v4360_v0, %v4000_v41  ;;  %v4904_v27 = vsel %vm2260_vm5, %v4902_v56, %v4903_v45  ;;  %v1551_v5 = vmul.f32 %v7222_v26, %v6334_v43  ;;  %v1553_v57 = vmul.f32 %v6334_v43, %v1472_v36 }
 0x1a8   : > { %v4909_v19 = vsel %vm2260_vm5, %v4903_v45, %v4908_v3  ;;  %v5096_v9 = vadd.f32 %v4904_v27, %v4547_v48  ;;  %v1764_v44 = vrot.slane %v1549_v10, 1  ;;  %v2099_v18 = vmul.f32 %v6350_v51, %v2020_v52  ;;  %v3316_v3 = vld [vmem:[#allocation2 + $0x128] sm:$0xfc]  ;;  %v525_v10 = vpop.f32.mrf.mxu0 }
 0x1a9   : > { %v5098_v40 = vadd.f32 %v4909_v19, %v4549_v14  ;;  %v1765_v12 = vrot.slane %v1551_v5, 1  ;;  %v1769_v15 = vrot.slane %v1553_v57, 1  ;;  %v2101_v1 = vmul.f32 %v7222_v26, %v6350_v51  ;;  %v614_v57 = vpop.f32.mrf.mxu1 }
 0x1aa   : > { %v5166_v16 = vadd.f32 %v6817_v35, %v5096_v9  ;;  %v2103_v61 = vmul.f32 %v6350_v51, %v2022_v63  ;;  %v2314_v38 = vrot.slane %v2099_v18, 2  ;;  %v2639_v32 = vmul.f32 %v7335_v7, %v8904_v21  ;;  %v7506_v18 = vld [vmem:[#allocation2 + $0x158] sm:$0xff] }
 0x1ab   : > { %v5168_v46 = vadd.f32 %v6817_v35, %v5098_v40  ;;  %v1766_v17 = vsel %vm1710_vm4, %v1764_v44, %v1765_v12  ;;  %v1770_v25 = vsel %vm1710_vm4, %v1765_v12, %v1769_v15  ;;  %v2315_v55 = vrot.slane %v2101_v1, 2 }
 0x1ac   : > { %v5230_v56 = vmax.f32 %v5166_v16, 0.0  ;;  %v1956_v36 = vadd.f32 %v1766_v17, %v1342_v60  ;;  %v1958_v41 = vadd.f32 %v1770_v25, %v1344_v6  ;;  %v2319_v26 = vrot.slane %v2103_v61, 2  ;;  %v3318_v6 = vld [vmem:[#allocation2 + $0x148] sm:$0x3]  ;;  %v4063_v17 = vld [vmem:[#allocation2 + $0x158] sm:$0xfe] }
 0x1ad   : > { %v5232_v0 = vmax.f32 %v5168_v46, 0.0  ;;  %v2316_v45 = vsel %vm2260_vm5, %v2314_v38, %v2315_v55  ;;  %v2641_v52 = vmul.f32 %v7340_v47, %v8904_v21  ;;  %v2846_v48 = vmul.f32 %v8906_v28, %v2767_v54  ;;  %v7511_v16 = vld [vmem:[#allocation2 + $0x168] sm:$0xff] }
 0x1ae   : > { %v5294_v14 = vmin.f32 %v5230_v56, 6.0  ;;  %v2320_v27 = vsel %vm2260_vm5, %v2315_v55, %v2319_v26  ;;  %v2506_v5 = vadd.f32 %v2316_v45, %v1956_v36  ;;  %v2848_v60 = vmul.f32 %v7340_v47, %v8906_v28  ;;  %v4065_v36 = vld [vmem:[#allocation2 + $0x178] sm:$0x1] }
 0x1af   : > { %v5296_v63 = vmin.f32 %v5232_v0, 6.0  ;;  %v2508_v19 = vadd.f32 %v2320_v27, %v1958_v41  ;;  %v2850_v9 = vmul.f32 %v8906_v28, %v2769_v42  ;;  %v3060_v44 = vrot.slane %v2846_v48, 1  ;;  %v4612_v41 = vld [vmem:[#allocation2 + $0x158] sm:$0xfc]  ;;  %v4614_v27 = vld [vmem:[#allocation2 + $0x178] sm:$0x3] }
 0x1b0   : > { %v2703_v40 = vadd.f32 %v2639_v32, %v2506_v5  ;;  %v3061_v12 = vrot.slane %v2848_v60, 1  ;;  %v3395_v15 = vmul.f32 %v8907_v4, %v3316_v3  ;;  %v3397_v1 = vmul.f32 %v7340_v47, %v8907_v4 }
 0x1b1   : > { %v5348_v61 = vpack.c.bf16 %v5296_v63, %v5294_v14  ;;  %v2705_v38 = vadd.f32 %v2641_v52, %v2508_v19  ;;  %v3065_v54 = vrot.slane %v2850_v9, 1  ;;  %v3399_v46 = vmul.f32 %v8907_v4, %v3318_v6 }
 0x1b2   : > { %v3062_v25 = vsel %vm1710_vm4, %v3060_v44, %v3061_v12  ;;  %v3609_v55 = vrot.slane %v3395_v15, 2  ;;  %v3610_v56 = vrot.slane %v3397_v1, 2  ;;  %v3935_v32 = vmul.f32 %v6588_v11, %v7506_v18 }
 0x1b3   : > { %5551 = vmatmul.bf16.gmra.mxu2 %v5348_v61  ;;  %v3066_v26 = vsel %vm1710_vm4, %v3061_v12, %v3065_v54  ;;  %v3252_v42 = vadd.f32 %v3062_v25, %v2703_v40  ;;  %v3614_v0 = vrot.slane %v3399_v46, 2  ;;  %v3937_v45 = vmul.f32 %v6588_v11, %v7511_v16 }
 0x1b4   : > { %v3254_v52 = vadd.f32 %v3066_v26, %v2705_v38  ;;  %v3611_v48 = vsel %vm2260_vm5, %v3609_v55, %v3610_v56  ;;  %v4142_v3 = vmul.f32 %v6590_v13, %v4063_v17  ;;  %v4144_v14 = vmul.f32 %v6590_v13, %v7511_v16  ;;  %v527_v38 = vpop.f32.mrf.mxu0  ;;  %v616_v55 = vpop.f32.mrf.mxu1 }
 0x1b5   : > { %v3615_v5 = vsel %vm2260_vm5, %v3610_v56, %v3614_v0  ;;  %v3801_v60 = vadd.f32 %v3611_v48, %v3252_v42  ;;  %v4146_v6 = vmul.f32 %v6590_v13, %v4065_v36  ;;  %v4691_v63 = vmul.f32 %v6606_v33, %v4612_v41 }
 0x1b6   : > { %v3803_v19 = vadd.f32 %v3615_v5, %v3254_v52  ;;  %v4356_v9 = vrot.slane %v4142_v3, 1  ;;  %v4357_v44 = vrot.slane %v4144_v14, 1  ;;  %v4693_v40 = vmul.f32 %v6606_v33, %v7511_v16 }
 0x1b7   : > { %v3999_v12 = vadd.f32 %v3935_v32, %v3801_v60  ;;  %v4361_v15 = vrot.slane %v4146_v6, 1  ;;  %v4695_v1 = vmul.f32 %v6606_v33, %v4614_v27  ;;  %v4905_v61 = vrot.slane %v4691_v63, 2 }
 0x1b8   : > { %v4001_v54 = vadd.f32 %v3937_v45, %v3803_v19  ;;  %v4358_v46 = vsel %vm1710_vm4, %v4356_v9, %v4357_v44  ;;  %v4906_v17 = vrot.slane %v4693_v40, 2  ;;  %v526_v25 = vadd.f32 %v525_v10, %v6266_v22  ;;  %v1473_v10 = vld [vmem:[#allocation2 + $0x120] sm:$0xfe] }
 0x1b9   : > { %v4362_v56 = vsel %vm1710_vm4, %v4357_v44, %v4361_v15  ;;  %v4548_v36 = vadd.f32 %v4358_v46, %v3999_v12  ;;  %v4910_v41 = vrot.slane %v4695_v1, 2  ;;  %v615_v26 = vadd.f32 %v614_v57, %v6270_v23  ;;  %v1475_v44 = vld [vmem:[#allocation2 + $0x140] sm:$0x1] }
 0x1ba   : > { %v4550_v42 = vadd.f32 %v4362_v56, %v4001_v54  ;;  %v4907_v32 = vsel %vm2260_vm5, %v4905_v61, %v4906_v17  ;;  %v685_v0 = vmax.f32 %v526_v25, 0.0  ;;  %v528_v52 = vadd.f32 %v527_v38, %v6266_v22  ;;  %v2023_v61 = vld [vmem:[#allocation2 + $0x120] sm:$0xfc] }
 0x1bb   : > { %v4911_v45 = vsel %vm2260_vm5, %v4906_v17, %v4910_v41  ;;  %v5097_v48 = vadd.f32 %v4907_v32, %v4548_v36  ;;  %v686_v3 = vmax.f32 %v615_v26, 0.0  ;;  %v617_v14 = vadd.f32 %v616_v55, %v6270_v23  ;;  %v2025_v17 = vld [vmem:[#allocation2 + $0x140] sm:$0x3] }
 0x1bc   : > { %v5099_v27 = vadd.f32 %v4911_v45, %v4550_v42  ;;  %v749_v5 = vmin.f32 %v685_v0, 6.0  ;;  %v687_v60 = vmax.f32 %v528_v52, 0.0  ;;  %v1345_v6 = vmul.f32 %v7284_v58, %v6485_v62 }
 0x1bd   : > { %v5167_v57 = vadd.f32 %v6741_v2, %v5097_v48  ;;  %v750_v63 = vmin.f32 %v686_v3, 6.0  ;;  %v688_v19 = vmax.f32 %v617_v14, 0.0  ;;  %v1347_v9 = vmul.f32 %v7286_v37, %v6485_v62 }
 0x1be   : > { %v5169_v40 = vadd.f32 %v6741_v2, %v5099_v27  ;;  %v1006_v12 = vrot.slane %v749_v5, 7  ;;  %v751_v15 = vmin.f32 %v687_v60, 6.0  ;;  %v1554_v1 = vmul.f32 %v8908_v49, %v1473_v10  ;;  %v2770_v5 = vld [vmem:[#allocation2 + $0x150] sm:$0xfe]  ;;  %v2772_v60 = vld [vmem:[#allocation2 + $0x170] sm:$0x1] }
 0x1bf   : > { %v5231_v38 = vmax.f32 %v5167_v57, 0.0  ;;  %v1007_v54 = vrot.slane %v750_v63, 7  ;;  %v752_v46 = vmin.f32 %v688_v19, 6.0  ;;  %v1556_v58 = vmul.f32 %v7286_v37, %v8908_v49 }
 0x1c0   : > { %v5233_v25 = vmax.f32 %v5169_v40, 0.0  ;;  %1201 = vst [vmem:[#allocation2 + $0x1e0] sm:$0xfe] %v1006_v12  ;;  %v1008_v55 = vrot.slane %v751_v15, 7  ;;  %v1558_v56 = vmul.f32 %v8908_v49, %v1475_v44  ;;  %v1771_v36 = vrot.slane %v1554_v1, 1 }
 0x1c1   : > { %v5295_v41 = vmin.f32 %v5231_v38, 6.0  ;;  %1202 = vst.msk [vmem:[#allocation2 + $0x1e8] sm:$0xfe] %vm1146_vm1, %v1007_v54  ;;  %v1010_v26 = vrot.slane %v752_v46, 7  ;;  %v1772_v42 = vrot.slane %v1556_v58, 1  ;;  %v2104_v32 = vmul.f32 %v8909_v20, %v2023_v61 }
 0x1c2   : > { %v5297_v0 = vmin.f32 %v5233_v25, 6.0  ;;  %v7551_v52 = vsel %vm951_vm3, %v1006_v12, %v1008_v55  ;;  %1205 = vst [vmem:[#allocation2 + $0x200] sm:$0x1] %v1008_v55  ;;  %v1777_v45 = vrot.slane %v1558_v56, 1  ;;  %v2106_v48 = vmul.f32 %v7286_v37, %v8909_v20  ;;  %v3319_v40 = vld [vmem:[#allocation2 + $0x150] sm:$0xfc] }
 0x1c3   : > { %1203 = vst [vmem:[#allocation2 + $0x1f0] sm:$0xff] %v7551_v52  ;;  %v1011_v3 = vsel %vm951_vm3, %v1007_v54, %v1010_v26  ;;  %v1773_v14 = vsel %vm1710_vm4, %v1771_v36, %v1772_v42  ;;  %v2108_v10 = vmul.f32 %v8909_v20, %v2025_v17  ;;  %v2321_v27 = vrot.slane %v2104_v32, 2  ;;  %v3321_v46 = vld [vmem:[#allocation2 + $0x170] sm:$0x3]  ;;  %v7576_v55 = vld [vmem:[#allocation2 + $0x180] sm:$0xff] }
 0x1c4   : > { %v5349_v57 = vpack.c.bf16 %v5297_v0, %v5295_v41  ;;  %1204 = vst.msk [vmem:[#allocation2 + $0x1f8] sm:$0xff] %vm778_vm2, %v1011_v3  ;;  %v1778_v63 = vsel %vm1710_vm4, %v1772_v42, %v1777_v45  ;;  %v1959_v19 = vadd.f32 %v1773_v14, %v1345_v6  ;;  %v2322_v44 = vrot.slane %v2106_v48, 2  ;;  %v7578_v42 = vld [vmem:[#allocation2 + $0x190] sm:$0xff]  ;;  %v4066_v3 = vld [vmem:[#allocation2 + $0x180] sm:$0xfe] }
 0x1c5   : > { %1206 = vst.msk [vmem:[#allocation2 + $0x208] sm:$0x1] %vm1151_vm7, %v1010_v26  ;;  %v1961_v37 = vadd.f32 %v1778_v63, %v1347_v9  ;;  %v2327_v12 = vrot.slane %v2108_v10, 2  ;;  %v2642_v15 = vmul.f32 %v7451_v50, %v6566_v59  ;;  %v2644_v1 = vmul.f32 %v7457_v8, %v6566_v59  ;;  %v4068_v14 = vld [vmem:[#allocation2 + $0x1a0] sm:$0x1] }
 0x1c6   : > { %6054 = vmatmul.msk.bf16.gmra.mxu3 %vm778_vm2, %v5349_v57  ;;  %v2323_v61 = vsel %vm2260_vm5, %v2321_v27, %v2322_v44  ;;  %v2851_v38 = vmul.f32 %v8893_v31, %v2770_v5  ;;  %v2853_v6 = vmul.f32 %v7457_v8, %v8893_v31  ;;  %v2855_v54 = vmul.f32 %v8893_v31, %v2772_v60  ;;  %v4615_v57 = vld [vmem:[#allocation2 + $0x180] sm:$0xfc] }
 0x1c7   : > { %v2328_v9 = vsel %vm2260_vm5, %v2322_v44, %v2327_v12  ;;  %v2509_v58 = vadd.f32 %v2323_v61, %v1959_v19  ;;  %v3400_v17 = vmul.f32 %v8896_v30, %v3319_v40  ;;  %v3402_v25 = vmul.f32 %v7457_v8, %v8896_v30  ;;  %v4617_v61 = vld [vmem:[#allocation2 + $0x1a0] sm:$0x3] }
 0x1c8   : > { %v2511_v56 = vadd.f32 %v2328_v9, %v1961_v37  ;;  %v3067_v36 = vrot.slane %v2851_v38, 1  ;;  %v3068_v41 = vrot.slane %v2853_v6, 1  ;;  %v3073_v26 = vrot.slane %v2855_v54, 1 }
 0x1c9   : > { %v2706_v32 = vadd.f32 %v2642_v15, %v2509_v58  ;;  %v3404_v0 = vmul.f32 %v8896_v30, %v3321_v46  ;;  %v3616_v45 = vrot.slane %v3400_v17, 2  ;;  %v3617_v48 = vrot.slane %v3402_v25, 2 }
 0x1ca   : > { %v2708_v10 = vadd.f32 %v2644_v1, %v2511_v56  ;;  %v3069_v27 = vsel %vm1710_vm4, %v3067_v36, %v3068_v41  ;;  %v3074_v5 = vsel %vm1710_vm4, %v3068_v41, %v3073_v26  ;;  %v3938_v60 = vmul.f32 %v6645_v29, %v7576_v55 }
 0x1cb   : > { %v3255_v63 = vadd.f32 %v3069_v27, %v2706_v32  ;;  %v3618_v19 = vsel %vm2260_vm5, %v3616_v45, %v3617_v48  ;;  %v3622_v44 = vrot.slane %v3404_v0, 2  ;;  %v3940_v40 = vmul.f32 %v6645_v29, %v7578_v42  ;;  %v1474_v32 = vld [vmem:[#allocation2 + $0x128] sm:$0xfe]  ;;  %v1476_v0 = vld [vmem:[#allocation2 + $0x148] sm:$0x1] }
 0x1cc   : > { %v3257_v37 = vadd.f32 %v3074_v5, %v2708_v10  ;;  %v4147_v12 = vmul.f32 %v6647_v24, %v4066_v3  ;;  %v4149_v15 = vmul.f32 %v6647_v24, %v7578_v42  ;;  %v4151_v1 = vmul.f32 %v6647_v24, %v4068_v14  ;;  %v2024_v10 = vld [vmem:[#allocation2 + $0x128] sm:$0xfc] }
 0x1cd   : > { %v3623_v38 = vsel %vm2260_vm5, %v3617_v48, %v3622_v44  ;;  %v3804_v6 = vadd.f32 %v3618_v19, %v3255_v63  ;;  %v4696_v54 = vmul.f32 %v6788_v39, %v4615_v57  ;;  %v4698_v46 = vmul.f32 %v6788_v39, %v7578_v42 }
 0x1ce   : > { %v3806_v9 = vadd.f32 %v3623_v38, %v3257_v37  ;;  %v4363_v58 = vrot.slane %v4147_v12, 1  ;;  %v4364_v17 = vrot.slane %v4149_v15, 1  ;;  %v4369_v25 = vrot.slane %v4151_v1, 1  ;;  %v2026_v37 = vld [vmem:[#allocation2 + $0x148] sm:$0x3] }
 0x1cf   : > { %v4002_v56 = vadd.f32 %v3938_v60, %v3804_v6  ;;  %v4700_v36 = vmul.f32 %v6788_v39, %v4617_v61  ;;  %v4912_v41 = vrot.slane %v4696_v54, 2  ;;  %v4913_v26 = vrot.slane %v4698_v46, 2 }
 0x1d0   : > { %v4004_v45 = vadd.f32 %v3940_v40, %v3806_v9  ;;  %v4365_v48 = vsel %vm1710_vm4, %v4363_v58, %v4364_v17  ;;  %v4370_v3 = vsel %vm1710_vm4, %v4364_v17, %v4369_v25  ;;  %v1346_v14 = vmul.f32 %v7335_v7, %v8910_v53  ;;  %v2771_v25 = vld [vmem:[#allocation2 + $0x158] sm:$0xfe] }
 0x1d1   : > { %v4551_v27 = vadd.f32 %v4365_v48, %v4002_v56  ;;  %v4914_v5 = vsel %vm2260_vm5, %v4912_v41, %v4913_v26  ;;  %v4918_v57 = vrot.slane %v4700_v36, 2  ;;  %v1348_v60 = vmul.f32 %v7340_v47, %v8910_v53 }
 0x1d2   : > { %v4553_v63 = vadd.f32 %v4370_v3, %v4004_v45  ;;  %v1555_v19 = vmul.f32 %v6334_v43, %v1474_v32  ;;  %v1557_v44 = vmul.f32 %v7340_v47, %v6334_v43  ;;  %v1559_v40 = vmul.f32 %v6334_v43, %v1476_v0  ;;  %v3320_v3 = vld [vmem:[#allocation2 + $0x158] sm:$0xfc] }
 0x1d3   : > { %v4919_v12 = vsel %vm2260_vm5, %v4913_v26, %v4918_v57  ;;  %v5100_v7 = vadd.f32 %v4914_v5, %v4551_v27  ;;  %v2105_v15 = vmul.f32 %v6350_v51, %v2024_v10  ;;  %v2107_v1 = vmul.f32 %v7340_v47, %v6350_v51  ;;  %v2773_v26 = vld [vmem:[#allocation2 + $0x178] sm:$0x1] }
 0x1d4   : > { %v5102_v61 = vadd.f32 %v4919_v12, %v4553_v63  ;;  %v1774_v38 = vrot.slane %v1555_v19, 1  ;;  %v1775_v6 = vrot.slane %v1557_v44, 1  ;;  %v1779_v54 = vrot.slane %v1559_v40, 1  ;;  %v530_v63 = vpop.f32.mrf.mxu0 }
 0x1d5   : > { %v5170_v46 = vadd.f32 %v6817_v35, %v5100_v7  ;;  %v2109_v9 = vmul.f32 %v6350_v51, %v2026_v37  ;;  %v2324_v58 = vrot.slane %v2105_v15, 2  ;;  %v2325_v17 = vrot.slane %v2107_v1, 2 }
 0x1d6   : > { %v5172_v56 = vadd.f32 %v6817_v35, %v5102_v61  ;;  %v1776_v36 = vsel %vm1710_vm4, %v1774_v38, %v1775_v6  ;;  %v1780_v41 = vsel %vm1710_vm4, %v1775_v6, %v1779_v54  ;;  %v2643_v47 = vmul.f32 %v7506_v18, %v8904_v21  ;;  %v7628_v61 = vld [vmem:[#allocation2 + $0x188] sm:$0xff] }
 0x1d7   : > { %v5234_v32 = vmax.f32 %v5170_v46, 0.0  ;;  %v1960_v0 = vadd.f32 %v1776_v36, %v1346_v14  ;;  %v1962_v45 = vadd.f32 %v1780_v41, %v1348_v60  ;;  %v2326_v48 = vsel %vm2260_vm5, %v2324_v58, %v2325_v17  ;;  %v3322_v14 = vld [vmem:[#allocation2 + $0x178] sm:$0x3]  ;;  %v619_v60 = vpop.f32.mrf.mxu1  ;;  %v4067_v41 = vld [vmem:[#allocation2 + $0x188] sm:$0xfe] }
 0x1d8   : > { %v5236_v10 = vmax.f32 %v5172_v56, 0.0  ;;  %v2329_v27 = vrot.slane %v2109_v9, 2  ;;  %v2645_v5 = vmul.f32 %v7511_v16, %v8904_v21  ;;  %v2852_v57 = vmul.f32 %v8906_v28, %v2771_v25  ;;  %v7630_v9 = vld [vmem:[#allocation2 + $0x198] sm:$0xff] }
 0x1d9   : > { %v5298_v19 = vmin.f32 %v5234_v32, 6.0  ;;  %v2510_v44 = vadd.f32 %v2326_v48, %v1960_v0  ;;  %v2854_v40 = vmul.f32 %v7511_v16, %v8906_v28  ;;  %v2856_v37 = vmul.f32 %v8906_v28, %v2773_v26 }
 0x1da   : > { %v5300_v12 = vmin.f32 %v5236_v10, 6.0  ;;  %v2330_v7 = vsel %vm2260_vm5, %v2325_v17, %v2329_v27  ;;  %v3070_v15 = vrot.slane %v2852_v57, 1  ;;  %v3401_v1 = vmul.f32 %v8907_v4, %v3320_v3  ;;  %v4069_v17 = vld [vmem:[#allocation2 + $0x1a8] sm:$0x1] }
 0x1db   : > { %v2512_v38 = vadd.f32 %v2330_v7, %v1962_v45  ;;  %v2707_v6 = vadd.f32 %v2643_v47, %v2510_v44  ;;  %v3071_v54 = vrot.slane %v2854_v40, 1  ;;  %v3075_v46 = vrot.slane %v2856_v37, 1  ;;  %v4616_v45 = vld [vmem:[#allocation2 + $0x188] sm:$0xfc]  ;;  %v4618_v40 = vld [vmem:[#allocation2 + $0x1a8] sm:$0x3] }
 0x1dc   : > { %v5350_v58 = vpack.c.bf16 %v5300_v12, %v5298_v19  ;;  %v3403_v25 = vmul.f32 %v7511_v16, %v8907_v4  ;;  %v3405_v56 = vmul.f32 %v8907_v4, %v3322_v14  ;;  %v3619_v36 = vrot.slane %v3401_v1, 2 }
 0x1dd   : > { %v2709_v26 = vadd.f32 %v2645_v5, %v2512_v38  ;;  %v3072_v32 = vsel %vm1710_vm4, %v3070_v15, %v3071_v54  ;;  %v3076_v0 = vsel %vm1710_vm4, %v3071_v54, %v3075_v46  ;;  %v3939_v47 = vmul.f32 %v6588_v11, %v7628_v61 }
 0x1de   : > { %5556 = vmatmul.bf16.gmra.mxu2 %v5350_v58  ;;  %v3256_v48 = vadd.f32 %v3072_v32, %v2707_v6  ;;  %v3620_v3 = vrot.slane %v3403_v25, 2  ;;  %v3624_v10 = vrot.slane %v3405_v56, 2  ;;  %v3941_v27 = vmul.f32 %v6588_v11, %v7630_v9  ;;  %v532_v56 = vpop.f32.mrf.mxu0 }
 0x1df   : > { %v3258_v57 = vadd.f32 %v3076_v0, %v2709_v26  ;;  %v4148_v19 = vmul.f32 %v6590_v13, %v4067_v41  ;;  %v4150_v5 = vmul.f32 %v6590_v13, %v7630_v9  ;;  %v4152_v44 = vmul.f32 %v6590_v13, %v4069_v17  ;;  %v621_v32 = vpop.f32.mrf.mxu1 }
 0x1e0   : > { %v3621_v37 = vsel %vm2260_vm5, %v3619_v36, %v3620_v3  ;;  %v3625_v14 = vsel %vm2260_vm5, %v3620_v3, %v3624_v10  ;;  %v4697_v12 = vmul.f32 %v6606_v33, %v4616_v45  ;;  %v4699_v7 = vmul.f32 %v6606_v33, %v7630_v9 }
 0x1e1   : > { %v3805_v15 = vadd.f32 %v3621_v37, %v3256_v48  ;;  %v3807_v1 = vadd.f32 %v3625_v14, %v3258_v57  ;;  %v4366_v38 = vrot.slane %v4148_v19, 1  ;;  %v4367_v6 = vrot.slane %v4150_v5, 1 }
 0x1e2   : > { %v4371_v54 = vrot.slane %v4152_v44, 1  ;;  %v4701_v46 = vmul.f32 %v6606_v33, %v4618_v40  ;;  %v4915_v58 = vrot.slane %v4697_v12, 2  ;;  %v4916_v25 = vrot.slane %v4699_v7, 2  ;;  %v1477_v44 = vld [vmem:[#allocation2 + $0x150] sm:$0xfe] }
 0x1e3   : > { %v4003_v41 = vadd.f32 %v3939_v47, %v3805_v15  ;;  %v4005_v17 = vadd.f32 %v3941_v27, %v3807_v1  ;;  %v4368_v36 = vsel %vm1710_vm4, %v4366_v38, %v4367_v6  ;;  %v531_v26 = vadd.f32 %v530_v63, %v6266_v22  ;;  %v1479_v15 = vld [vmem:[#allocation2 + $0x170] sm:$0x1] }
 0x1e4   : > { %v4372_v0 = vsel %vm1710_vm4, %v4367_v6, %v4371_v54  ;;  %v4917_v45 = vsel %vm2260_vm5, %v4915_v58, %v4916_v25  ;;  %v4920_v48 = vrot.slane %v4701_v46, 2  ;;  %v620_v3 = vadd.f32 %v619_v60, %v6270_v23 }
 0x1e5   : > { %v4552_v10 = vadd.f32 %v4368_v36, %v4003_v41  ;;  %v4554_v57 = vadd.f32 %v4372_v0, %v4005_v17  ;;  %v689_v19 = vmax.f32 %v531_v26, 0.0  ;;  %v533_v5 = vadd.f32 %v532_v56, %v6266_v22  ;;  %v2027_v56 = vld [vmem:[#allocation2 + $0x150] sm:$0xfc]  ;;  %v2029_v26 = vld [vmem:[#allocation2 + $0x170] sm:$0x3] }
 0x1e6   : > { %v4921_v47 = vsel %vm2260_vm5, %v4916_v25, %v4920_v48  ;;  %v690_v27 = vmax.f32 %v620_v3, 0.0  ;;  %v622_v40 = vadd.f32 %v621_v32, %v6270_v23  ;;  %v1349_v63 = vmul.f32 %v7451_v50, %v6485_v62 }
 0x1e7   : > { %v5101_v37 = vadd.f32 %v4917_v45, %v4552_v10  ;;  %v5103_v14 = vadd.f32 %v4921_v47, %v4554_v57  ;;  %v753_v12 = vmin.f32 %v689_v19, 6.0  ;;  %v691_v7 = vmax.f32 %v533_v5, 0.0 }
 0x1e8   : > { %v754_v60 = vmin.f32 %v690_v27, 6.0  ;;  %v692_v1 = vmax.f32 %v622_v40, 0.0  ;;  %v1351_v38 = vmul.f32 %v7457_v8, %v6485_v62  ;;  %v1560_v6 = vmul.f32 %v8908_v49, %v1477_v44  ;;  %v2774_v40 = vld [vmem:[#allocation2 + $0x180] sm:$0xfe] }
 0x1e9   : > { %v5171_v54 = vadd.f32 %v6741_v2, %v5101_v37  ;;  %v5173_v46 = vadd.f32 %v6741_v2, %v5103_v14  ;;  %v1012_v58 = vrot.slane %v753_v12, 7  ;;  %v755_v25 = vmin.f32 %v691_v7, 6.0 }
 0x1ea   : > { %v1013_v50 = vrot.slane %v754_v60, 7  ;;  %v756_v41 = vmin.f32 %v692_v1, 6.0  ;;  %v1562_v17 = vmul.f32 %v7457_v8, %v8908_v49  ;;  %v1564_v36 = vmul.f32 %v8908_v49, %v1479_v15  ;;  %v2776_v15 = vld [vmem:[#allocation2 + $0x1a0] sm:$0x1]  ;;  %v3323_v60 = vld [vmem:[#allocation2 + $0x180] sm:$0xfc] }
 0x1eb   : > { %v5235_v32 = vmax.f32 %v5171_v54, 0.0  ;;  %v5237_v0 = vmax.f32 %v5173_v46, 0.0  ;;  %1207 = vst [vmem:[#allocation2 + $0x210] sm:$0xfe] %v1012_v58  ;;  %v1014_v45 = vrot.slane %v755_v25, 7  ;;  %v1781_v48 = vrot.slane %v1560_v6, 1 }
 0x1ec   : > { %1208 = vst.msk [vmem:[#allocation2 + $0x218] sm:$0xfe] %vm1146_vm1, %v1013_v50  ;;  %v1016_v3 = vrot.slane %v756_v41, 7  ;;  %v1782_v10 = vrot.slane %v1562_v17, 1  ;;  %v1787_v57 = vrot.slane %v1564_v36, 1  ;;  %v2110_v19 = vmul.f32 %v8909_v20, %v2027_v56 }
 0x1ed   : > { %v5299_v5 = vmin.f32 %v5235_v32, 6.0  ;;  %v5301_v44 = vmin.f32 %v5237_v0, 6.0  ;;  %v7672_v47 = vsel %vm951_vm3, %v1012_v58, %v1014_v45  ;;  %1211 = vst [vmem:[#allocation2 + $0x230] sm:$0x1] %v1014_v45  ;;  %v2112_v27 = vmul.f32 %v7457_v8, %v8909_v20  ;;  %v3325_v8 = vld [vmem:[#allocation2 + $0x1a0] sm:$0x3] }
 0x1ee   : > { %1209 = vst [vmem:[#allocation2 + $0x220] sm:$0xff] %v7672_v47  ;;  %v1017_v37 = vsel %vm951_vm3, %v1013_v50, %v1016_v3  ;;  %v1783_v14 = vsel %vm1710_vm4, %v1781_v48, %v1782_v10  ;;  %v1788_v12 = vsel %vm1710_vm4, %v1782_v10, %v1787_v57  ;;  %v2114_v7 = vmul.f32 %v8909_v20, %v2029_v26  ;;  %v7698_v45 = vld [vmem:[#allocation2 + $0x1b0] sm:$0xff] }
 0x1ef   : > { %v5351_v1 = vpack.c.bf16 %v5301_v44, %v5299_v5  ;;  %1210 = vst.msk [vmem:[#allocation2 + $0x228] sm:$0xff] %vm778_vm2, %v1017_v37  ;;  %v1963_v6 = vadd.f32 %v1783_v14, %v1349_v63  ;;  %v1965_v54 = vadd.f32 %v1788_v12, %v1351_v38  ;;  %v2331_v46 = vrot.slane %v2110_v19, 2 }
 0x1f0   : > { %1212 = vst.msk [vmem:[#allocation2 + $0x238] sm:$0x1] %vm1151_vm7, %v1016_v3  ;;  %v2332_v58 = vrot.slane %v2112_v27, 2  ;;  %v2337_v25 = vrot.slane %v2114_v7, 2  ;;  %v2646_v56 = vmul.f32 %v7576_v55, %v6566_v59  ;;  %v2648_v50 = vmul.f32 %v7578_v42, %v6566_v59 }
 0x1f1   : > { %6055 = vmatmul.msk.bf16.gmra.mxu3 %vm778_vm2, %v5351_v1  ;;  %v2857_v41 = vmul.f32 %v8893_v31, %v2774_v40  ;;  %v2859_v63 = vmul.f32 %v7578_v42, %v8893_v31  ;;  %v2861_v38 = vmul.f32 %v8893_v31, %v2776_v15  ;;  %v3406_v17 = vmul.f32 %v8896_v30, %v3323_v60  ;;  %v4070_v40 = vld [vmem:[#allocation2 + $0x1b0] sm:$0xfe]  ;;  %v4072_v15 = vld [vmem:[#allocation2 + $0x1d0] sm:$0x1] }
 0x1f2   : > { %v2333_v36 = vsel %vm2260_vm5, %v2331_v46, %v2332_v58  ;;  %v2338_v26 = vsel %vm2260_vm5, %v2332_v58, %v2337_v25  ;;  %v3408_v32 = vmul.f32 %v7578_v42, %v8896_v30  ;;  %v3410_v0 = vmul.f32 %v8896_v30, %v3325_v8  ;;  %v4619_v60 = vld [vmem:[#allocation2 + $0x1b0] sm:$0xfc]  ;;  %v4621_v1 = vld [vmem:[#allocation2 + $0x1d0] sm:$0x3] }
 0x1f3   : > { %v2513_v48 = vadd.f32 %v2333_v36, %v1963_v6  ;;  %v2515_v3 = vadd.f32 %v2338_v26, %v1965_v54  ;;  %v3077_v10 = vrot.slane %v2857_v41, 1  ;;  %v3078_v57 = vrot.slane %v2859_v63, 1 }
 0x1f4   : > { %v3083_v19 = vrot.slane %v2861_v38, 1  ;;  %v3626_v5 = vrot.slane %v3406_v17, 2  ;;  %v3627_v44 = vrot.slane %v3408_v32, 2  ;;  %v3632_v27 = vrot.slane %v3410_v0, 2 }
 0x1f5   : > { %v2710_v37 = vadd.f32 %v2646_v56, %v2513_v48  ;;  %v2712_v14 = vadd.f32 %v2648_v50, %v2515_v3  ;;  %v3079_v12 = vsel %vm1710_vm4, %v3077_v10, %v3078_v57  ;;  %v3942_v7 = vmul.f32 %v6645_v29, %v7698_v45 }
 0x1f6   : > { %v3084_v6 = vsel %vm1710_vm4, %v3078_v57, %v3083_v19  ;;  %v3628_v54 = vsel %vm2260_vm5, %v3626_v5, %v3627_v44  ;;  %v3633_v46 = vsel %vm2260_vm5, %v3627_v44, %v3632_v27  ;;  %v3944_v8 = vmul.f32 %v6645_v29, %v7431_v34  ;;  %v1478_v19 = vld [vmem:[#allocation2 + $0x158] sm:$0xfe] }
 0x1f7   : > { %v3259_v58 = vadd.f32 %v3079_v12, %v2710_v37  ;;  %v3261_v25 = vadd.f32 %v3084_v6, %v2712_v14  ;;  %v4153_v56 = vmul.f32 %v6647_v24, %v4070_v40  ;;  %v4155_v50 = vmul.f32 %v6647_v24, %v7431_v34  ;;  %v1480_v37 = vld [vmem:[#allocation2 + $0x178] sm:$0x1] }
 0x1f8   : > { %v4157_v41 = vmul.f32 %v6647_v24, %v4072_v15  ;;  %v4702_v63 = vmul.f32 %v6788_v39, %v4619_v60  ;;  %v4704_v38 = vmul.f32 %v6788_v39, %v7431_v34  ;;  %v4706_v17 = vmul.f32 %v6788_v39, %v4621_v1  ;;  %v2028_v34 = vld [vmem:[#allocation2 + $0x158] sm:$0xfc]  ;;  %v2030_v14 = vld [vmem:[#allocation2 + $0x178] sm:$0x3] }
 0x1f9   : > { %v3808_v36 = vadd.f32 %v3628_v54, %v3259_v58  ;;  %v3810_v26 = vadd.f32 %v3633_v46, %v3261_v25  ;;  %v4373_v32 = vrot.slane %v4153_v56, 1  ;;  %v4374_v0 = vrot.slane %v4155_v50, 1 }
 0x1fa   : > { %v4379_v48 = vrot.slane %v4157_v41, 1  ;;  %v4922_v3 = vrot.slane %v4702_v63, 2  ;;  %v4923_v10 = vrot.slane %v4704_v38, 2  ;;  %v4928_v57 = vrot.slane %v4706_v17, 2 }
 0x1fb   : > { %v4006_v5 = vadd.f32 %v3942_v7, %v3808_v36  ;;  %v4008_v44 = vadd.f32 %v3944_v8, %v3810_v26  ;;  %v4375_v27 = vsel %vm1710_vm4, %v4373_v32, %v4374_v0  ;;  %v1350_v40 = vmul.f32 %v7506_v18, %v8910_v53 }
 0x1fc   : > { %v4380_v12 = vsel %vm1710_vm4, %v4374_v0, %v4379_v48  ;;  %v4924_v15 = vsel %vm2260_vm5, %v4922_v3, %v4923_v10  ;;  %v4929_v60 = vsel %vm2260_vm5, %v4923_v10, %v4928_v57  ;;  %v1352_v1 = vmul.f32 %v7511_v16, %v8910_v53  ;;  %v2777_v10 = vld [vmem:[#allocation2 + $0x1a8] sm:$0x1] }
 0x1fd   : > { %v4555_v6 = vadd.f32 %v4375_v27, %v4006_v5  ;;  %v4557_v7 = vadd.f32 %v4380_v12, %v4008_v44  ;;  %v1561_v54 = vmul.f32 %v6334_v43, %v1478_v19  ;;  %v1563_v46 = vmul.f32 %v7511_v16, %v6334_v43  ;;  %v3324_v27 = vld [vmem:[#allocation2 + $0x188] sm:$0xfc] }
 0x1fe   : > { %v1565_v18 = vmul.f32 %v6334_v43, %v1480_v37  ;;  %v2111_v8 = vmul.f32 %v6350_v51, %v2028_v34  ;;  %v2113_v58 = vmul.f32 %v7511_v16, %v6350_v51  ;;  %v2115_v25 = vmul.f32 %v6350_v51, %v2030_v14  ;;  %v2775_v16 = vld [vmem:[#allocation2 + $0x188] sm:$0xfe] }
 0x1ff   : > { %v5104_v56 = vadd.f32 %v4924_v15, %v4555_v6  ;;  %v5106_v50 = vadd.f32 %v4929_v60, %v4557_v7  ;;  %v1784_v41 = vrot.slane %v1561_v54, 1  ;;  %v1785_v63 = vrot.slane %v1563_v46, 1  ;;  %v535_v15 = vpop.f32.mrf.mxu0  ;;  %v3326_v54 = vld [vmem:[#allocation2 + $0x1a8] sm:$0x3]  ;;  %v624_v46 = vpop.f32.mrf.mxu1 }
 0x200   : > { %v1789_v38 = vrot.slane %v1565_v18, 1  ;;  %v2334_v17 = vrot.slane %v2111_v8, 2  ;;  %v2335_v36 = vrot.slane %v2113_v58, 2  ;;  %v2339_v26 = vrot.slane %v2115_v25, 2 }
 0x201   : > { %v5174_v32 = vadd.f32 %v6817_v35, %v5104_v56  ;;  %v5176_v0 = vadd.f32 %v6817_v35, %v5106_v50  ;;  %v1786_v48 = vsel %vm1710_vm4, %v1784_v41, %v1785_v63  ;;  %v2647_v3 = vmul.f32 %v7628_v61, %v8904_v21 }
 0x202   : > { %v1790_v57 = vsel %vm1710_vm4, %v1785_v63, %v1789_v38  ;;  %v1964_v19 = vadd.f32 %v1786_v48, %v1350_v40  ;;  %v2336_v5 = vsel %vm2260_vm5, %v2334_v17, %v2335_v36  ;;  %v2340_v44 = vsel %vm2260_vm5, %v2335_v36, %v2339_v26  ;;  %v4073_v48 = vld [vmem:[#allocation2 + $0x1d8] sm:$0x1] }
 0x203   : > { %v5238_v37 = vmax.f32 %v5174_v32, 0.0  ;;  %v5240_v34 = vmax.f32 %v5176_v0, 0.0  ;;  %v1966_v14 = vadd.f32 %v1790_v57, %v1352_v1  ;;  %v2649_v12 = vmul.f32 %v7630_v9, %v8904_v21  ;;  %v7747_v1 = vld [vmem:[#allocation2 + $0x1b8] sm:$0xff]  ;;  %v7752_v32 = vld [vmem:[#allocation2 + $0x1c8] sm:$0xff] }
 0x204   : > { %v2514_v60 = vadd.f32 %v2336_v5, %v1964_v19  ;;  %v2858_v6 = vmul.f32 %v8906_v28, %v2775_v16  ;;  %v2860_v7 = vmul.f32 %v7630_v9, %v8906_v28  ;;  %v2862_v40 = vmul.f32 %v8906_v28, %v2777_v10  ;;  %v4071_v0 = vld [vmem:[#allocation2 + $0x1b8] sm:$0xfe] }
 0x205   : > { %v5302_v18 = vmin.f32 %v5238_v37, 6.0  ;;  %v5304_v8 = vmin.f32 %v5240_v34, 6.0  ;;  %v2516_v58 = vadd.f32 %v2340_v44, %v1966_v14  ;;  %v3407_v25 = vmul.f32 %v8907_v4, %v3324_v27  ;;  %v4620_v19 = vld [vmem:[#allocation2 + $0x1b8] sm:$0xfc] }
 0x206   : > { %v2711_v56 = vadd.f32 %v2647_v3, %v2514_v60  ;;  %v3080_v50 = vrot.slane %v2858_v6, 1  ;;  %v3081_v41 = vrot.slane %v2860_v7, 1  ;;  %v3085_v63 = vrot.slane %v2862_v40, 1  ;;  %v4622_v6 = vld [vmem:[#allocation2 + $0x1d8] sm:$0x3] }
 0x207   : > { %v5352_v38 = vpack.c.bf16 %v5304_v8, %v5302_v18  ;;  %v2713_v17 = vadd.f32 %v2649_v12, %v2516_v58  ;;  %v3409_v36 = vmul.f32 %v7630_v9, %v8907_v4  ;;  %v3411_v26 = vmul.f32 %v8907_v4, %v3326_v54 }
 0x208   : > { %v3082_v16 = vsel %vm1710_vm4, %v3080_v50, %v3081_v41  ;;  %v3086_v10 = vsel %vm1710_vm4, %v3081_v41, %v3085_v63  ;;  %v3629_v57 = vrot.slane %v3407_v25, 2  ;;  %v3943_v3 = vmul.f32 %v6588_v11, %v7747_v1 }
 0x209   : > { %5561 = vmatmul.bf16.gmra.mxu2 %v5352_v38  ;;  %v3260_v5 = vadd.f32 %v3082_v16, %v2711_v56  ;;  %v3262_v44 = vadd.f32 %v3086_v10, %v2713_v17  ;;  %v3630_v27 = vrot.slane %v3409_v36, 2  ;;  %v3634_v37 = vrot.slane %v3411_v26, 2  ;;  %v537_v17 = vpop.f32.mrf.mxu0  ;;  %v626_v16 = vpop.f32.mrf.mxu1 }
 0x20a   : > { %v3945_v34 = vmul.f32 %v6588_v11, %v7752_v32  ;;  %v4154_v14 = vmul.f32 %v6590_v13, %v4071_v0  ;;  %v4156_v12 = vmul.f32 %v6590_v13, %v7752_v32  ;;  %v4158_v60 = vmul.f32 %v6590_v13, %v4073_v48 }
 0x20b   : > { %v3631_v7 = vsel %vm2260_vm5, %v3629_v57, %v3630_v27  ;;  %v3635_v40 = vsel %vm2260_vm5, %v3630_v27, %v3634_v37  ;;  %v4703_v54 = vmul.f32 %v6606_v33, %v4620_v19  ;;  %v4705_v18 = vmul.f32 %v6606_v33, %v7752_v32 }
 0x20c   : > { %v3809_v8 = vadd.f32 %v3631_v7, %v3260_v5  ;;  %v3811_v58 = vadd.f32 %v3635_v40, %v3262_v44  ;;  %v4376_v25 = vrot.slane %v4154_v14, 1  ;;  %v4377_v56 = vrot.slane %v4156_v12, 1  ;;  %v1481_v12 = vld [vmem:[#allocation2 + $0x180] sm:$0xfe] }
 0x20d   : > { %v4381_v50 = vrot.slane %v4158_v60, 1  ;;  %v4707_v41 = vmul.f32 %v6606_v33, %v4622_v6  ;;  %v4925_v63 = vrot.slane %v4703_v54, 2  ;;  %v4926_v38 = vrot.slane %v4705_v18, 2  ;;  %v1483_v18 = vld [vmem:[#allocation2 + $0x1a0] sm:$0x1] }
 0x20e   : > { %v4007_v36 = vadd.f32 %v3943_v3, %v3809_v8  ;;  %v4009_v26 = vadd.f32 %v3945_v34, %v3811_v58  ;;  %v4378_v0 = vsel %vm1710_vm4, %v4376_v25, %v4377_v56  ;;  %v536_v48 = vadd.f32 %v535_v15, %v6266_v22 }
 0x20f   : > { %v4382_v10 = vsel %vm1710_vm4, %v4377_v56, %v4381_v50  ;;  %v4927_v57 = vsel %vm2260_vm5, %v4925_v63, %v4926_v38  ;;  %v4930_v19 = vrot.slane %v4707_v41, 2  ;;  %v625_v5 = vadd.f32 %v624_v46, %v6270_v23 }
 0x210   : > { %v4556_v44 = vadd.f32 %v4378_v0, %v4007_v36  ;;  %v4558_v27 = vadd.f32 %v4382_v10, %v4009_v26  ;;  %v693_v37 = vmax.f32 %v536_v48, 0.0  ;;  %v538_v14 = vadd.f32 %v537_v17, %v6266_v22  ;;  %v2033_v0 = vld [vmem:[#allocation2 + $0x1a0] sm:$0x3] }
 0x211   : > { %v4931_v3 = vsel %vm2260_vm5, %v4926_v38, %v4930_v19  ;;  %v694_v34 = vmax.f32 %v625_v5, 0.0  ;;  %v627_v60 = vadd.f32 %v626_v16, %v6270_v23  ;;  %v1353_v15 = vmul.f32 %v7576_v55, %v6485_v62  ;;  %v2031_v38 = vld [vmem:[#allocation2 + $0x180] sm:$0xfc] }
 0x212   : > { %v5105_v6 = vadd.f32 %v4927_v57, %v4556_v44  ;;  %v5107_v7 = vadd.f32 %v4931_v3, %v4558_v27  ;;  %v757_v40 = vmin.f32 %v693_v37, 6.0  ;;  %v695_v54 = vmax.f32 %v538_v14, 0.0  ;;  %v7790_v37 = vld [vmem:[#allocation2 + $0x1c0] sm:$0xff] }
 0x213   : > { %v758_v46 = vmin.f32 %v694_v34, 6.0  ;;  %v696_v8 = vmax.f32 %v627_v60, 0.0  ;;  %v1355_v58 = vmul.f32 %v7578_v42, %v6485_v62  ;;  %v1566_v25 = vmul.f32 %v8908_v49, %v1481_v12  ;;  %v2778_v60 = vld [vmem:[#allocation2 + $0x1b0] sm:$0xfe] }
 0x214   : > { %v5175_v56 = vadd.f32 %v6741_v2, %v5105_v6  ;;  %v5177_v50 = vadd.f32 %v6741_v2, %v5107_v7  ;;  %v1018_v41 = vrot.slane %v757_v40, 7  ;;  %v759_v63 = vmin.f32 %v695_v54, 6.0 }
 0x215   : > { %v1019_v55 = vrot.slane %v758_v46, 7  ;;  %v760_v17 = vmin.f32 %v696_v8, 6.0  ;;  %v1568_v36 = vmul.f32 %v7578_v42, %v8908_v49  ;;  %v1570_v26 = vmul.f32 %v8908_v49, %v1483_v18  ;;  %v2780_v18 = vld [vmem:[#allocation2 + $0x1d0] sm:$0x1]  ;;  %v3327_v46 = vld [vmem:[#allocation2 + $0x1b0] sm:$0xfc] }
 0x216   : > { %v5239_v48 = vmax.f32 %v5175_v56, 0.0  ;;  %v5241_v16 = vmax.f32 %v5177_v50, 0.0  ;;  %1213 = vst [vmem:[#allocation2 + $0x240] sm:$0xfe] %v1018_v41  ;;  %v1020_v10 = vrot.slane %v759_v63, 7  ;;  %v1791_v57 = vrot.slane %v1566_v25, 1 }
 0x217   : > { %1214 = vst.msk [vmem:[#allocation2 + $0x248] sm:$0xfe] %vm1146_vm1, %v1019_v55  ;;  %v1022_v19 = vrot.slane %v760_v17, 7  ;;  %v1792_v5 = vrot.slane %v1568_v36, 1  ;;  %v1797_v44 = vrot.slane %v1570_v26, 1  ;;  %v2116_v27 = vmul.f32 %v8909_v20, %v2031_v38 }
 0x218   : > { %v5303_v14 = vmin.f32 %v5239_v48, 6.0  ;;  %v5305_v12 = vmin.f32 %v5241_v16, 6.0  ;;  %v1021_v3 = vsel %vm951_vm3, %v1018_v41, %v1020_v10  ;;  %1217 = vst [vmem:[#allocation2 + $0x260] sm:$0x1] %v1020_v10  ;;  %v2118_v34 = vmul.f32 %v7578_v42, %v8909_v20  ;;  %v3329_v41 = vld [vmem:[#allocation2 + $0x1d0] sm:$0x3] }
 0x219   : > { %1215 = vst [vmem:[#allocation2 + $0x250] sm:$0xff] %v1021_v3  ;;  %v1023_v6 = vsel %vm951_vm3, %v1019_v55, %v1022_v19  ;;  %v1793_v7 = vsel %vm1710_vm4, %v1791_v57, %v1792_v5  ;;  %v1798_v40 = vsel %vm1710_vm4, %v1792_v5, %v1797_v44  ;;  %v2120_v54 = vmul.f32 %v8909_v20, %v2033_v0  ;;  %v7816_v10 = vld [vmem:[#allocation2 + $0x1e0] sm:$0xff] }
 0x21a   : > { %v5353_v8 = vpack.c.bf16 %v5305_v12, %v5303_v14  ;;  %1216 = vst.msk [vmem:[#allocation2 + $0x258] sm:$0xff] %vm778_vm2, %v1023_v6  ;;  %v1967_v25 = vadd.f32 %v1793_v7, %v1353_v15  ;;  %v1969_v56 = vadd.f32 %v1798_v40, %v1355_v58  ;;  %v2341_v50 = vrot.slane %v2116_v27, 2 }
 0x21b   : > { %1218 = vst.msk [vmem:[#allocation2 + $0x268] sm:$0x1] %vm1151_vm7, %v1022_v19  ;;  %v2342_v42 = vrot.slane %v2118_v34, 2  ;;  %v2347_v63 = vrot.slane %v2120_v54, 2  ;;  %v2650_v38 = vmul.f32 %v7698_v45, %v6566_v59  ;;  %v2652_v55 = vmul.f32 %v6566_v59, %v7790_v37  ;;  %v4074_v34 = vld [vmem:[#allocation2 + $0x1e0] sm:$0xfe] }
 0x21c   : > { %6056 = vmatmul.msk.bf16.gmra.mxu3 %vm778_vm2, %v5353_v8  ;;  %v2863_v17 = vmul.f32 %v8893_v31, %v2778_v60  ;;  %v2865_v15 = vmul.f32 %v8893_v31, %v7790_v37  ;;  %v2867_v58 = vmul.f32 %v8893_v31, %v2780_v18  ;;  %v3412_v36 = vmul.f32 %v8896_v30, %v3327_v46  ;;  %v4076_v54 = vld [vmem:[#allocation2 + $0x200] sm:$0x1]  ;;  %v4623_v18 = vld [vmem:[#allocation2 + $0x1e0] sm:$0xfc] }
 0x21d   : > { %v2343_v26 = vsel %vm2260_vm5, %v2341_v50, %v2342_v42  ;;  %v2348_v0 = vsel %vm2260_vm5, %v2342_v42, %v2347_v63  ;;  %v3414_v48 = vmul.f32 %v8896_v30, %v7790_v37  ;;  %v3416_v16 = vmul.f32 %v8896_v30, %v3329_v41  ;;  %v4625_v46 = vld [vmem:[#allocation2 + $0x200] sm:$0x3] }
 0x21e   : > { %v2517_v57 = vadd.f32 %v2343_v26, %v1967_v25  ;;  %v2519_v19 = vadd.f32 %v2348_v0, %v1969_v56  ;;  %v3087_v5 = vrot.slane %v2863_v17, 1  ;;  %v3088_v44 = vrot.slane %v2865_v15, 1 }
 0x21f   : > { %v3093_v27 = vrot.slane %v2867_v58, 1  ;;  %v3636_v14 = vrot.slane %v3412_v36, 2  ;;  %v3637_v12 = vrot.slane %v3414_v48, 2  ;;  %v3642_v3 = vrot.slane %v3416_v16, 2 }
 0x220   : > { %v2714_v60 = vadd.f32 %v2650_v38, %v2517_v57  ;;  %v2716_v6 = vadd.f32 %v2652_v55, %v2519_v19  ;;  %v3089_v7 = vsel %vm1710_vm4, %v3087_v5, %v3088_v44  ;;  %v3946_v40 = vmul.f32 %v6645_v29, %v7816_v10 }
 0x221   : > { %v3094_v8 = vsel %vm1710_vm4, %v3088_v44, %v3093_v27  ;;  %v3638_v25 = vsel %vm2260_vm5, %v3636_v14, %v3637_v12  ;;  %v3643_v56 = vsel %vm2260_vm5, %v3637_v12, %v3642_v3  ;;  %v3948_v50 = vmul.f32 %v6645_v29, %v7551_v52  ;;  %v1482_v44 = vld [vmem:[#allocation2 + $0x188] sm:$0xfe] }
 0x222   : > { %v3263_v41 = vadd.f32 %v3089_v7, %v2714_v60  ;;  %v3265_v42 = vadd.f32 %v3094_v8, %v2716_v6  ;;  %v4159_v63 = vmul.f32 %v6647_v24, %v4074_v34  ;;  %v4161_v38 = vmul.f32 %v6647_v24, %v7551_v52  ;;  %v1484_v34 = vld [vmem:[#allocation2 + $0x1a8] sm:$0x1] }
 0x223   : > { %v4163_v55 = vmul.f32 %v6647_v24, %v4076_v54  ;;  %v4708_v17 = vmul.f32 %v6788_v39, %v4623_v18  ;;  %v4710_v15 = vmul.f32 %v6788_v39, %v7551_v52  ;;  %v4712_v58 = vmul.f32 %v6788_v39, %v4625_v46  ;;  %v2032_v52 = vld [vmem:[#allocation2 + $0x188] sm:$0xfc]  ;;  %v2034_v60 = vld [vmem:[#allocation2 + $0x1a8] sm:$0x3] }
 0x224   : > { %v3812_v36 = vadd.f32 %v3638_v25, %v3263_v41  ;;  %v3814_v26 = vadd.f32 %v3643_v56, %v3265_v42  ;;  %v4383_v0 = vrot.slane %v4159_v63, 1  ;;  %v4384_v48 = vrot.slane %v4161_v38, 1 }
 0x225   : > { %v4389_v16 = vrot.slane %v4163_v55, 1  ;;  %v4932_v57 = vrot.slane %v4708_v17, 2  ;;  %v4933_v19 = vrot.slane %v4710_v15, 2  ;;  %v4938_v5 = vrot.slane %v4712_v58, 2 }
 0x226   : > { %v4010_v27 = vadd.f32 %v3946_v40, %v3812_v36  ;;  %v4012_v14 = vadd.f32 %v3948_v50, %v3814_v26  ;;  %v4385_v12 = vsel %vm1710_vm4, %v4383_v0, %v4384_v48  ;;  %v1354_v3 = vmul.f32 %v7628_v61, %v8910_v53 }
 0x227   : > { %v4390_v6 = vsel %vm1710_vm4, %v4384_v48, %v4389_v16  ;;  %v4934_v7 = vsel %vm2260_vm5, %v4932_v57, %v4933_v19  ;;  %v4939_v54 = vsel %vm2260_vm5, %v4933_v19, %v4938_v5  ;;  %v1356_v18 = vmul.f32 %v7630_v9, %v8910_v53  ;;  %v2781_v57 = vld [vmem:[#allocation2 + $0x1d8] sm:$0x1] }
 0x228   : > { %v4559_v46 = vadd.f32 %v4385_v12, %v4010_v27  ;;  %v4561_v40 = vadd.f32 %v4390_v6, %v4012_v14  ;;  %v1567_v8 = vmul.f32 %v6334_v43, %v1482_v44  ;;  %v1569_v25 = vmul.f32 %v7630_v9, %v6334_v43  ;;  %v3328_v14 = vld [vmem:[#allocation2 + $0x1b8] sm:$0xfc]  ;;  %v540_v6 = vpop.f32.mrf.mxu0 }
 0x229   : > { %v1571_v61 = vmul.f32 %v6334_v43, %v1484_v34  ;;  %v2117_v56 = vmul.f32 %v6350_v51, %v2032_v52  ;;  %v2119_v50 = vmul.f32 %v7630_v9, %v6350_v51  ;;  %v2121_v41 = vmul.f32 %v6350_v51, %v2034_v60  ;;  %v2779_v9 = vld [vmem:[#allocation2 + $0x1b8] sm:$0xfe] }
 0x22a   : > { %v5108_v42 = vadd.f32 %v4934_v7, %v4559_v46  ;;  %v5110_v63 = vadd.f32 %v4939_v54, %v4561_v40  ;;  %v1794_v38 = vrot.slane %v1567_v8, 1  ;;  %v1795_v55 = vrot.slane %v1569_v25, 1  ;;  %v3330_v40 = vld [vmem:[#allocation2 + $0x1d8] sm:$0x3]  ;;  %v629_v8 = vpop.f32.mrf.mxu1 }
 0x22b   : > { %v1799_v17 = vrot.slane %v1571_v61, 1  ;;  %v2344_v15 = vrot.slane %v2117_v56, 2  ;;  %v2345_v58 = vrot.slane %v2119_v50, 2  ;;  %v2349_v36 = vrot.slane %v2121_v41, 2 }
 0x22c   : > { %v5178_v26 = vadd.f32 %v6817_v35, %v5108_v42  ;;  %v5180_v0 = vadd.f32 %v6817_v35, %v5110_v63  ;;  %v1796_v48 = vsel %vm1710_vm4, %v1794_v38, %v1795_v55  ;;  %v2651_v16 = vmul.f32 %v7747_v1, %v8904_v21 }
 0x22d   : > { %v1800_v19 = vsel %vm1710_vm4, %v1795_v55, %v1799_v17  ;;  %v1968_v5 = vadd.f32 %v1796_v48, %v1354_v3  ;;  %v2346_v44 = vsel %vm2260_vm5, %v2344_v15, %v2345_v58  ;;  %v2350_v27 = vsel %vm2260_vm5, %v2345_v58, %v2349_v36  ;;  %v7870_v36 = vld [vmem:[#allocation2 + $0x1f8] sm:$0xff] }
 0x22e   : > { %v5242_v12 = vmax.f32 %v5178_v26, 0.0  ;;  %v5244_v34 = vmax.f32 %v5180_v0, 0.0  ;;  %v1970_v52 = vadd.f32 %v1800_v19, %v1356_v18  ;;  %v2653_v60 = vmul.f32 %v7752_v32, %v8904_v21  ;;  %v7865_v18 = vld [vmem:[#allocation2 + $0x1e8] sm:$0xff] }
 0x22f   : > { %v2518_v7 = vadd.f32 %v2346_v44, %v1968_v5  ;;  %v2864_v54 = vmul.f32 %v8906_v28, %v2779_v9  ;;  %v2866_v46 = vmul.f32 %v7752_v32, %v8906_v28  ;;  %v2868_v3 = vmul.f32 %v8906_v28, %v2781_v57  ;;  %v4075_v26 = vld [vmem:[#allocation2 + $0x1e8] sm:$0xfe]  ;;  %v4077_v0 = vld [vmem:[#allocation2 + $0x208] sm:$0x1] }
 0x230   : > { %v5306_v25 = vmin.f32 %v5242_v12, 6.0  ;;  %v5308_v61 = vmin.f32 %v5244_v34, 6.0  ;;  %v2520_v56 = vadd.f32 %v2350_v27, %v1970_v52  ;;  %v3413_v50 = vmul.f32 %v8907_v4, %v3328_v14  ;;  %v4624_v19 = vld [vmem:[#allocation2 + $0x1e8] sm:$0xfc] }
 0x231   : > { %v2715_v41 = vadd.f32 %v2651_v16, %v2518_v7  ;;  %v3090_v42 = vrot.slane %v2864_v54, 1  ;;  %v3091_v63 = vrot.slane %v2866_v46, 1  ;;  %v3095_v38 = vrot.slane %v2868_v3, 1  ;;  %v4626_v7 = vld [vmem:[#allocation2 + $0x208] sm:$0x3] }
 0x232   : > { %v5354_v55 = vpack.c.bf16 %v5308_v61, %v5306_v25  ;;  %v2717_v17 = vadd.f32 %v2653_v60, %v2520_v56  ;;  %v3415_v15 = vmul.f32 %v7752_v32, %v8907_v4  ;;  %v3417_v58 = vmul.f32 %v8907_v4, %v3330_v40 }
 0x233   : > { %v3092_v48 = vsel %vm1710_vm4, %v3090_v42, %v3091_v63  ;;  %v3096_v9 = vsel %vm1710_vm4, %v3091_v63, %v3095_v38  ;;  %v3639_v57 = vrot.slane %v3413_v50, 2  ;;  %v3947_v16 = vmul.f32 %v6588_v11, %v7865_v18 }
 0x234   : > { %5566 = vmatmul.bf16.gmra.mxu2 %v5354_v55  ;;  %v3264_v5 = vadd.f32 %v3092_v48, %v2715_v41  ;;  %v3266_v44 = vadd.f32 %v3096_v9, %v2717_v17  ;;  %v3640_v27 = vrot.slane %v3415_v15, 2  ;;  %v3644_v14 = vrot.slane %v3417_v58, 2  ;;  %v542_v55 = vpop.f32.mrf.mxu0 }
 0x235   : > { %v3949_v12 = vmul.f32 %v6588_v11, %v7870_v36  ;;  %v4160_v34 = vmul.f32 %v6590_v13, %v4075_v26  ;;  %v4162_v52 = vmul.f32 %v6590_v13, %v7870_v36  ;;  %v4164_v60 = vmul.f32 %v6590_v13, %v4077_v0  ;;  %v631_v0 = vpop.f32.mrf.mxu1 }
 0x236   : > { %v3641_v54 = vsel %vm2260_vm5, %v3639_v57, %v3640_v27  ;;  %v3645_v46 = vsel %vm2260_vm5, %v3640_v27, %v3644_v14  ;;  %v4709_v3 = vmul.f32 %v6606_v33, %v4624_v19  ;;  %v4711_v40 = vmul.f32 %v6606_v33, %v7870_v36 }
 0x237   : > { %v3813_v25 = vadd.f32 %v3641_v54, %v3264_v5  ;;  %v3815_v61 = vadd.f32 %v3645_v46, %v3266_v44  ;;  %v4386_v56 = vrot.slane %v4160_v34, 1  ;;  %v4387_v50 = vrot.slane %v4162_v52, 1  ;;  %v1485_v34 = vld [vmem:[#allocation2 + $0x1b0] sm:$0xfe] }
 0x238   : > { %v4391_v41 = vrot.slane %v4164_v60, 1  ;;  %v4713_v42 = vmul.f32 %v6606_v33, %v4626_v7  ;;  %v4935_v63 = vrot.slane %v4709_v3, 2  ;;  %v4936_v38 = vrot.slane %v4711_v40, 2  ;;  %v1487_v3 = vld [vmem:[#allocation2 + $0x1d0] sm:$0x1] }
 0x239   : > { %v4011_v17 = vadd.f32 %v3947_v16, %v3813_v25  ;;  %v4013_v15 = vadd.f32 %v3949_v12, %v3815_v61  ;;  %v4388_v58 = vsel %vm1710_vm4, %v4386_v56, %v4387_v50  ;;  %v541_v26 = vadd.f32 %v540_v6, %v6266_v22 }
 0x23a   : > { %v4392_v48 = vsel %vm1710_vm4, %v4387_v50, %v4391_v41  ;;  %v4937_v9 = vsel %vm2260_vm5, %v4935_v63, %v4936_v38  ;;  %v4940_v57 = vrot.slane %v4713_v42, 2  ;;  %v630_v19 = vadd.f32 %v629_v8, %v6270_v23  ;;  %v2035_v63 = vld [vmem:[#allocation2 + $0x1b0] sm:$0xfc] }
 0x23b   : > { %v4560_v5 = vadd.f32 %v4388_v58, %v4011_v17  ;;  %v4562_v44 = vadd.f32 %v4392_v48, %v4013_v15  ;;  %v697_v27 = vmax.f32 %v541_v26, 0.0  ;;  %v543_v14 = vadd.f32 %v542_v55, %v6266_v22  ;;  %v2037_v15 = vld [vmem:[#allocation2 + $0x1d0] sm:$0x3] }
 0x23c   : > { %v4941_v16 = vsel %vm2260_vm5, %v4936_v38, %v4940_v57  ;;  %v698_v12 = vmax.f32 %v630_v19, 0.0  ;;  %v632_v52 = vadd.f32 %v631_v0, %v6270_v23  ;;  %v1357_v6 = vmul.f32 %v7698_v45, %v6485_v62 }
 0x23d   : > { %v5109_v60 = vadd.f32 %v4937_v9, %v4560_v5  ;;  %v5111_v7 = vadd.f32 %v4941_v16, %v4562_v44  ;;  %v761_v54 = vmin.f32 %v697_v27, 6.0  ;;  %v699_v46 = vmax.f32 %v543_v14, 0.0  ;;  %v7908_v44 = vld [vmem:[#allocation2 + $0x1f0] sm:$0xff] }
 0x23e   : > { %v762_v8 = vmin.f32 %v698_v12, 6.0  ;;  %v700_v40 = vmax.f32 %v632_v52, 0.0  ;;  %v1359_v25 = vmul.f32 %v7790_v37, %v6485_v62  ;;  %v1572_v61 = vmul.f32 %v8908_v49, %v1485_v34  ;;  %v2782_v12 = vld [vmem:[#allocation2 + $0x1e0] sm:$0xfe] }
 0x23f   : > { %v5179_v56 = vadd.f32 %v6741_v2, %v5109_v60  ;;  %v5181_v50 = vadd.f32 %v6741_v2, %v5111_v7  ;;  %v1024_v41 = vrot.slane %v761_v54, 7  ;;  %v763_v42 = vmin.f32 %v699_v46, 6.0  ;;  %v2784_v46 = vld [vmem:[#allocation2 + $0x200] sm:$0x1] }
 0x240   : > { %v1025_v45 = vrot.slane %v762_v8, 7  ;;  %v764_v38 = vmin.f32 %v700_v40, 6.0  ;;  %v1574_v55 = vmul.f32 %v7790_v37, %v8908_v49  ;;  %v1576_v17 = vmul.f32 %v8908_v49, %v1487_v3  ;;  %v3331_v3 = vld [vmem:[#allocation2 + $0x1e0] sm:$0xfc] }
 0x241   : > { %v5243_v58 = vmax.f32 %v5179_v56, 0.0  ;;  %v5245_v26 = vmax.f32 %v5181_v50, 0.0  ;;  %1219 = vst [vmem:[#allocation2 + $0x270] sm:$0xfe] %v1024_v41  ;;  %v1026_v0 = vrot.slane %v763_v42, 7  ;;  %v1801_v48 = vrot.slane %v1572_v61, 1 }
 0x242   : > { %1220 = vst.msk [vmem:[#allocation2 + $0x278] sm:$0xfe] %vm1146_vm1, %v1025_v45  ;;  %v1028_v9 = vrot.slane %v764_v38, 7  ;;  %v1802_v57 = vrot.slane %v1574_v55, 1  ;;  %v1807_v19 = vrot.slane %v1576_v17, 1  ;;  %v2122_v5 = vmul.f32 %v8909_v20, %v2035_v63  ;;  %v7929_v55 = vpop.f32.mrf.mxu3 }
 0x243   : > { %v5307_v27 = vmin.f32 %v5243_v58, 6.0  ;;  %v5309_v14 = vmin.f32 %v5245_v26, 6.0  ;;  %v1027_v34 = vsel %vm951_vm3, %v1024_v41, %v1026_v0  ;;  %1223 = vst [vmem:[#allocation2 + $0x290] sm:$0x1] %v1026_v0  ;;  %v2124_v16 = vmul.f32 %v7790_v37, %v8909_v20  ;;  %v3333_v50 = vld [vmem:[#allocation2 + $0x200] sm:$0x3] }
 0x244   : > { %1221 = vst [vmem:[#allocation2 + $0x280] sm:$0xff] %v1027_v34  ;;  %v1029_v52 = vsel %vm951_vm3, %v1025_v45, %v1028_v9  ;;  %v1803_v60 = vsel %vm1710_vm4, %v1801_v48, %v1802_v57  ;;  %v1808_v7 = vsel %vm1710_vm4, %v1802_v57, %v1807_v19  ;;  %v2126_v54 = vmul.f32 %v8909_v20, %v2037_v15  ;;  %v7936_v0 = vld [vmem:[#allocation2 + $0x210] sm:$0xff] }
 0x245   : > { %v5355_v8 = vpack.c.bf16 %v5309_v14, %v5307_v27  ;;  %1222 = vst.msk [vmem:[#allocation2 + $0x288] sm:$0xff] %vm778_vm2, %v1029_v52  ;;  %v1971_v40 = vadd.f32 %v1803_v60, %v1357_v6  ;;  %v1973_v61 = vadd.f32 %v1808_v7, %v1359_v25  ;;  %v2351_v56 = vrot.slane %v2122_v5, 2 }
 0x246   : > { %1224 = vst.msk [vmem:[#allocation2 + $0x298] sm:$0x1] %vm1151_vm7, %v1028_v9  ;;  %v2352_v37 = vrot.slane %v2124_v16, 2  ;;  %v2357_v41 = vrot.slane %v2126_v54, 2  ;;  %v2654_v42 = vmul.f32 %v7816_v10, %v6566_v59  ;;  %v2656_v63 = vmul.f32 %v6566_v59, %v7908_v44  ;;  %v4078_v16 = vld [vmem:[#allocation2 + $0x210] sm:$0xfe] }
 0x247   : > { %6057 = vmatmul.msk.bf16.gmra.mxu3 %vm778_vm2, %v5355_v8  ;;  %v2869_v45 = vmul.f32 %v8893_v31, %v2782_v12  ;;  %v2871_v6 = vmul.f32 %v8893_v31, %v7908_v44  ;;  %v2873_v25 = vmul.f32 %v8893_v31, %v2784_v46  ;;  %v3418_v38 = vmul.f32 %v8896_v30, %v3331_v3  ;;  %v4080_v54 = vld [vmem:[#allocation2 + $0x230] sm:$0x1]  ;;  %v4627_v46 = vld [vmem:[#allocation2 + $0x210] sm:$0xfc] }
 0x248   : > { %v2353_v17 = vsel %vm2260_vm5, %v2351_v56, %v2352_v37  ;;  %v2358_v15 = vsel %vm2260_vm5, %v2352_v37, %v2357_v41  ;;  %v3420_v58 = vmul.f32 %v8896_v30, %v7908_v44  ;;  %v3422_v26 = vmul.f32 %v8896_v30, %v3333_v50  ;;  %v4629_v3 = vld [vmem:[#allocation2 + $0x230] sm:$0x3] }
 0x249   : > { %v2521_v48 = vadd.f32 %v2353_v17, %v1971_v40  ;;  %v2523_v9 = vadd.f32 %v2358_v15, %v1973_v61  ;;  %v3097_v57 = vrot.slane %v2869_v45, 1  ;;  %v3098_v19 = vrot.slane %v2871_v6, 1 }
 0x24a   : > { %v3103_v5 = vrot.slane %v2873_v25, 1  ;;  %v3646_v27 = vrot.slane %v3418_v38, 2  ;;  %v3647_v14 = vrot.slane %v3420_v58, 2  ;;  %v3652_v34 = vrot.slane %v3422_v26, 2 }
 0x24b   : > { %v2718_v12 = vadd.f32 %v2654_v42, %v2521_v48  ;;  %v2720_v52 = vadd.f32 %v2656_v63, %v2523_v9  ;;  %v3099_v60 = vsel %vm1710_vm4, %v3097_v57, %v3098_v19  ;;  %v3950_v7 = vmul.f32 %v6645_v29, %v7936_v0 }
 0x24c   : > { %v3104_v8 = vsel %vm1710_vm4, %v3098_v19, %v3103_v5  ;;  %v3648_v40 = vsel %vm2260_vm5, %v3646_v27, %v3647_v14  ;;  %v3653_v61 = vsel %vm2260_vm5, %v3647_v14, %v3652_v34  ;;  %v3952_v56 = vmul.f32 %v6645_v29, %v7672_v47  ;;  %v1486_v19 = vld [vmem:[#allocation2 + $0x1b8] sm:$0xfe] }
 0x24d   : > { %v3267_v50 = vadd.f32 %v3099_v60, %v2718_v12  ;;  %v3269_v37 = vadd.f32 %v3104_v8, %v2720_v52  ;;  %v4165_v41 = vmul.f32 %v6647_v24, %v4078_v16  ;;  %v4167_v42 = vmul.f32 %v6647_v24, %v7672_v47  ;;  %v1488_v16 = vld [vmem:[#allocation2 + $0x1d8] sm:$0x1]  ;;  %v7957_v52 = vpop.f32.mrf.mxu3 }
 0x24e   : > { %v4169_v63 = vmul.f32 %v6647_v24, %v4080_v54  ;;  %v4714_v45 = vmul.f32 %v6788_v39, %v4627_v46  ;;  %v4716_v6 = vmul.f32 %v6788_v39, %v7672_v47  ;;  %v4718_v25 = vmul.f32 %v6788_v39, %v4629_v3  ;;  %v2036_v47 = vld [vmem:[#allocation2 + $0x1b8] sm:$0xfc]  ;;  %v2038_v12 = vld [vmem:[#allocation2 + $0x1d8] sm:$0x3]  ;;  %8911 = vst [vmem:[#allocation13_spill] sm:$0xff] %v7957_v52 }
 0x24f   : > { %v3816_v38 = vadd.f32 %v3648_v40, %v3267_v50  ;;  %v3818_v17 = vadd.f32 %v3653_v61, %v3269_v37  ;;  %v4393_v15 = vrot.slane %v4165_v41, 1  ;;  %v4394_v58 = vrot.slane %v4167_v42, 1 }
 0x250   : > { %v4399_v26 = vrot.slane %v4169_v63, 1  ;;  %v4942_v48 = vrot.slane %v4714_v45, 2  ;;  %v4943_v9 = vrot.slane %v4716_v6, 2  ;;  %v4948_v57 = vrot.slane %v4718_v25, 2 }
 0x251   : > { %v4014_v5 = vadd.f32 %v3950_v7, %v3816_v38  ;;  %v4016_v27 = vadd.f32 %v3952_v56, %v3818_v17  ;;  %v4395_v14 = vsel %vm1710_vm4, %v4393_v15, %v4394_v58  ;;  %v1358_v34 = vmul.f32 %v7747_v1, %v8910_v53 }
 0x252   : > { %v4400_v60 = vsel %vm1710_vm4, %v4394_v58, %v4399_v26  ;;  %v4944_v54 = vsel %vm2260_vm5, %v4942_v48, %v4943_v9  ;;  %v4949_v46 = vsel %vm2260_vm5, %v4943_v9, %v4948_v57  ;;  %v1360_v7 = vmul.f32 %v7752_v32, %v8910_v53  ;;  %v2785_v9 = vld [vmem:[#allocation2 + $0x208] sm:$0x1] }
 0x253   : > { %v4563_v3 = vadd.f32 %v4395_v14, %v4014_v5  ;;  %v4565_v8 = vadd.f32 %v4400_v60, %v4016_v27  ;;  %v1573_v40 = vmul.f32 %v6334_v43, %v1486_v19  ;;  %v1575_v1 = vmul.f32 %v7752_v32, %v6334_v43  ;;  %v3332_v14 = vld [vmem:[#allocation2 + $0x1e8] sm:$0xfc] }
 0x254   : > { %v1577_v61 = vmul.f32 %v6334_v43, %v1488_v16  ;;  %v2123_v56 = vmul.f32 %v6350_v51, %v2036_v47  ;;  %v2125_v50 = vmul.f32 %v7752_v32, %v6350_v51  ;;  %v2127_v37 = vmul.f32 %v6350_v51, %v2038_v12  ;;  %v2783_v32 = vld [vmem:[#allocation2 + $0x1e8] sm:$0xfe] }
 0x255   : > { %v5112_v41 = vadd.f32 %v4944_v54, %v4563_v3  ;;  %v5114_v42 = vadd.f32 %v4949_v46, %v4565_v8  ;;  %v1804_v63 = vrot.slane %v1573_v40, 1  ;;  %v1805_v45 = vrot.slane %v1575_v1, 1  ;;  %v5532_v40 = vpop.f32.mrf.mxu2 }
 0x256   : > { %v1809_v6 = vrot.slane %v1577_v61, 1  ;;  %v2354_v25 = vrot.slane %v2123_v56, 2  ;;  %v2355_v38 = vrot.slane %v2125_v50, 2  ;;  %v2359_v17 = vrot.slane %v2127_v37, 2  ;;  %v7987_v37 = vld [vmem:[#allocation2 + $0x218] sm:$0xff] }
 0x257   : > { %v5182_v15 = vadd.f32 %v6817_v35, %v5112_v41  ;;  %v5184_v58 = vadd.f32 %v6817_v35, %v5114_v42  ;;  %v1806_v26 = vsel %vm1710_vm4, %v1804_v63, %v1805_v45  ;;  %v2655_v48 = vmul.f32 %v7865_v18, %v8904_v21 }
 0x258   : > { %v1810_v57 = vsel %vm1710_vm4, %v1805_v45, %v1809_v6  ;;  %v1972_v19 = vadd.f32 %v1806_v26, %v1358_v34  ;;  %v2356_v5 = vsel %vm2260_vm5, %v2354_v25, %v2355_v38  ;;  %v2360_v27 = vsel %vm2260_vm5, %v2355_v38, %v2359_v17  ;;  %v3334_v34 = vld [vmem:[#allocation2 + $0x208] sm:$0x3]  ;;  %v5621_v45 = vpop.f32.mrf.mxu3  ;;  %v545_v6 = vpop.f32.mrf.mxu0  ;;  %v4079_v26 = vld [vmem:[#allocation2 + $0x218] sm:$0xfe] }
 0x259   : > { %v5246_v16 = vmax.f32 %v5182_v15, 0.0  ;;  %v5248_v47 = vmax.f32 %v5184_v58, 0.0  ;;  %v1974_v12 = vadd.f32 %v1810_v57, %v1360_v7  ;;  %v2657_v60 = vmul.f32 %v7870_v36, %v8904_v21  ;;  %v7992_v58 = vld [vmem:[#allocation2 + $0x228] sm:$0xff] }
 0x25a   : > { %v2522_v54 = vadd.f32 %v2356_v5, %v1972_v19  ;;  %v2870_v46 = vmul.f32 %v8906_v28, %v2783_v32  ;;  %v2872_v3 = vmul.f32 %v7870_v36, %v8906_v28  ;;  %v2874_v8 = vmul.f32 %v8906_v28, %v2785_v9  ;;  %v4081_v32 = vld [vmem:[#allocation2 + $0x238] sm:$0x1]  ;;  %v634_v9 = vpop.f32.mrf.mxu1 }
 0x25b   : > { %v5310_v1 = vmin.f32 %v5246_v16, 6.0  ;;  %v5312_v61 = vmin.f32 %v5248_v47, 6.0  ;;  %v2524_v56 = vadd.f32 %v2360_v27, %v1974_v12  ;;  %v3419_v50 = vmul.f32 %v8907_v4, %v3332_v14  ;;  %v4628_v27 = vld [vmem:[#allocation2 + $0x218] sm:$0xfc] }
 0x25c   : > { %v2719_v7 = vadd.f32 %v2655_v48, %v2522_v54  ;;  %v3100_v41 = vrot.slane %v2870_v46, 1  ;;  %v3101_v42 = vrot.slane %v2872_v3, 1  ;;  %v3105_v63 = vrot.slane %v2874_v8, 1  ;;  %v4630_v8 = vld [vmem:[#allocation2 + $0x238] sm:$0x3] }
 0x25d   : > { %v5356_v25 = vpack.c.bf16 %v5312_v61, %v5310_v1  ;;  %v2721_v38 = vadd.f32 %v2657_v60, %v2524_v56  ;;  %v3421_v17 = vmul.f32 %v7870_v36, %v8907_v4  ;;  %v3423_v15 = vmul.f32 %v8907_v4, %v3334_v34  ;;  %v8007_v34 = vld [vmem:[%s8832_s6] ss:$0 sm:$0xff] }
 0x25e   : > { %v3102_v57 = vsel %vm1710_vm4, %v3100_v41, %v3101_v42  ;;  %v3106_v48 = vsel %vm1710_vm4, %v3101_v42, %v3105_v63  ;;  %v3649_v19 = vrot.slane %v3419_v50, 2  ;;  %v3951_v5 = vmul.f32 %v6588_v11, %v7987_v37 }
 0x25f   : > { %5571 = vmatmul.bf16.gmra.mxu2 %v5356_v25  ;;  %v3268_v14 = vadd.f32 %v3102_v57, %v2719_v7  ;;  %v3270_v16 = vadd.f32 %v3106_v48, %v2721_v38  ;;  %v3650_v47 = vrot.slane %v3421_v17, 2  ;;  %v3654_v12 = vrot.slane %v3423_v15, 2  ;;  %v282_v25 = vld [vmem:[%s6212_s22 + $0x8] sm:$0xff]  }
 0x260   : > { %v3953_v60 = vmul.f32 %v6588_v11, %v7992_v58  ;;  %v4166_v54 = vmul.f32 %v6590_v13, %v4079_v26  ;;  %v4168_v46 = vmul.f32 %v6590_v13, %v7992_v58  ;;  %v4170_v3 = vmul.f32 %v6590_v13, %v4081_v32 }
 0x261   : > { %v3651_v1 = vsel %vm2260_vm5, %v3649_v19, %v3650_v47  ;;  %v3655_v61 = vsel %vm2260_vm5, %v3650_v47, %v3654_v12  ;;  %v4715_v56 = vmul.f32 %v6606_v33, %v4628_v27  ;;  %v4717_v50 = vmul.f32 %v6606_v33, %v7992_v58  ;;  %v5534_v27 = vpop.f32.mrf.mxu2 }
 0x262   : > { %v3817_v7 = vadd.f32 %v3651_v1, %v3268_v14  ;;  %v3819_v41 = vadd.f32 %v3655_v61, %v3270_v16  ;;  %v4396_v42 = vrot.slane %v4166_v54, 1  ;;  %v4397_v63 = vrot.slane %v4168_v46, 1  ;;  %v547_v1 = vpop.f32.mrf.mxu0 }
 0x263   : > { %v4401_v38 = vrot.slane %v4170_v3, 1  ;;  %v4719_v17 = vmul.f32 %v6606_v33, %v4630_v8  ;;  %v4945_v15 = vrot.slane %v4715_v56, 2  ;;  %v4946_v26 = vrot.slane %v4717_v50, 2  ;;  %v5623_v8 = vpop.f32.mrf.mxu3  ;;  %v636_v56 = vpop.f32.mrf.mxu1 }
 0x264   : > { %v4015_v32 = vadd.f32 %v3951_v5, %v3817_v7  ;;  %v4017_v57 = vadd.f32 %v3953_v60, %v3819_v41  ;;  %v4398_v48 = vsel %vm1710_vm4, %v4396_v42, %v4397_v63  ;;  %v5533_v19 = vadd.f32 %v8007_v34, %v5532_v40 }
 0x265   : > { %v4402_v47 = vsel %vm1710_vm4, %v4397_v63, %v4401_v38  ;;  %v4947_v14 = vsel %vm2260_vm5, %v4945_v15, %v4946_v26  ;;  %v4950_v16 = vrot.slane %v4719_v17, 2  ;;  %v5698_v12 = vunpack.c.l.bf16 %v282_v25 }
 0x266   : > { %v4564_v54 = vadd.f32 %v4398_v48, %v4015_v32  ;;  %v4566_v46 = vadd.f32 %v4402_v47, %v4017_v57  ;;  %v5622_v3 = vadd.f32 %v5621_v45, %v5533_v19  ;;  %v546_v60 = vadd.f32 %v545_v6, %v6266_v22 }
 0x267   : > { %v4951_v5 = vsel %vm2260_vm5, %v4946_v26, %v4950_v16  ;;  %v635_v40 = vadd.f32 %v634_v9, %v6270_v23  ;;  %v5535_v61 = vadd.f32 %v8007_v34, %v5534_v27  ;;  %v5699_v42 = vunpack.c.h.bf16 %v282_v25  ;;  %v1489_v25 = vld [vmem:[#allocation2 + $0x1e0] sm:$0xfe]  ;;  %v1491_v27 = vld [vmem:[#allocation2 + $0x200] sm:$0x1] }
 0x268   : > { %v5113_v50 = vadd.f32 %v4947_v14, %v4564_v54  ;;  %v5115_v7 = vadd.f32 %v4951_v5, %v4566_v46  ;;  %v5730_v41 = vadd.f32 %v5698_v12, %v5622_v3  ;;  %v701_v45 = vmax.f32 %v546_v60, 0.0 }
 0x269   : > { %v702_v63 = vmax.f32 %v635_v40, 0.0  ;;  %v5624_v38 = vadd.f32 %v5623_v8, %v5535_v61  ;;  %v548_v6 = vadd.f32 %v547_v1, %v6266_v22  ;;  %v637_v26 = vadd.f32 %v636_v56, %v6270_v23  ;;  %v2039_v1 = vld [vmem:[#allocation2 + $0x1e0] sm:$0xfc] }
 0x26a   : > { %v5183_v9 = vadd.f32 %v6741_v2, %v5113_v50  ;;  %v5185_v17 = vadd.f32 %v6741_v2, %v5115_v7  ;;  %v5762_v15 = vpack.c.bf16 %v5730_v41, %v5730_v41  ;;  %v765_v32 = vmin.f32 %v701_v45, 6.0  ;;  %v2041_v41 = vld [vmem:[#allocation2 + $0x200] sm:$0x3] }
 0x26b   : > { %v766_v57 = vmin.f32 %v702_v63, 6.0  ;;  %v5731_v48 = vadd.f32 %v5699_v42, %v5624_v38  ;;  %v703_v19 = vmax.f32 %v548_v6, 0.0  ;;  %v704_v16 = vmax.f32 %v637_v26, 0.0  ;;  %v8049_v6 = vld [vmem:[#allocation2 + $0x220] sm:$0xff] }
 0x26c   : > { %v5247_v47 = vmax.f32 %v5183_v9, 0.0  ;;  %v5249_v14 = vmax.f32 %v5185_v17, 0.0  ;;  %5795 = vst.msk [vmem:[%s8029_s14 + $0x8] sm:$0xf] %vm5792_vm8, %v5762_v15  ;;  %v1361_v12 = vmul.f32 %v7816_v10, %v6485_v62  ;;  %v1030_v54 = vrot.slane %v765_v32, 7 }
 0x26d   : > { %v1031_v46 = vrot.slane %v766_v57, 7  ;;  %v5763_v3 = vpack.c.bf16 %v5731_v48, %v5731_v48  ;;  %v767_v8 = vmin.f32 %v703_v19, 6.0  ;;  %v768_v40 = vmin.f32 %v704_v16, 6.0  ;;  %v2786_v9 = vld [vmem:[#allocation2 + $0x210] sm:$0xfe] }
 0x26e   : > { %v5311_v5 = vmin.f32 %v5247_v47, 6.0  ;;  %v5313_v60 = vmin.f32 %v5249_v14, 6.0  ;;  %v1363_v61 = vmul.f32 %v7908_v44, %v6485_v62  ;;  %1225 = vst [vmem:[#allocation2 + $0x2a0] sm:$0xfe] %v1030_v54  ;;  %v1578_v50 = vmul.f32 %v8908_v49, %v1489_v25  ;;  %v2788_v17 = vld [vmem:[#allocation2 + $0x230] sm:$0x1] }
 0x26f   : > { %v1032_v56 = vrot.slane %v767_v8, 7  ;;  %v1580_v7 = vmul.f32 %v7908_v44, %v8908_v49  ;;  %v1582_v10 = vmul.f32 %v8908_v49, %v1491_v27  ;;  %1226 = vst.msk [vmem:[#allocation2 + $0x2a8] sm:$0xfe] %vm1146_vm1, %v1031_v46  ;;  %v1034_v45 = vrot.slane %v768_v40, 7  ;;  %v3335_v27 = vld [vmem:[#allocation2 + $0x210] sm:$0xfc] }
 0x270   : > { %v5357_v42 = vpack.c.bf16 %v5313_v60, %v5311_v5  ;;  %v2128_v63 = vmul.f32 %v8909_v20, %v2039_v1  ;;  %v2130_v38 = vmul.f32 %v7908_v44, %v8909_v20  ;;  %5796 = vst.msk [vmem:[%s8029_s14 + $0xc] sm:$0xf] %vm5792_vm8, %v5763_v3  ;;  %v1811_v26 = vrot.slane %v1578_v50, 1  ;;  %v3337_v3 = vld [vmem:[#allocation2 + $0x230] sm:$0x3] }
 0x271   : > { %v1033_v15 = vsel %vm951_vm3, %v1030_v54, %v1032_v56  ;;  %v1812_v25 = vrot.slane %v1580_v7, 1  ;;  %v1817_v32 = vrot.slane %v1582_v10, 1  ;;  %v1035_v57 = vsel %vm951_vm3, %v1031_v46, %v1034_v45  ;;  %1229 = vst [vmem:[#allocation2 + $0x2c0] sm:$0x1] %v1032_v56 }
 0x272   : > { %6058 = vmatmul.msk.bf16.gmra.mxu3 %vm778_vm2, %v5357_v42  ;;  %1227 = vst [vmem:[#allocation2 + $0x2b0] sm:$0xff] %v1033_v15  ;;  %v2132_v48 = vmul.f32 %v8909_v20, %v2041_v41  ;;  %v2361_v19 = vrot.slane %v2128_v63, 2  ;;  %v2362_v44 = vrot.slane %v2130_v38, 2  ;;  %v2658_v16 = vmul.f32 %v7936_v0, %v6566_v59  ;;  %v8075_v41 = vld [vmem:[#allocation2 + $0x240] sm:$0xff] }
 0x273   : > { %v1813_v47 = vsel %vm1710_vm4, %v1811_v26, %v1812_v25  ;;  %v1818_v14 = vsel %vm1710_vm4, %v1812_v25, %v1817_v32  ;;  %v2660_v54 = vmul.f32 %v6566_v59, %v8049_v6  ;;  %1228 = vst.msk [vmem:[#allocation2 + $0x2b8] sm:$0xff] %vm778_vm2, %v1035_v57  ;;  %v2875_v60 = vmul.f32 %v8893_v31, %v2786_v9  ;;  %v8077_v9 = vld [vmem:[#allocation2 + $0x250] sm:$0xff]  ;;  %v4082_v15 = vld [vmem:[#allocation2 + $0x240] sm:$0xfe]  ;;  %v4084_v57 = vld [vmem:[#allocation2 + $0x260] sm:$0x1] }
 0x274   : > { %v1975_v46 = vadd.f32 %v1813_v47, %v1361_v12  ;;  %v1977_v8 = vadd.f32 %v1818_v14, %v1363_v61  ;;  %v2363_v1 = vsel %vm2260_vm5, %v2361_v19, %v2362_v44  ;;  %v2367_v5 = vrot.slane %v2132_v48, 2  ;;  %1230 = vst.msk [vmem:[#allocation2 + $0x2c8] sm:$0x1] %vm1151_vm7, %v1034_v45  ;;  %v4631_v47 = vld [vmem:[#allocation2 + $0x240] sm:$0xfc] }
 0x275   : > { %v2877_v40 = vmul.f32 %v8893_v31, %v8049_v6  ;;  %v2879_v56 = vmul.f32 %v8893_v31, %v2788_v17  ;;  %v3424_v50 = vmul.f32 %v8896_v30, %v3335_v27  ;;  %v3426_v12 = vmul.f32 %v8896_v30, %v8049_v6  ;;  %v4633_v14 = vld [vmem:[#allocation2 + $0x260] sm:$0x3] }
 0x276   : > { %v2368_v7 = vsel %vm2260_vm5, %v2362_v44, %v2367_v5  ;;  %v2525_v10 = vadd.f32 %v2363_v1, %v1975_v46  ;;  %v3428_v61 = vmul.f32 %v8896_v30, %v3337_v3  ;;  %v3107_v45 = vrot.slane %v2875_v60, 1 }
 0x277   : > { %v2527_v42 = vadd.f32 %v2368_v7, %v1977_v8  ;;  %v3108_v63 = vrot.slane %v2877_v40, 1  ;;  %v3113_v38 = vrot.slane %v2879_v56, 1  ;;  %v3656_v26 = vrot.slane %v3424_v50, 2 }
 0x278   : > { %v2722_v17 = vadd.f32 %v2658_v16, %v2525_v10  ;;  %v3657_v25 = vrot.slane %v3426_v12, 2  ;;  %v3662_v32 = vrot.slane %v3428_v61, 2  ;;  %v3954_v27 = vmul.f32 %v6645_v29, %v8075_v41 }
 0x279   : > { %v2724_v48 = vadd.f32 %v2660_v54, %v2527_v42  ;;  %v3109_v19 = vsel %vm1710_vm4, %v3107_v45, %v3108_v63  ;;  %v3114_v44 = vsel %vm1710_vm4, %v3108_v63, %v3113_v38  ;;  %v3956_v16 = vmul.f32 %v6645_v29, %v8077_v9  ;;  %v1490_v45 = vld [vmem:[#allocation2 + $0x1e8] sm:$0xfe] }
 0x27a   : > { %v3271_v3 = vadd.f32 %v3109_v19, %v2722_v17  ;;  %v3658_v46 = vsel %vm2260_vm5, %v3656_v26, %v3657_v25  ;;  %v3663_v8 = vsel %vm2260_vm5, %v3657_v25, %v3662_v32  ;;  %v4171_v54 = vmul.f32 %v6647_v24, %v4082_v15  ;;  %v1492_v26 = vld [vmem:[#allocation2 + $0x208] sm:$0x1]  ;;  %v2040_v19 = vld [vmem:[#allocation2 + $0x1e8] sm:$0xfc] }
 0x27b   : > { %v3273_v1 = vadd.f32 %v3114_v44, %v2724_v48  ;;  %v4173_v5 = vmul.f32 %v6647_v24, %v8077_v9  ;;  %v4175_v60 = vmul.f32 %v6647_v24, %v4084_v57  ;;  %v4720_v56 = vmul.f32 %v6788_v39, %v4631_v47  ;;  %v2042_v44 = vld [vmem:[#allocation2 + $0x208] sm:$0x3] }
 0x27c   : > { %v3820_v40 = vadd.f32 %v3658_v46, %v3271_v3  ;;  %v4722_v50 = vmul.f32 %v6788_v39, %v8077_v9  ;;  %v4724_v7 = vmul.f32 %v6788_v39, %v4633_v14  ;;  %v4403_v12 = vrot.slane %v4171_v54, 1 }
 0x27d   : > { %v3822_v10 = vadd.f32 %v3663_v8, %v3273_v1  ;;  %v4404_v61 = vrot.slane %v4173_v5, 1  ;;  %v4409_v42 = vrot.slane %v4175_v60, 1  ;;  %v4952_v38 = vrot.slane %v4720_v56, 2 }
 0x27e   : > { %v4018_v63 = vadd.f32 %v3954_v27, %v3820_v40  ;;  %v4953_v15 = vrot.slane %v4722_v50, 2  ;;  %v4958_v17 = vrot.slane %v4724_v7, 2  ;;  %v1362_v48 = vmul.f32 %v7865_v18, %v8910_v53 }
 0x27f   : > { %v4020_v25 = vadd.f32 %v3956_v16, %v3822_v10  ;;  %v4405_v32 = vsel %vm1710_vm4, %v4403_v12, %v4404_v61  ;;  %v4410_v57 = vsel %vm1710_vm4, %v4404_v61, %v4409_v42  ;;  %v1364_v27 = vmul.f32 %v7870_v36, %v8910_v53 }
 0x280   : > { %v4567_v47 = vadd.f32 %v4405_v32, %v4018_v63  ;;  %v4954_v14 = vsel %vm2260_vm5, %v4952_v38, %v4953_v15  ;;  %v4959_v3 = vsel %vm2260_vm5, %v4953_v15, %v4958_v17  ;;  %v1579_v8 = vmul.f32 %v6334_v43, %v1490_v45  ;;  %v2787_v45 = vld [vmem:[#allocation2 + $0x218] sm:$0xfe] }
 0x281   : > { %v4569_v46 = vadd.f32 %v4410_v57, %v4020_v25  ;;  %v1581_v16 = vmul.f32 %v7870_v36, %v6334_v43  ;;  %v1583_v1 = vmul.f32 %v6334_v43, %v1492_v26  ;;  %v2129_v18 = vmul.f32 %v6350_v51, %v2040_v19  ;;  %v2789_v57 = vld [vmem:[#allocation2 + $0x238] sm:$0x1]  ;;  %v3336_v19 = vld [vmem:[#allocation2 + $0x218] sm:$0xfc] }
 0x282   : > { %v5116_v54 = vadd.f32 %v4954_v14, %v4567_v47  ;;  %v2131_v5 = vmul.f32 %v7870_v36, %v6350_v51  ;;  %v2133_v60 = vmul.f32 %v6350_v51, %v2042_v44  ;;  %v1814_v56 = vrot.slane %v1579_v8, 1 }
 0x283   : > { %v5118_v40 = vadd.f32 %v4959_v3, %v4569_v46  ;;  %v1815_v50 = vrot.slane %v1581_v16, 1  ;;  %v1819_v7 = vrot.slane %v1583_v1, 1  ;;  %v2364_v12 = vrot.slane %v2129_v18, 2 }
 0x284   : > { %v5186_v10 = vadd.f32 %v6817_v35, %v5116_v54  ;;  %v2365_v61 = vrot.slane %v2131_v5, 2  ;;  %v2369_v42 = vrot.slane %v2133_v60, 2  ;;  %v2659_v36 = vmul.f32 %v7987_v37, %v8904_v21 }
 0x285   : > { %v5188_v63 = vadd.f32 %v6817_v35, %v5118_v40  ;;  %v1816_v38 = vsel %vm1710_vm4, %v1814_v56, %v1815_v50  ;;  %v1820_v15 = vsel %vm1710_vm4, %v1815_v50, %v1819_v7  ;;  %v2661_v14 = vmul.f32 %v7992_v58, %v8904_v21  ;;  %v8126_v40 = vld [vmem:[#allocation2 + $0x248] sm:$0xff]  ;;  %v8128_v56 = vld [vmem:[#allocation2 + $0x258] sm:$0xff] }
 0x286   : > { %v5250_v17 = vmax.f32 %v5186_v10, 0.0  ;;  %v1976_v26 = vadd.f32 %v1816_v38, %v1362_v48  ;;  %v1978_v25 = vadd.f32 %v1820_v15, %v1364_v27  ;;  %v2366_v32 = vsel %vm2260_vm5, %v2364_v12, %v2365_v61  ;;  %v3338_v48 = vld [vmem:[#allocation2 + $0x238] sm:$0x3]  ;;  %v5537_v27 = vpop.f32.mrf.mxu2 }
 0x287   : > { %v5252_v44 = vmax.f32 %v5188_v63, 0.0  ;;  %v2370_v47 = vsel %vm2260_vm5, %v2365_v61, %v2369_v42  ;;  %v2876_v3 = vmul.f32 %v8906_v28, %v2787_v45  ;;  %v2878_v1 = vmul.f32 %v7992_v58, %v8906_v28  ;;  %v4083_v61 = vld [vmem:[#allocation2 + $0x248] sm:$0xfe]  ;;  %v5626_v42 = vpop.f32.mrf.mxu3  ;;  %v550_v45 = vpop.f32.mrf.mxu0 }
 0x288   : > { %v5314_v46 = vmin.f32 %v5250_v17, 6.0  ;;  %v2526_v8 = vadd.f32 %v2366_v32, %v1976_v26  ;;  %v2528_v16 = vadd.f32 %v2370_v47, %v1978_v25  ;;  %v2880_v18 = vmul.f32 %v8906_v28, %v2789_v57  ;;  %v4085_v26 = vld [vmem:[#allocation2 + $0x268] sm:$0x1]  ;;  %v639_v25 = vpop.f32.mrf.mxu1 }
 0x289   : > { %v5316_v54 = vmin.f32 %v5252_v44, 6.0  ;;  %v3110_v5 = vrot.slane %v2876_v3, 1  ;;  %v3425_v60 = vmul.f32 %v8907_v4, %v3336_v19  ;;  %v3111_v10 = vrot.slane %v2878_v1, 1  ;;  %v4632_v44 = vld [vmem:[#allocation2 + $0x248] sm:$0xfc] }
 0x28a   : > { %v2723_v50 = vadd.f32 %v2659_v36, %v2526_v8  ;;  %v2725_v7 = vadd.f32 %v2661_v14, %v2528_v16  ;;  %v3427_v12 = vmul.f32 %v7992_v58, %v8907_v4  ;;  %v3115_v38 = vrot.slane %v2880_v18, 1 }
 0x28b   : > { %v5358_v63 = vpack.c.bf16 %v5316_v54, %v5314_v46  ;;  %v3429_v15 = vmul.f32 %v8907_v4, %v3338_v48  ;;  %v3659_v17 = vrot.slane %v3425_v60, 2  ;;  %v3112_v32 = vsel %vm1710_vm4, %v3110_v5, %v3111_v10  ;;  %v4634_v54 = vld [vmem:[#allocation2 + $0x268] sm:$0x3] }
 0x28c   : > { %v3660_v57 = vrot.slane %v3427_v12, 2  ;;  %v3955_v36 = vmul.f32 %v6588_v11, %v8126_v40  ;;  %v3957_v19 = vmul.f32 %v6588_v11, %v8128_v56  ;;  %v3116_v47 = vsel %vm1710_vm4, %v3111_v10, %v3115_v38 }
 0x28d   : > { %5576 = vmatmul.bf16.gmra.mxu2 %v5358_v63  ;;  %v3272_v14 = vadd.f32 %v3112_v32, %v2723_v50  ;;  %v3664_v3 = vrot.slane %v3429_v15, 2  ;;  %v4172_v46 = vmul.f32 %v6590_v13, %v4083_v61  ;;  %v3274_v8 = vadd.f32 %v3116_v47, %v2725_v7  ;;  %v284_v61 = vld [vmem:[%s6212_s22 + $0x10] sm:$0xff]  }
 0x28e   : > { %v3661_v16 = vsel %vm2260_vm5, %v3659_v17, %v3660_v57  ;;  %v4174_v1 = vmul.f32 %v6590_v13, %v8128_v56  ;;  %v4176_v48 = vmul.f32 %v6590_v13, %v4085_v26  ;;  %v4721_v10 = vmul.f32 %v6606_v33, %v4632_v44  ;;  %v5539_v44 = vpop.f32.mrf.mxu2 }
 0x28f   : > { %v3665_v18 = vsel %vm2260_vm5, %v3660_v57, %v3664_v3  ;;  %v3821_v5 = vadd.f32 %v3661_v16, %v3272_v14  ;;  %v4406_v60 = vrot.slane %v4172_v46, 1  ;;  %v4723_v7 = vmul.f32 %v6606_v33, %v8128_v56 }
 0x290   : > { %v3823_v50 = vadd.f32 %v3665_v18, %v3274_v8  ;;  %v4407_v12 = vrot.slane %v4174_v1, 1  ;;  %v4411_v63 = vrot.slane %v4176_v48, 1  ;;  %v4725_v15 = vmul.f32 %v6606_v33, %v4634_v54  ;;  %v5628_v18 = vpop.f32.mrf.mxu3 }
 0x291   : > { %v4019_v38 = vadd.f32 %v3955_v36, %v3821_v5  ;;  %v4955_v17 = vrot.slane %v4721_v10, 2  ;;  %v5538_v26 = vadd.f32 %v8007_v34, %v5537_v27  ;;  %v4956_v14 = vrot.slane %v4723_v7, 2  ;;  %v552_v27 = vpop.f32.mrf.mxu0 }
 0x292   : > { %v4021_v32 = vadd.f32 %v3957_v19, %v3823_v50  ;;  %v4408_v57 = vsel %vm1710_vm4, %v4406_v60, %v4407_v12  ;;  %v4412_v47 = vsel %vm1710_vm4, %v4407_v12, %v4411_v63  ;;  %v4960_v46 = vrot.slane %v4725_v15, 2  ;;  %v641_v50 = vpop.f32.mrf.mxu1 }
 0x293   : > { %v4568_v3 = vadd.f32 %v4408_v57, %v4019_v38  ;;  %v5627_v8 = vadd.f32 %v5626_v42, %v5538_v26  ;;  %v5700_v16 = vunpack.c.l.bf16 %v284_v61  ;;  %v4957_v48 = vsel %vm2260_vm5, %v4955_v17, %v4956_v14 }
 0x294   : > { %v4570_v1 = vadd.f32 %v4412_v47, %v4021_v32  ;;  %v551_v36 = vadd.f32 %v550_v45, %v6266_v22  ;;  %v640_v54 = vadd.f32 %v639_v25, %v6270_v23  ;;  %v4961_v19 = vsel %vm2260_vm5, %v4956_v14, %v4960_v46  ;;  %v1493_v47 = vld [vmem:[#allocation2 + $0x210] sm:$0xfe] }
 0x295   : > { %v5117_v5 = vadd.f32 %v4957_v48, %v4568_v3  ;;  %v5732_v60 = vadd.f32 %v5700_v16, %v5627_v8  ;;  %v5540_v10 = vadd.f32 %v8007_v34, %v5539_v44  ;;  %v5701_v7 = vunpack.c.h.bf16 %v284_v61  ;;  %v2043_v46 = vld [vmem:[#allocation2 + $0x210] sm:$0xfc] }
 0x296   : > { %v5119_v12 = vadd.f32 %v4961_v19, %v4570_v1  ;;  %v705_v42 = vmax.f32 %v551_v36, 0.0  ;;  %v706_v63 = vmax.f32 %v640_v54, 0.0  ;;  %v553_v25 = vadd.f32 %v552_v27, %v6266_v22  ;;  %v1495_v36 = vld [vmem:[#allocation2 + $0x230] sm:$0x1] }
 0x297   : > { %v5187_v38 = vadd.f32 %v6741_v2, %v5117_v5  ;;  %v5764_v15 = vpack.c.bf16 %v5732_v60, %v5732_v60  ;;  %v5629_v45 = vadd.f32 %v5628_v18, %v5540_v10  ;;  %v642_v57 = vadd.f32 %v641_v50, %v6270_v23  ;;  %v2045_v50 = vld [vmem:[#allocation2 + $0x230] sm:$0x3] }
 0x298   : > { %v5189_v17 = vadd.f32 %v6741_v2, %v5119_v12  ;;  %v769_v26 = vmin.f32 %v705_v42, 6.0  ;;  %v770_v32 = vmin.f32 %v706_v63, 6.0  ;;  %v707_v3 = vmax.f32 %v553_v25, 0.0 }
 0x299   : > { %v5251_v14 = vmax.f32 %v5187_v38, 0.0  ;;  %5797 = vst.msk [vmem:[%s8029_s14 + $0x10] sm:$0xf] %vm5792_vm8, %v5764_v15  ;;  %v5733_v44 = vadd.f32 %v5701_v7, %v5629_v45  ;;  %v1365_v61 = vmul.f32 %v7936_v0, %v6485_v62  ;;  %v708_v48 = vmax.f32 %v642_v57, 0.0 }
 0x29a   : > { %v5253_v8 = vmax.f32 %v5189_v17, 0.0  ;;  %v1036_v16 = vrot.slane %v769_v26, 7  ;;  %v1037_v1 = vrot.slane %v770_v32, 7  ;;  %v771_v27 = vmin.f32 %v707_v3, 6.0 }
 0x29b   : > { %v5315_v54 = vmin.f32 %v5251_v14, 6.0  ;;  %v5765_v18 = vpack.c.bf16 %v5733_v44, %v5733_v44  ;;  %v1367_v19 = vmul.f32 %v8049_v6, %v6485_v62  ;;  %v772_v60 = vmin.f32 %v708_v48, 6.0 }
 0x29c   : > { %v5317_v5 = vmin.f32 %v5253_v8, 6.0  ;;  %1231 = vst [vmem:[#allocation2 + $0x2d0] sm:$0xfe] %v1036_v16  ;;  %v1584_v10 = vmul.f32 %v8908_v49, %v1493_v47  ;;  %v1586_v0 = vmul.f32 %v8049_v6, %v8908_v49  ;;  %v1038_v12 = vrot.slane %v771_v27, 7  ;;  %v2790_v47 = vld [vmem:[#allocation2 + $0x240] sm:$0xfe] }
 0x29d   : > { %1232 = vst.msk [vmem:[#allocation2 + $0x2d8] sm:$0xfe] %vm1146_vm1, %v1037_v1  ;;  %v1588_v42 = vmul.f32 %v8908_v49, %v1495_v36  ;;  %v2134_v63 = vmul.f32 %v8909_v20, %v2043_v46  ;;  %v2136_v7 = vmul.f32 %v8049_v6, %v8909_v20  ;;  %v1040_v15 = vrot.slane %v772_v60, 7  ;;  %v2792_v46 = vld [vmem:[#allocation2 + $0x260] sm:$0x1] }
 0x29e   : > { %v5359_v38 = vpack.c.bf16 %v5317_v5, %v5315_v54  ;;  %5798 = vst.msk [vmem:[%s8029_s14 + $0x14] sm:$0xf] %vm5792_vm8, %v5765_v18  ;;  %v1821_v45 = vrot.slane %v1584_v10, 1  ;;  %v1822_v25 = vrot.slane %v1586_v0, 1  ;;  %v1039_v17 = vsel %vm951_vm3, %v1036_v16, %v1038_v12  ;;  %v3339_v8 = vld [vmem:[#allocation2 + $0x240] sm:$0xfc] }
 0x29f   : > { %1235 = vst [vmem:[#allocation2 + $0x2f0] sm:$0x1] %v1038_v12  ;;  %v1827_v26 = vrot.slane %v1588_v42, 1  ;;  %v2138_v32 = vmul.f32 %v8909_v20, %v2045_v50  ;;  %v2371_v57 = vrot.slane %v2134_v63, 2  ;;  %v1041_v14 = vsel %vm951_vm3, %v1037_v1, %v1040_v15  ;;  %v3341_v60 = vld [vmem:[#allocation2 + $0x260] sm:$0x3] }
 0x2a0   : > { %6059 = vmatmul.msk.bf16.gmra.mxu3 %vm778_vm2, %v5359_v38  ;;  %1233 = vst [vmem:[#allocation2 + $0x2e0] sm:$0xff] %v1039_v17  ;;  %v1823_v6 = vsel %vm1710_vm4, %v1821_v45, %v1822_v25  ;;  %v2372_v44 = vrot.slane %v2136_v7, 2  ;;  %v2662_v3 = vmul.f32 %v8075_v41, %v6566_v59  ;;  %v2664_v54 = vmul.f32 %v8077_v9, %v6566_v59  ;;  %v8197_v12 = vld [vmem:[#allocation2 + $0x270] sm:$0xff]  ;;  %v8201_v38 = vld [vmem:[#allocation2 + $0x280] sm:$0xff] }
 0x2a1   : > { %1234 = vst.msk [vmem:[#allocation2 + $0x2e8] sm:$0xff] %vm778_vm2, %v1041_v14  ;;  %v1828_v16 = vsel %vm1710_vm4, %v1822_v25, %v1827_v26  ;;  %v1979_v48 = vadd.f32 %v1823_v6, %v1365_v61  ;;  %v2377_v36 = vrot.slane %v2138_v32, 2  ;;  %v2881_v27 = vmul.f32 %v8893_v31, %v2790_v47  ;;  %v4086_v26 = vld [vmem:[#allocation2 + $0x270] sm:$0xfe]  ;;  %v4088_v6 = vld [vmem:[#allocation2 + $0x290] sm:$0x1] }
 0x2a2   : > { %1236 = vst.msk [vmem:[#allocation2 + $0x2f8] sm:$0x1] %vm1151_vm7, %v1040_v15  ;;  %v1981_v1 = vadd.f32 %v1828_v16, %v1367_v19  ;;  %v2373_v18 = vsel %vm2260_vm5, %v2371_v57, %v2372_v44  ;;  %v2883_v5 = vmul.f32 %v8077_v9, %v8893_v31  ;;  %v2885_v61 = vmul.f32 %v8893_v31, %v2792_v46 }
 0x2a3   : > { %v2378_v10 = vsel %vm2260_vm5, %v2372_v44, %v2377_v36  ;;  %v2529_v0 = vadd.f32 %v2373_v18, %v1979_v48  ;;  %v3430_v50 = vmul.f32 %v8896_v30, %v3339_v8  ;;  %v3117_v63 = vrot.slane %v2881_v27, 1  ;;  %v4635_v44 = vld [vmem:[#allocation2 + $0x270] sm:$0xfc]  ;;  %v4637_v18 = vld [vmem:[#allocation2 + $0x290] sm:$0x3] }
 0x2a4   : > { %v2531_v42 = vadd.f32 %v2378_v10, %v1981_v1  ;;  %v3118_v19 = vrot.slane %v2883_v5, 1  ;;  %v3432_v7 = vmul.f32 %v8077_v9, %v8896_v30  ;;  %v3123_v45 = vrot.slane %v2885_v61, 1 }
 0x2a5   : > { %v2726_v15 = vadd.f32 %v2662_v3, %v2529_v0  ;;  %v3434_v25 = vmul.f32 %v8896_v30, %v3341_v60  ;;  %v3666_v17 = vrot.slane %v3430_v50, 2  ;;  %v3958_v14 = vmul.f32 %v6645_v29, %v8197_v12 }
 0x2a6   : > { %v2728_v32 = vadd.f32 %v2664_v54, %v2531_v42  ;;  %v3119_v57 = vsel %vm1710_vm4, %v3117_v63, %v3118_v19  ;;  %v3667_v47 = vrot.slane %v3432_v7, 2  ;;  %v3124_v46 = vsel %vm1710_vm4, %v3118_v19, %v3123_v45  ;;  %v1494_v45 = vld [vmem:[#allocation2 + $0x218] sm:$0xfe] }
 0x2a7   : > { %v3275_v8 = vadd.f32 %v3119_v57, %v2726_v15  ;;  %v3672_v16 = vrot.slane %v3434_v25, 2  ;;  %v3960_v3 = vmul.f32 %v6645_v29, %v8201_v38  ;;  %v4177_v54 = vmul.f32 %v6647_v24, %v4086_v26  ;;  %v1496_v57 = vld [vmem:[#allocation2 + $0x238] sm:$0x1] }
 0x2a8   : > { %v3277_v48 = vadd.f32 %v3124_v46, %v2728_v32  ;;  %v3668_v36 = vsel %vm2260_vm5, %v3666_v17, %v3667_v47  ;;  %v4179_v1 = vmul.f32 %v6647_v24, %v8201_v38  ;;  %v4181_v60 = vmul.f32 %v6647_v24, %v4088_v6 }
 0x2a9   : > { %v3673_v27 = vsel %vm2260_vm5, %v3667_v47, %v3672_v16  ;;  %v3824_v5 = vadd.f32 %v3668_v36, %v3275_v8  ;;  %v4726_v10 = vmul.f32 %v6788_v39, %v4635_v44  ;;  %v4413_v61 = vrot.slane %v4177_v54, 1  ;;  %v2044_v47 = vld [vmem:[#allocation2 + $0x218] sm:$0xfc]  ;;  %v2046_v36 = vld [vmem:[#allocation2 + $0x238] sm:$0x3] }
 0x2aa   : > { %v3826_v0 = vadd.f32 %v3673_v27, %v3277_v48  ;;  %v4414_v50 = vrot.slane %v4179_v1, 1  ;;  %v4728_v42 = vmul.f32 %v6788_v39, %v8201_v38  ;;  %v4419_v19 = vrot.slane %v4181_v60, 1 }
 0x2ab   : > { %v4022_v63 = vadd.f32 %v3958_v14, %v3824_v5  ;;  %v4730_v7 = vmul.f32 %v6788_v39, %v4637_v18  ;;  %v4962_v15 = vrot.slane %v4726_v10, 2  ;;  %v1366_v32 = vmul.f32 %v7987_v37, %v8910_v53 }
 0x2ac   : > { %v4024_v25 = vadd.f32 %v3960_v3, %v3826_v0  ;;  %v4415_v17 = vsel %vm1710_vm4, %v4413_v61, %v4414_v50  ;;  %v4963_v26 = vrot.slane %v4728_v42, 2  ;;  %v4420_v6 = vsel %vm1710_vm4, %v4414_v50, %v4419_v19 }
 0x2ad   : > { %v4571_v44 = vadd.f32 %v4415_v17, %v4022_v63  ;;  %v4968_v46 = vrot.slane %v4730_v7, 2  ;;  %v1368_v14 = vmul.f32 %v7992_v58, %v8910_v53  ;;  %v1585_v3 = vmul.f32 %v6334_v43, %v1494_v45  ;;  %v2791_v45 = vld [vmem:[#allocation2 + $0x248] sm:$0xfe] }
 0x2ae   : > { %v4573_v8 = vadd.f32 %v4420_v6, %v4024_v25  ;;  %v4964_v16 = vsel %vm2260_vm5, %v4962_v15, %v4963_v26  ;;  %v1587_v48 = vmul.f32 %v7992_v58, %v6334_v43  ;;  %v1589_v1 = vmul.f32 %v6334_v43, %v1496_v57  ;;  %v2793_v57 = vld [vmem:[#allocation2 + $0x268] sm:$0x1] }
 0x2af   : > { %v4969_v37 = vsel %vm2260_vm5, %v4963_v26, %v4968_v46  ;;  %v5120_v54 = vadd.f32 %v4964_v16, %v4571_v44  ;;  %v2135_v18 = vmul.f32 %v6350_v51, %v2044_v47  ;;  %v1824_v5 = vrot.slane %v1585_v3, 1 }
 0x2b0   : > { %v5122_v27 = vadd.f32 %v4969_v37, %v4573_v8  ;;  %v1825_v60 = vrot.slane %v1587_v48, 1  ;;  %v2137_v10 = vmul.f32 %v7992_v58, %v6350_v51  ;;  %v1829_v61 = vrot.slane %v1589_v1, 1  ;;  %v3340_v8 = vld [vmem:[#allocation2 + $0x248] sm:$0xfc]  ;;  %v5542_v37 = vpop.f32.mrf.mxu2 }
 0x2b1   : > { %v5190_v0 = vadd.f32 %v6817_v35, %v5120_v54  ;;  %v2139_v50 = vmul.f32 %v6350_v51, %v2046_v36  ;;  %v2374_v42 = vrot.slane %v2135_v18, 2  ;;  %v2663_v15 = vmul.f32 %v8126_v40, %v8904_v21  ;;  %v3342_v18 = vld [vmem:[#allocation2 + $0x268] sm:$0x3] }
 0x2b2   : > { %v5192_v63 = vadd.f32 %v6817_v35, %v5122_v27  ;;  %v1826_v19 = vsel %vm1710_vm4, %v1824_v5, %v1825_v60  ;;  %v2375_v7 = vrot.slane %v2137_v10, 2  ;;  %v1830_v17 = vsel %vm1710_vm4, %v1825_v60, %v1829_v61  ;;  %v8250_v27 = vld [vmem:[#allocation2 + $0x278] sm:$0xff]  ;;  %v555_v5 = vpop.f32.mrf.mxu0 }
 0x2b3   : > { %v5254_v25 = vmax.f32 %v5190_v0, 0.0  ;;  %v1980_v26 = vadd.f32 %v1826_v19, %v1366_v32  ;;  %v2379_v58 = vrot.slane %v2139_v50, 2  ;;  %v1982_v6 = vadd.f32 %v1830_v17, %v1368_v14  ;;  %v8255_v50 = vld [vmem:[#allocation2 + $0x288] sm:$0xff] }
 0x2b4   : > { %v5256_v47 = vmax.f32 %v5192_v63, 0.0  ;;  %v2376_v44 = vsel %vm2260_vm5, %v2374_v42, %v2375_v7  ;;  %v2665_v46 = vmul.f32 %v8128_v56, %v8904_v21  ;;  %v2882_v36 = vmul.f32 %v8906_v28, %v2791_v45  ;;  %v4087_v42 = vld [vmem:[#allocation2 + $0x278] sm:$0xfe] }
 0x2b5   : > { %v5318_v16 = vmin.f32 %v5254_v25, 6.0  ;;  %v2380_v3 = vsel %vm2260_vm5, %v2375_v7, %v2379_v58  ;;  %v2530_v48 = vadd.f32 %v2376_v44, %v1980_v26  ;;  %v2884_v32 = vmul.f32 %v8128_v56, %v8906_v28  ;;  %v644_v25 = vpop.f32.mrf.mxu1 }
 0x2b6   : > { %v5320_v54 = vmin.f32 %v5256_v47, 6.0  ;;  %v2532_v1 = vadd.f32 %v2380_v3, %v1982_v6  ;;  %v2886_v14 = vmul.f32 %v8906_v28, %v2793_v57  ;;  %v3120_v10 = vrot.slane %v2882_v36, 1  ;;  %v4089_v57 = vld [vmem:[#allocation2 + $0x298] sm:$0x1]  ;;  %v4636_v47 = vld [vmem:[#allocation2 + $0x278] sm:$0xfc]  ;;  %v5631_v6 = vpop.f32.mrf.mxu3 }
 0x2b7   : > { %v2727_v60 = vadd.f32 %v2663_v15, %v2530_v48  ;;  %v3431_v0 = vmul.f32 %v8907_v4, %v3340_v8  ;;  %v3433_v61 = vmul.f32 %v8128_v56, %v8907_v4  ;;  %v3121_v7 = vrot.slane %v2884_v32, 1  ;;  %v4638_v3 = vld [vmem:[#allocation2 + $0x298] sm:$0x3] }
 0x2b8   : > { %v5360_v63 = vpack.c.bf16 %v5320_v54, %v5318_v16  ;;  %v2729_v19 = vadd.f32 %v2665_v46, %v2532_v1  ;;  %v3125_v45 = vrot.slane %v2886_v14, 1  ;;  %v3435_v17 = vmul.f32 %v8907_v4, %v3342_v18 }
 0x2b9   : > { %v3669_v26 = vrot.slane %v3431_v0, 2  ;;  %v3670_v58 = vrot.slane %v3433_v61, 2  ;;  %v3959_v15 = vmul.f32 %v6588_v11, %v8250_v27  ;;  %v3122_v44 = vsel %vm1710_vm4, %v3120_v10, %v3121_v7 }
 0x2ba   : > { %5581 = vmatmul.bf16.gmra.mxu2 %v5360_v63  ;;  %v3126_v8 = vsel %vm1710_vm4, %v3121_v7, %v3125_v45  ;;  %v3961_v46 = vmul.f32 %v6588_v11, %v8255_v50  ;;  %v4178_v16 = vmul.f32 %v6590_v13, %v4087_v42  ;;  %v3276_v48 = vadd.f32 %v3122_v44, %v2727_v60  ;;  %v286_v63 = vld [vmem:[%s6212_s22 + $0x18] sm:$0xff]  }
 0x2bb   : > { %v3278_v36 = vadd.f32 %v3126_v8, %v2729_v19  ;;  %v3671_v54 = vsel %vm2260_vm5, %v3669_v26, %v3670_v58  ;;  %v3674_v1 = vrot.slane %v3435_v17, 2  ;;  %v4180_v32 = vmul.f32 %v6590_v13, %v8255_v50 }
 0x2bc   : > { %v4182_v14 = vmul.f32 %v6590_v13, %v4089_v57  ;;  %v4416_v18 = vrot.slane %v4178_v16, 1  ;;  %v4727_v10 = vmul.f32 %v6606_v33, %v4636_v47  ;;  %v3825_v61 = vadd.f32 %v3671_v54, %v3276_v48  ;;  %v5544_v16 = vpop.f32.mrf.mxu2 }
 0x2bd   : > { %v3675_v0 = vsel %vm2260_vm5, %v3670_v58, %v3674_v1  ;;  %v4729_v42 = vmul.f32 %v6606_v33, %v8255_v50  ;;  %v4731_v60 = vmul.f32 %v6606_v33, %v4638_v3  ;;  %v4417_v7 = vrot.slane %v4180_v32, 1  ;;  %v557_v1 = vpop.f32.mrf.mxu0 }
 0x2be   : > { %v3827_v19 = vadd.f32 %v3675_v0, %v3278_v36  ;;  %v4421_v45 = vrot.slane %v4182_v14, 1  ;;  %v4965_v17 = vrot.slane %v4727_v10, 2  ;;  %v4023_v26 = vadd.f32 %v3959_v15, %v3825_v61  ;;  %v5633_v61 = vpop.f32.mrf.mxu3 }
 0x2bf   : > { %v4966_v44 = vrot.slane %v4729_v42, 2  ;;  %v4970_v8 = vrot.slane %v4731_v60, 2  ;;  %v5543_v57 = vadd.f32 %v8007_v34, %v5542_v37  ;;  %v4418_v58 = vsel %vm1710_vm4, %v4416_v18, %v4417_v7 }
 0x2c0   : > { %v4025_v47 = vadd.f32 %v3961_v46, %v3827_v19  ;;  %v4422_v48 = vsel %vm1710_vm4, %v4417_v7, %v4421_v45  ;;  %v5702_v54 = vunpack.c.l.bf16 %v286_v63  ;;  %v4572_v52 = vadd.f32 %v4418_v58, %v4023_v26  ;;  %v646_v46 = vpop.f32.mrf.mxu1 }
 0x2c1   : > { %v4967_v3 = vsel %vm2260_vm5, %v4965_v17, %v4966_v44  ;;  %v4971_v36 = vsel %vm2260_vm5, %v4966_v44, %v4970_v8  ;;  %v5632_v32 = vadd.f32 %v5631_v6, %v5543_v57  ;;  %v556_v15 = vadd.f32 %v555_v5, %v6266_v22  ;;  %v1497_v57 = vld [vmem:[#allocation2 + $0x240] sm:$0xfe] }
 0x2c2   : > { %v4574_v14 = vadd.f32 %v4422_v48, %v4025_v47  ;;  %v645_v10 = vadd.f32 %v644_v25, %v6270_v23  ;;  %v5545_v37 = vadd.f32 %v8007_v34, %v5544_v16  ;;  %v5121_v0 = vadd.f32 %v4967_v3, %v4572_v52 }
 0x2c3   : > { %v5734_v18 = vadd.f32 %v5702_v54, %v5632_v32  ;;  %v5703_v42 = vunpack.c.h.bf16 %v286_v63  ;;  %v558_v60 = vadd.f32 %v557_v1, %v6266_v22  ;;  %v709_v7 = vmax.f32 %v556_v15, 0.0  ;;  %v1499_v63 = vld [vmem:[#allocation2 + $0x260] sm:$0x1] }
 0x2c4   : > { %v5123_v19 = vadd.f32 %v4971_v36, %v4574_v14  ;;  %v710_v45 = vmax.f32 %v645_v10, 0.0  ;;  %v5634_v17 = vadd.f32 %v5633_v61, %v5545_v37  ;;  %v5191_v6 = vadd.f32 %v6741_v2, %v5121_v0  ;;  %v2049_v0 = vld [vmem:[#allocation2 + $0x260] sm:$0x3] }
 0x2c5   : > { %v5766_v26 = vpack.c.bf16 %v5734_v18, %v5734_v18  ;;  %v711_v5 = vmax.f32 %v558_v60, 0.0  ;;  %v647_v25 = vadd.f32 %v646_v46, %v6270_v23  ;;  %v773_v44 = vmin.f32 %v709_v7, 6.0  ;;  %v2047_v23 = vld [vmem:[#allocation2 + $0x240] sm:$0xfc] }
 0x2c6   : > { %v5193_v34 = vadd.f32 %v6741_v2, %v5123_v19  ;;  %v774_v52 = vmin.f32 %v710_v45, 6.0  ;;  %v5735_v8 = vadd.f32 %v5703_v42, %v5634_v17  ;;  %v5255_v16 = vmax.f32 %v5191_v6, 0.0  ;;  %v2794_v19 = vld [vmem:[#allocation2 + $0x270] sm:$0xfe] }
 0x2c7   : > { %5799 = vst.msk [vmem:[%s8029_s14 + $0x18] sm:$0xf] %vm5792_vm8, %v5766_v26  ;;  %v775_v22 = vmin.f32 %v711_v5, 6.0  ;;  %v712_v47 = vmax.f32 %v647_v25, 0.0  ;;  %v1369_v58 = vmul.f32 %v8075_v41, %v6485_v62  ;;  %v1042_v54 = vrot.slane %v773_v44, 7 }
 0x2c8   : > { %v5257_v48 = vmax.f32 %v5193_v34, 0.0  ;;  %v1043_v1 = vrot.slane %v774_v52, 7  ;;  %v5767_v3 = vpack.c.bf16 %v5735_v8, %v5735_v8  ;;  %v5319_v36 = vmin.f32 %v5255_v16, 6.0  ;;  %v2796_v44 = vld [vmem:[#allocation2 + $0x290] sm:$0x1] }
 0x2c9   : > { %v1044_v32 = vrot.slane %v775_v22, 7  ;;  %v776_v14 = vmin.f32 %v712_v47, 6.0  ;;  %v1371_v15 = vmul.f32 %v8077_v9, %v6485_v62  ;;  %1237 = vst [vmem:[#allocation2 + $0x300] sm:$0xfe] %v1042_v54  ;;  %v1590_v37 = vmul.f32 %v8908_v49, %v1497_v57  ;;  %v3343_v57 = vld [vmem:[#allocation2 + $0x270] sm:$0xfc] }
 0x2ca   : > { %v5321_v10 = vmin.f32 %v5257_v48, 6.0  ;;  %v1592_v46 = vmul.f32 %v8077_v9, %v8908_v49  ;;  %v1594_v41 = vmul.f32 %v8908_v49, %v1499_v63  ;;  %1238 = vst.msk [vmem:[#allocation2 + $0x308] sm:$0xfe] %vm1146_vm1, %v1043_v1  ;;  %v2140_v42 = vmul.f32 %v8909_v20, %v2047_v23  ;;  %v3345_v23 = vld [vmem:[#allocation2 + $0x290] sm:$0x3] }
 0x2cb   : > { %v8299_v18 = vsel %vm951_vm3, %v1042_v54, %v1044_v32  ;;  %v1046_v61 = vrot.slane %v776_v14, 7  ;;  %v2142_v60 = vmul.f32 %v8077_v9, %v8909_v20  ;;  %5800 = vst.msk [vmem:[%s8029_s14 + $0x1c] sm:$0xf] %vm5792_vm8, %v5767_v3  ;;  %v1831_v45 = vrot.slane %v1590_v37, 1 }
 0x2cc   : > { %v5361_v7 = vpack.c.bf16 %v5321_v10, %v5319_v36  ;;  %v1832_v17 = vrot.slane %v1592_v46, 1  ;;  %v1837_v6 = vrot.slane %v1594_v41, 1  ;;  %1239 = vst [vmem:[#allocation2 + $0x310] sm:$0xff] %v8299_v18  ;;  %v2144_v5 = vmul.f32 %v8909_v20, %v2049_v0  ;;  %v8329_v0 = vld [vmem:[#allocation2 + $0x2b0] sm:$0xff] }
 0x2cd   : > { %v1047_v26 = vsel %vm951_vm3, %v1043_v1, %v1046_v61  ;;  %v2381_v25 = vrot.slane %v2140_v42, 2  ;;  %v2382_v34 = vrot.slane %v2142_v60, 2  ;;  %1241 = vst [vmem:[#allocation2 + $0x320] sm:$0x1] %v1044_v32  ;;  %v2666_v8 = vmul.f32 %v8197_v12, %v6566_v59 }
 0x2ce   : > { %6060 = vmatmul.msk.bf16.gmra.mxu3 %vm778_vm2, %v5361_v7  ;;  %v1833_v9 = vsel %vm1710_vm4, %v1831_v45, %v1832_v17  ;;  %v1838_v52 = vsel %vm1710_vm4, %v1832_v17, %v1837_v6  ;;  %1240 = vst.msk [vmem:[#allocation2 + $0x318] sm:$0xff] %vm778_vm2, %v1047_v26  ;;  %v2387_v47 = vrot.slane %v2144_v5, 2  ;;  %v2668_v48 = vmul.f32 %v8201_v38, %v6566_v59  ;;  %v4090_v7 = vld [vmem:[#allocation2 + $0x2a0] sm:$0xfe]  ;;  %v4092_v45 = vld [vmem:[#allocation2 + $0x2c0] sm:$0x1] }
 0x2cf   : > { %v1983_v63 = vadd.f32 %v1833_v9, %v1369_v58  ;;  %v1985_v16 = vadd.f32 %v1838_v52, %v1371_v15  ;;  %v2383_v22 = vsel %vm2260_vm5, %v2381_v25, %v2382_v34  ;;  %1242 = vst.msk [vmem:[#allocation2 + $0x328] sm:$0x1] %vm1151_vm7, %v1046_v61  ;;  %v2887_v54 = vmul.f32 %v8893_v31, %v2794_v19  ;;  %v8327_v15 = vld [vmem:[#allocation2 + $0x2a0] sm:$0xff] }
 0x2d0   : > { %v2889_v1 = vmul.f32 %v8201_v38, %v8893_v31  ;;  %v2891_v3 = vmul.f32 %v8893_v31, %v2796_v44  ;;  %v2388_v36 = vsel %vm2260_vm5, %v2382_v34, %v2387_v47  ;;  %v3436_v32 = vmul.f32 %v8896_v30, %v3343_v57  ;;  %v4639_v25 = vld [vmem:[#allocation2 + $0x2a0] sm:$0xfc] }
 0x2d1   : > { %v2533_v58 = vadd.f32 %v2383_v22, %v1983_v63  ;;  %v3438_v14 = vmul.f32 %v8201_v38, %v8896_v30  ;;  %v2535_v10 = vadd.f32 %v2388_v36, %v1985_v16  ;;  %v3127_v37 = vrot.slane %v2887_v54, 1  ;;  %v4641_v22 = vld [vmem:[#allocation2 + $0x2c0] sm:$0x3] }
 0x2d2   : > { %v3128_v46 = vrot.slane %v2889_v1, 1  ;;  %v3133_v41 = vrot.slane %v2891_v3, 1  ;;  %v3440_v42 = vmul.f32 %v8896_v30, %v3345_v23  ;;  %v3676_v60 = vrot.slane %v3436_v32, 2 }
 0x2d3   : > { %v2730_v61 = vadd.f32 %v2666_v8, %v2533_v58  ;;  %v3677_v19 = vrot.slane %v3438_v14, 2  ;;  %v2732_v17 = vadd.f32 %v2668_v48, %v2535_v10  ;;  %v3962_v5 = vmul.f32 %v6645_v29, %v8327_v15 }
 0x2d4   : > { %v3129_v6 = vsel %vm1710_vm4, %v3127_v37, %v3128_v46  ;;  %v3134_v26 = vsel %vm1710_vm4, %v3128_v46, %v3133_v41  ;;  %v3682_v9 = vrot.slane %v3440_v42, 2  ;;  %v3964_v52 = vmul.f32 %v6645_v29, %v8329_v0  ;;  %v1498_v46 = vld [vmem:[#allocation2 + $0x248] sm:$0xfe]  ;;  %v1500_v41 = vld [vmem:[#allocation2 + $0x268] sm:$0x1] }
 0x2d5   : > { %v3279_v34 = vadd.f32 %v3129_v6, %v2730_v61  ;;  %v3678_v44 = vsel %vm2260_vm5, %v3676_v60, %v3677_v19  ;;  %v3281_v8 = vadd.f32 %v3134_v26, %v2732_v17  ;;  %v4183_v57 = vmul.f32 %v6647_v24, %v4090_v7  ;;  %v2048_v7 = vld [vmem:[#allocation2 + $0x248] sm:$0xfc] }
 0x2d6   : > { %v4185_v63 = vmul.f32 %v6647_v24, %v8329_v0  ;;  %v4187_v16 = vmul.f32 %v6647_v24, %v4092_v45  ;;  %v3683_v47 = vsel %vm2260_vm5, %v3677_v19, %v3682_v9  ;;  %v4732_v54 = vmul.f32 %v6788_v39, %v4639_v25  ;;  %v2050_v9 = vld [vmem:[#allocation2 + $0x268] sm:$0x3] }
 0x2d7   : > { %v3828_v48 = vadd.f32 %v3678_v44, %v3279_v34  ;;  %v4734_v1 = vmul.f32 %v6788_v39, %v8329_v0  ;;  %v3830_v3 = vadd.f32 %v3683_v47, %v3281_v8  ;;  %v4423_v23 = vrot.slane %v4183_v57, 1 }
 0x2d8   : > { %v4424_v36 = vrot.slane %v4185_v63, 1  ;;  %v4429_v58 = vrot.slane %v4187_v16, 1  ;;  %v4736_v14 = vmul.f32 %v6788_v39, %v4641_v22  ;;  %v4972_v10 = vrot.slane %v4732_v54, 2 }
 0x2d9   : > { %v4026_v32 = vadd.f32 %v3962_v5, %v3828_v48  ;;  %v4973_v37 = vrot.slane %v4734_v1, 2  ;;  %v4028_v61 = vadd.f32 %v3964_v52, %v3830_v3  ;;  %v1370_v19 = vmul.f32 %v8126_v40, %v8910_v53 }
 0x2da   : > { %v4425_v42 = vsel %vm1710_vm4, %v4423_v23, %v4424_v36  ;;  %v4430_v60 = vsel %vm1710_vm4, %v4424_v36, %v4429_v58  ;;  %v4978_v6 = vrot.slane %v4736_v14, 2  ;;  %v1372_v26 = vmul.f32 %v8128_v56, %v8910_v53  ;;  %v2795_v23 = vld [vmem:[#allocation2 + $0x278] sm:$0xfe]  ;;  %v2797_v14 = vld [vmem:[#allocation2 + $0x298] sm:$0x1] }
 0x2db   : > { %v4575_v45 = vadd.f32 %v4425_v42, %v4026_v32  ;;  %v4974_v17 = vsel %vm2260_vm5, %v4972_v10, %v4973_v37  ;;  %v4577_v5 = vadd.f32 %v4430_v60, %v4028_v61  ;;  %v1591_v25 = vmul.f32 %v6334_v43, %v1498_v46  ;;  %v3344_v61 = vld [vmem:[#allocation2 + $0x278] sm:$0xfc] }
 0x2dc   : > { %v1593_v34 = vmul.f32 %v8128_v56, %v6334_v43  ;;  %v1595_v44 = vmul.f32 %v6334_v43, %v1500_v41  ;;  %v4979_v52 = vsel %vm2260_vm5, %v4973_v37, %v4978_v6  ;;  %v2141_v8 = vmul.f32 %v6350_v51, %v2048_v7 }
 0x2dd   : > { %v5124_v40 = vadd.f32 %v4974_v17, %v4575_v45  ;;  %v2143_v57 = vmul.f32 %v8128_v56, %v6350_v51  ;;  %v5126_v63 = vadd.f32 %v4979_v52, %v4577_v5  ;;  %v1834_v16 = vrot.slane %v1591_v25, 1 }
 0x2de   : > { %v1835_v22 = vrot.slane %v1593_v34, 1  ;;  %v1839_v47 = vrot.slane %v1595_v44, 1  ;;  %v2145_v54 = vmul.f32 %v6350_v51, %v2050_v9  ;;  %v2384_v1 = vrot.slane %v2141_v8, 2  ;;  %v3346_v34 = vld [vmem:[#allocation2 + $0x298] sm:$0x3] }
 0x2df   : > { %v5194_v48 = vadd.f32 %v6817_v35, %v5124_v40  ;;  %v2385_v3 = vrot.slane %v2143_v57, 2  ;;  %v5196_v36 = vadd.f32 %v6817_v35, %v5126_v63  ;;  %v2667_v56 = vmul.f32 %v8250_v27, %v8904_v21  ;;  %v8379_v40 = vld [vmem:[#allocation2 + $0x2a8] sm:$0xff] }
 0x2e0   : > { %v1836_v58 = vsel %vm1710_vm4, %v1834_v16, %v1835_v22  ;;  %v1840_v32 = vsel %vm1710_vm4, %v1835_v22, %v1839_v47  ;;  %v2389_v60 = vrot.slane %v2145_v54, 2  ;;  %v2669_v7 = vmul.f32 %v8255_v50, %v8904_v21  ;;  %v8381_v22 = vld [vmem:[#allocation2 + $0x2b8] sm:$0xff]  ;;  %v5527_v47 = vpop.f32.mrf.mxu0 }
 0x2e1   : > { %v5258_v10 = vmax.f32 %v5194_v48, 0.0  ;;  %v1984_v37 = vadd.f32 %v1836_v58, %v1370_v19  ;;  %v1986_v46 = vadd.f32 %v1840_v32, %v1372_v26  ;;  %v2386_v41 = vsel %vm2260_vm5, %v2384_v1, %v2385_v3  ;;  %v5547_v19 = vpop.f32.mrf.mxu2 }
 0x2e2   : > { %v5260_v42 = vmax.f32 %v5196_v36, 0.0  ;;  %v2888_v45 = vmul.f32 %v8906_v28, %v2795_v23  ;;  %v2890_v5 = vmul.f32 %v8255_v50, %v8906_v28  ;;  %v2892_v25 = vmul.f32 %v8906_v28, %v2797_v14  ;;  %v4093_v36 = vld [vmem:[#allocation2 + $0x2c8] sm:$0x1] }
 0x2e3   : > { %v5322_v17 = vmin.f32 %v5258_v10, 6.0  ;;  %v2534_v6 = vadd.f32 %v2386_v41, %v1984_v37  ;;  %v2390_v44 = vsel %vm2260_vm5, %v2385_v3, %v2389_v60  ;;  %v3437_v52 = vmul.f32 %v8907_v4, %v3344_v61  ;;  %v4091_v3 = vld [vmem:[#allocation2 + $0x2a8] sm:$0xfe]  ;;  %v5636_v37 = vpop.f32.mrf.mxu3 }
 0x2e4   : > { %v5324_v26 = vmin.f32 %v5260_v42, 6.0  ;;  %v3130_v9 = vrot.slane %v2888_v45, 1  ;;  %v2536_v8 = vadd.f32 %v2390_v44, %v1986_v46  ;;  %v3131_v63 = vrot.slane %v2890_v5, 1  ;;  %v4640_v10 = vld [vmem:[#allocation2 + $0x2a8] sm:$0xfc] }
 0x2e5   : > { %v2731_v57 = vadd.f32 %v2667_v56, %v2534_v6  ;;  %v3135_v16 = vrot.slane %v2892_v25, 1  ;;  %v3439_v54 = vmul.f32 %v8255_v50, %v8907_v4  ;;  %v3441_v1 = vmul.f32 %v8907_v4, %v3346_v34  ;;  %v4642_v6 = vld [vmem:[#allocation2 + $0x2c8] sm:$0x3] }
 0x2e6   : > { %v5362_v48 = vpack.c.bf16 %v5324_v26, %v5322_v17  ;;  %v3679_v23 = vrot.slane %v3437_v52, 2  ;;  %v2733_v58 = vadd.f32 %v2669_v7, %v2536_v8  ;;  %v3132_v32 = vsel %vm1710_vm4, %v3130_v9, %v3131_v63 }
 0x2e7   : > { %v3136_v14 = vsel %vm1710_vm4, %v3131_v63, %v3135_v16  ;;  %v3963_v56 = vmul.f32 %v6588_v11, %v8379_v40  ;;  %v3280_v46 = vadd.f32 %v3132_v32, %v2731_v57  ;;  %v3680_v41 = vrot.slane %v3439_v54, 2  ;;  %v288_v57 = vld [vmem:[%s6212_s22 + $0x20] sm:$0xff]  }
 0x2e8   : > { %5586 = vmatmul.bf16.gmra.mxu2 %v5362_v48  ;;  %v3684_v61 = vrot.slane %v3441_v1, 2  ;;  %v3965_v42 = vmul.f32 %v6588_v11, %v8381_v22  ;;  %v3282_v60 = vadd.f32 %v3136_v14, %v2733_v58  ;;  %v4184_v7 = vmul.f32 %v6590_v13, %v4091_v3  ;;  %v280_v32 = vld [vmem:[%s6212_s22] sm:$0xff]  }
 0x2e9   : > { %v4186_v45 = vmul.f32 %v6590_v13, %v8381_v22  ;;  %v4188_v17 = vmul.f32 %v6590_v13, %v4093_v36  ;;  %v3681_v5 = vsel %vm2260_vm5, %v3679_v23, %v3680_v41  ;;  %v4733_v34 = vmul.f32 %v6606_v33, %v4640_v10  ;;  %v8407_v36 = vld [vmem:[%s8832_s6] ss:$0 sm:$0xff]  ;;  %v5549_v14 = vpop.f32.mrf.mxu2 }
 0x2ea   : > { %v3685_v25 = vsel %vm2260_vm5, %v3680_v41, %v3684_v61  ;;  %v4735_v26 = vmul.f32 %v6606_v33, %v8381_v22  ;;  %v3829_v44 = vadd.f32 %v3681_v5, %v3280_v46  ;;  %v4426_v52 = vrot.slane %v4184_v7, 1 }
 0x2eb   : > { %v3831_v9 = vadd.f32 %v3685_v25, %v3282_v60  ;;  %v4427_v8 = vrot.slane %v4186_v45, 1  ;;  %v4431_v63 = vrot.slane %v4188_v17, 1  ;;  %v4737_v16 = vmul.f32 %v6606_v33, %v4642_v6  ;;  %v5529_v45 = vpop.f32.mrf.mxu0 }
 0x2ec   : > { %v4975_v48 = vrot.slane %v4733_v34, 2  ;;  %v4976_v54 = vrot.slane %v4735_v26, 2  ;;  %v4027_v1 = vadd.f32 %v3963_v56, %v3829_v44  ;;  %v5548_v58 = vadd.f32 %v8407_v36, %v5547_v19 }
 0x2ed   : > { %v4029_v23 = vadd.f32 %v3965_v42, %v3831_v9  ;;  %v4428_v3 = vsel %vm1710_vm4, %v4426_v52, %v4427_v8  ;;  %v4432_v10 = vsel %vm1710_vm4, %v4427_v8, %v4431_v63  ;;  %v4980_v41 = vrot.slane %v4737_v16, 2  ;;  %v5638_v9 = vpop.f32.mrf.mxu3  ;;  %v1501_v52 = vld [vmem:[#allocation2 + $0x270] sm:$0xfe] }
 0x2ee   : > { %v4977_v46 = vsel %vm2260_vm5, %v4975_v48, %v4976_v54  ;;  %v5704_v61 = vunpack.c.l.bf16 %v288_v57  ;;  %v4576_v60 = vadd.f32 %v4428_v3, %v4027_v1  ;;  %v5637_v42 = vadd.f32 %v5636_v37, %v5548_v58  ;;  %v1503_v1 = vld [vmem:[#allocation2 + $0x290] sm:$0x1] }
 0x2ef   : > { %v4578_v56 = vadd.f32 %v4432_v10, %v4029_v23  ;;  %v5528_v7 = vadd.f32 %v8407_v36, %v5527_v47  ;;  %v4981_v17 = vsel %vm2260_vm5, %v4976_v54, %v4980_v41  ;;  %v5696_v6 = vunpack.c.l.bf16 %v280_v32  ;;  %v8912_v3 = vld [vmem:[#allocation13_spill] sm:$0xff] }
 0x2f0   : > { %v5550_v5 = vadd.f32 %v8407_v36, %v5549_v14  ;;  %v5705_v19 = vunpack.c.h.bf16 %v288_v57  ;;  %v5125_v25 = vadd.f32 %v4977_v46, %v4576_v60  ;;  %v5736_v26 = vadd.f32 %v5704_v61, %v5637_v42  ;;  %v2053_v61 = vld [vmem:[#allocation2 + $0x290] sm:$0x3] }
 0x2f1   : > { %v5127_v34 = vadd.f32 %v4981_v17, %v4578_v56  ;;  %v5617_v44 = vadd.f32 %v7929_v55, %v5528_v7  ;;  %v5530_v37 = vadd.f32 %v8407_v36, %v5529_v45  ;;  %v5697_v63 = vunpack.c.h.bf16 %v280_v32  ;;  %v2051_v32 = vld [vmem:[#allocation2 + $0x270] sm:$0xfc] }
 0x2f2   : > { %v5639_v8 = vadd.f32 %v5638_v9, %v5550_v5  ;;  %v1373_v47 = vmul.f32 %v8197_v12, %v6485_v62  ;;  %v5195_v16 = vadd.f32 %v6741_v2, %v5125_v25  ;;  %v5768_v57 = vpack.c.bf16 %v5736_v26, %v5736_v26 }
 0x2f3   : > { %v5197_v48 = vadd.f32 %v6741_v2, %v5127_v34  ;;  %v5728_v54 = vadd.f32 %v5696_v6, %v5617_v44  ;;  %v5619_v55 = vadd.f32 %v8912_v3, %v5530_v37  ;;  %v1375_v58 = vmul.f32 %v8201_v38, %v6485_v62  ;;  %v2798_v44 = vld [vmem:[#allocation2 + $0x2a0] sm:$0xfe] }
 0x2f4   : > { %v5737_v23 = vadd.f32 %v5705_v19, %v5639_v8  ;;  %v1596_v14 = vmul.f32 %v8908_v49, %v1501_v52  ;;  %v5259_v10 = vmax.f32 %v5195_v16, 0.0  ;;  %5801 = vst.msk [vmem:[%s8029_s14 + $0x20] sm:$0xf] %vm5792_vm8, %v5768_v57  ;;  %v1598_v41 = vmul.f32 %v8201_v38, %v8908_v49  ;;  %v3347_v16 = vld [vmem:[#allocation2 + $0x2a0] sm:$0xfc] }
 0x2f5   : > { %v5261_v12 = vmax.f32 %v5197_v48, 0.0  ;;  %v5760_v46 = vpack.c.bf16 %v5728_v54, %v5728_v54  ;;  %v5729_v56 = vadd.f32 %v5697_v63, %v5619_v55  ;;  %v1600_v42 = vmul.f32 %v8908_v49, %v1503_v1  ;;  %v2800_v63 = vld [vmem:[#allocation2 + $0x2c0] sm:$0x1] }
 0x2f6   : > { %v5769_v60 = vpack.c.bf16 %v5737_v23, %v5737_v23  ;;  %v1841_v7 = vrot.slane %v1596_v14, 1  ;;  %v5323_v45 = vmin.f32 %v5259_v10, 6.0  ;;  %v1842_v6 = vrot.slane %v1598_v41, 1  ;;  %v3349_v14 = vld [vmem:[#allocation2 + $0x2c0] sm:$0x3] }
 0x2f7   : > { %v5325_v17 = vmin.f32 %v5261_v12, 6.0  ;;  %5793 = vst.msk [vmem:[%s8029_s14] sm:$0xf] %vm5792_vm8, %v5760_v46  ;;  %v2146_v5 = vmul.f32 %v8909_v20, %v2051_v32  ;;  %v5761_v19 = vpack.c.bf16 %v5729_v56, %v5729_v56  ;;  %v1847_v25 = vrot.slane %v1600_v42, 1  ;;  %v8455_v46 = vld [vmem:[#allocation2 + $0x2d0] sm:$0xff]  ;;  %v8457_v56 = vld [vmem:[#allocation2 + $0x2e0] sm:$0xff] }
 0x2f8   : > { %5802 = vst.msk [vmem:[%s8029_s14 + $0x24] sm:$0xf] %vm5792_vm8, %v5769_v60  ;;  %v2148_v34 = vmul.f32 %v8201_v38, %v8909_v20  ;;  %v2150_v26 = vmul.f32 %v8909_v20, %v2053_v61  ;;  %v1843_v52 = vsel %vm1710_vm4, %v1841_v7, %v1842_v6  ;;  %v2670_v37 = vmul.f32 %v8327_v15, %v6566_v59 }
 0x2f9   : > { %v5363_v9 = vpack.c.bf16 %v5325_v17, %v5323_v45  ;;  %v2391_v8 = vrot.slane %v2146_v5, 2  ;;  %5794 = vst.msk [vmem:[%s8029_s14 + $0x4] sm:$0xf] %vm5792_vm8, %v5761_v19  ;;  %v1848_v48 = vsel %vm1710_vm4, %v1842_v6, %v1847_v25  ;;  %v1987_v57 = vadd.f32 %v1843_v52, %v1373_v47  ;;  %v4094_v6 = vld [vmem:[#allocation2 + $0x2d0] sm:$0xfe] }
 0x2fa   : > { %v2392_v54 = vrot.slane %v2148_v34, 2  ;;  %v2397_v1 = vrot.slane %v2150_v26, 2  ;;  %v1989_v38 = vadd.f32 %v1848_v48, %v1375_v58  ;;  %v2672_v23 = vmul.f32 %v8329_v0, %v6566_v59  ;;  %v4096_v26 = vld [vmem:[#allocation2 + $0x2f0] sm:$0x1] }
 0x2fb   : > { %6061 = vmatmul.msk.bf16.gmra.mxu3 %vm778_vm2, %v5363_v9  ;;  %v2893_v3 = vmul.f32 %v8893_v31, %v2798_v44  ;;  %v2895_v55 = vmul.f32 %v8329_v0, %v8893_v31  ;;  %v2897_v47 = vmul.f32 %v8893_v31, %v2800_v63  ;;  %v3442_v12 = vmul.f32 %v8896_v30, %v3347_v16  ;;  %v4643_v44 = vld [vmem:[#allocation2 + $0x2d0] sm:$0xfc] }
 0x2fc   : > { %v2393_v32 = vsel %vm2260_vm5, %v2391_v8, %v2392_v54  ;;  %v2398_v10 = vsel %vm2260_vm5, %v2392_v54, %v2397_v1  ;;  %v3444_v7 = vmul.f32 %v8329_v0, %v8896_v30  ;;  %v3446_v45 = vmul.f32 %v8896_v30, %v3349_v14  ;;  %v4645_v54 = vld [vmem:[#allocation2 + $0x2f0] sm:$0x3] }
 0x2fd   : > { %v2537_v58 = vadd.f32 %v2393_v32, %v1987_v57  ;;  %v2539_v41 = vadd.f32 %v2398_v10, %v1989_v38  ;;  %v3137_v61 = vrot.slane %v2893_v3, 1  ;;  %v3138_v60 = vrot.slane %v2895_v55, 1 }
 0x2fe   : > { %v3143_v42 = vrot.slane %v2897_v47, 1  ;;  %v3686_v17 = vrot.slane %v3442_v12, 2  ;;  %v3966_v34 = vmul.f32 %v6645_v29, %v8455_v46  ;;  %v3687_v52 = vrot.slane %v3444_v7, 2 }
 0x2ff   : > { %v2734_v5 = vadd.f32 %v2670_v37, %v2537_v58  ;;  %v2736_v19 = vadd.f32 %v2672_v23, %v2539_v41  ;;  %v3139_v25 = vsel %vm1710_vm4, %v3137_v61, %v3138_v60  ;;  %v3692_v8 = vrot.slane %v3446_v45, 2  ;;  %v1502_v61 = vld [vmem:[#allocation2 + $0x278] sm:$0xfe] }
 0x300   : > { %v3144_v9 = vsel %vm1710_vm4, %v3138_v60, %v3143_v42  ;;  %v3968_v63 = vmul.f32 %v6645_v29, %v8457_v56  ;;  %v4189_v57 = vmul.f32 %v6647_v24, %v4094_v6  ;;  %v4191_v37 = vmul.f32 %v6647_v24, %v8457_v56  ;;  %v2052_v6 = vld [vmem:[#allocation2 + $0x278] sm:$0xfc] }
 0x301   : > { %v3283_v16 = vadd.f32 %v3139_v25, %v2734_v5  ;;  %v3285_v48 = vadd.f32 %v3144_v9, %v2736_v19  ;;  %v3688_v1 = vsel %vm2260_vm5, %v3686_v17, %v3687_v52  ;;  %v3693_v38 = vsel %vm2260_vm5, %v3687_v52, %v3692_v8  ;;  %v1504_v17 = vld [vmem:[#allocation2 + $0x298] sm:$0x1] }
 0x302   : > { %v4193_v23 = vmul.f32 %v6647_v24, %v4096_v26  ;;  %v4738_v3 = vmul.f32 %v6788_v39, %v4643_v44  ;;  %v4433_v32 = vrot.slane %v4189_v57, 1  ;;  %v4434_v10 = vrot.slane %v4191_v37, 1  ;;  %v2054_v8 = vld [vmem:[#allocation2 + $0x298] sm:$0x3] }
 0x303   : > { %v3832_v55 = vadd.f32 %v3688_v1, %v3283_v16  ;;  %v3834_v14 = vadd.f32 %v3693_v38, %v3285_v48  ;;  %v4740_v12 = vmul.f32 %v6788_v39, %v8457_v56  ;;  %v4742_v58 = vmul.f32 %v6788_v39, %v4645_v54 }
 0x304   : > { %v4439_v47 = vrot.slane %v4193_v23, 1  ;;  %v4982_v41 = vrot.slane %v4738_v3, 2  ;;  %v4435_v7 = vsel %vm1710_vm4, %v4433_v32, %v4434_v10  ;;  %v1374_v45 = vmul.f32 %v8250_v27, %v8910_v53 }
 0x305   : > { %v4030_v60 = vadd.f32 %v3966_v34, %v3832_v55  ;;  %v4032_v42 = vadd.f32 %v3968_v63, %v3834_v14  ;;  %v4983_v19 = vrot.slane %v4740_v12, 2  ;;  %v4988_v25 = vrot.slane %v4742_v58, 2  ;;  %v2799_v12 = vld [vmem:[#allocation2 + $0x2a8] sm:$0xfe] }
 0x306   : > { %v4440_v5 = vsel %vm1710_vm4, %v4434_v10, %v4439_v47  ;;  %v1376_v26 = vmul.f32 %v8255_v50, %v8910_v53  ;;  %v1597_v52 = vmul.f32 %v6334_v43, %v1502_v61  ;;  %v1599_v34 = vmul.f32 %v8255_v50, %v6334_v43 }
 0x307   : > { %v4579_v44 = vadd.f32 %v4435_v7, %v4030_v60  ;;  %v4581_v9 = vadd.f32 %v4440_v5, %v4032_v42  ;;  %v4984_v63 = vsel %vm2260_vm5, %v4982_v41, %v4983_v19  ;;  %v4989_v27 = vsel %vm2260_vm5, %v4983_v19, %v4988_v25  ;;  %v3348_v5 = vld [vmem:[#allocation2 + $0x2a8] sm:$0xfc]  ;;  %v5552_v19 = vpop.f32.mrf.mxu2 }
 0x308   : > { %v1601_v16 = vmul.f32 %v6334_v43, %v1504_v17  ;;  %v2147_v48 = vmul.f32 %v6350_v51, %v2052_v6  ;;  %v1844_v54 = vrot.slane %v1597_v52, 1  ;;  %v1845_v1 = vrot.slane %v1599_v34, 1  ;;  %v2801_v6 = vld [vmem:[#allocation2 + $0x2c8] sm:$0x1] }
 0x309   : > { %v5128_v57 = vadd.f32 %v4984_v63, %v4579_v44  ;;  %v5130_v37 = vadd.f32 %v4989_v27, %v4581_v9  ;;  %v2149_v23 = vmul.f32 %v8255_v50, %v6350_v51  ;;  %v2151_v3 = vmul.f32 %v6350_v51, %v2054_v8 }
 0x30a   : > { %v1849_v38 = vrot.slane %v1601_v16, 1  ;;  %v2394_v55 = vrot.slane %v2147_v48, 2  ;;  %v1846_v10 = vsel %vm1710_vm4, %v1844_v54, %v1845_v1  ;;  %v2671_v47 = vmul.f32 %v8379_v40, %v8904_v21  ;;  %v8511_v54 = vld [vmem:[#allocation2 + $0x2e8] sm:$0xff] }
 0x30b   : > { %v5198_v14 = vadd.f32 %v6817_v35, %v5128_v57  ;;  %v5200_v32 = vadd.f32 %v6817_v35, %v5130_v37  ;;  %v1988_v41 = vadd.f32 %v1846_v10, %v1374_v45  ;;  %v2395_v61 = vrot.slane %v2149_v23, 2  ;;  %v8509_v37 = vld [vmem:[#allocation2 + $0x2d8] sm:$0xff] }
 0x30c   : > { %v1850_v58 = vsel %vm1710_vm4, %v1845_v1, %v1849_v38  ;;  %v2399_v60 = vrot.slane %v2151_v3, 2  ;;  %v2673_v17 = vmul.f32 %v8381_v22, %v8904_v21  ;;  %v2894_v9 = vmul.f32 %v8906_v28, %v2799_v12 }
 0x30d   : > { %v5262_v42 = vmax.f32 %v5198_v14, 0.0  ;;  %v5264_v50 = vmax.f32 %v5200_v32, 0.0  ;;  %v1990_v7 = vadd.f32 %v1850_v58, %v1376_v26  ;;  %v2396_v25 = vsel %vm2260_vm5, %v2394_v55, %v2395_v61  ;;  %v3350_v26 = vld [vmem:[#allocation2 + $0x2c8] sm:$0x3]  ;;  %v4095_v55 = vld [vmem:[#allocation2 + $0x2d8] sm:$0xfe]  ;;  %v5641_v14 = vpop.f32.mrf.mxu3 }
 0x30e   : > { %v2400_v44 = vsel %vm2260_vm5, %v2395_v61, %v2399_v60  ;;  %v2896_v45 = vmul.f32 %v8381_v22, %v8906_v28  ;;  %v2538_v8 = vadd.f32 %v2396_v25, %v1988_v41  ;;  %v2898_v27 = vmul.f32 %v8906_v28, %v2801_v6  ;;  %v4097_v41 = vld [vmem:[#allocation2 + $0x2f8] sm:$0x1]  ;;  %v4644_v61 = vld [vmem:[#allocation2 + $0x2d8] sm:$0xfc] }
 0x30f   : > { %v5326_v52 = vmin.f32 %v5262_v42, 6.0  ;;  %v5328_v34 = vmin.f32 %v5264_v50, 6.0  ;;  %v2540_v63 = vadd.f32 %v2400_v44, %v1990_v7  ;;  %v3140_v16 = vrot.slane %v2894_v9, 1  ;;  %v4646_v25 = vld [vmem:[#allocation2 + $0x2f8] sm:$0x3] }
 0x310   : > { %v3141_v48 = vrot.slane %v2896_v45, 1  ;;  %v3443_v57 = vmul.f32 %v8907_v4, %v3348_v5  ;;  %v2735_v38 = vadd.f32 %v2671_v47, %v2538_v8  ;;  %v3445_v3 = vmul.f32 %v8381_v22, %v8907_v4 }
 0x311   : > { %v5364_v1 = vpack.c.bf16 %v5328_v34, %v5326_v52  ;;  %v2737_v23 = vadd.f32 %v2673_v17, %v2540_v63  ;;  %v3145_v10 = vrot.slane %v2898_v27, 1  ;;  %v3447_v12 = vmul.f32 %v8907_v4, %v3350_v26 }
 0x312   : > { %v3142_v32 = vsel %vm1710_vm4, %v3140_v16, %v3141_v48  ;;  %v3689_v58 = vrot.slane %v3443_v57, 2  ;;  %v3690_v42 = vrot.slane %v3445_v3, 2  ;;  %v3967_v47 = vmul.f32 %v6588_v11, %v8509_v37 }
 0x313   : > { %5591 = vmatmul.bf16.gmra.mxu2 %v5364_v1  ;;  %v3284_v60 = vadd.f32 %v3142_v32, %v2735_v38  ;;  %v3969_v50 = vmul.f32 %v6588_v11, %v8511_v54  ;;  %v3146_v7 = vsel %vm1710_vm4, %v3141_v48, %v3145_v10  ;;  %v3694_v17 = vrot.slane %v3447_v12, 2  ;;  %v290_v1 = vld [vmem:[%s6212_s22 + $0x28] sm:$0xff]   ;;  %v5554_v38 = vpop.f32.mrf.mxu2 }
 0x314   : > { %v4190_v6 = vmul.f32 %v6590_v13, %v4095_v55  ;;  %v4192_v5 = vmul.f32 %v6590_v13, %v8511_v54  ;;  %v3286_v44 = vadd.f32 %v3146_v7, %v2737_v23  ;;  %v3691_v9 = vsel %vm2260_vm5, %v3689_v58, %v3690_v42 }
 0x315   : > { %v4194_v45 = vmul.f32 %v6590_v13, %v4097_v41  ;;  %v4739_v52 = vmul.f32 %v6606_v33, %v4644_v61  ;;  %v3695_v34 = vsel %vm2260_vm5, %v3690_v42, %v3694_v17  ;;  %v3833_v8 = vadd.f32 %v3691_v9, %v3284_v60  ;;  %v1505_v17 = vld [vmem:[#allocation2 + $0x2a0] sm:$0xfe]  ;;  %v1507_v9 = vld [vmem:[#allocation2 + $0x2c0] sm:$0x1] }
 0x316   : > { %v4436_v63 = vrot.slane %v4190_v6, 1  ;;  %v4437_v26 = vrot.slane %v4192_v5, 1  ;;  %v3835_v27 = vadd.f32 %v3695_v34, %v3286_v44  ;;  %v4741_v48 = vmul.f32 %v6606_v33, %v8511_v54 }
 0x317   : > { %v4441_v16 = vrot.slane %v4194_v45, 1  ;;  %v4743_v57 = vmul.f32 %v6606_v33, %v4646_v25  ;;  %v4031_v23 = vadd.f32 %v3967_v47, %v3833_v8  ;;  %v4985_v55 = vrot.slane %v4739_v52, 2  ;;  %v5643_v25 = vpop.f32.mrf.mxu3 }
 0x318   : > { %v4438_v3 = vsel %vm1710_vm4, %v4436_v63, %v4437_v26  ;;  %v5553_v32 = vadd.f32 %v8407_v36, %v5552_v19  ;;  %v4033_v10 = vadd.f32 %v3969_v50, %v3835_v27  ;;  %v4986_v58 = vrot.slane %v4741_v48, 2 }
 0x319   : > { %v4442_v12 = vsel %vm1710_vm4, %v4437_v26, %v4441_v16  ;;  %v4990_v41 = vrot.slane %v4743_v57, 2  ;;  %v4580_v61 = vadd.f32 %v4438_v3, %v4031_v23  ;;  %v5706_v42 = vunpack.c.l.bf16 %v290_v1 }
 0x31a   : > { %v5642_v60 = vadd.f32 %v5641_v14, %v5553_v32  ;;  %v5555_v7 = vadd.f32 %v8407_v36, %v5554_v38  ;;  %v4582_v6 = vadd.f32 %v4442_v12, %v4033_v10  ;;  %v4987_v5 = vsel %vm2260_vm5, %v4985_v55, %v4986_v58  ;;  %v2055_v14 = vld [vmem:[#allocation2 + $0x2a0] sm:$0xfc] }
 0x31b   : > { %v4991_v47 = vsel %vm2260_vm5, %v4986_v58, %v4990_v41  ;;  %v5707_v44 = vunpack.c.h.bf16 %v290_v1  ;;  %v5129_v19 = vadd.f32 %v4987_v5, %v4580_v61  ;;  %v1377_v52 = vmul.f32 %v8327_v15, %v6485_v62  ;;  %v2057_v1 = vld [vmem:[#allocation2 + $0x2c0] sm:$0x3] }
 0x31c   : > { %v5738_v50 = vadd.f32 %v5706_v42, %v5642_v60  ;;  %v5644_v45 = vadd.f32 %v5643_v25, %v5555_v7  ;;  %v5131_v34 = vadd.f32 %v4991_v47, %v4582_v6  ;;  %v1379_v8 = vmul.f32 %v8329_v0, %v6485_v62  ;;  %v2802_v42 = vld [vmem:[#allocation2 + $0x2d0] sm:$0xfe]  ;;  %v2804_v47 = vld [vmem:[#allocation2 + $0x2f0] sm:$0x1] }
 0x31d   : > { %v1602_v63 = vmul.f32 %v8908_v49, %v1505_v17  ;;  %v1604_v26 = vmul.f32 %v8329_v0, %v8908_v49  ;;  %v5199_v27 = vadd.f32 %v6741_v2, %v5129_v19  ;;  %v1606_v57 = vmul.f32 %v8908_v49, %v1507_v9  ;;  %v3351_v19 = vld [vmem:[#allocation2 + $0x2d0] sm:$0xfc] }
 0x31e   : > { %v5770_v16 = vpack.c.bf16 %v5738_v50, %v5738_v50  ;;  %v5739_v48 = vadd.f32 %v5707_v44, %v5644_v45  ;;  %v5201_v15 = vadd.f32 %v6741_v2, %v5131_v34  ;;  %v2152_v3 = vmul.f32 %v8909_v20, %v2055_v14 }
 0x31f   : > { %v1851_v38 = vrot.slane %v1602_v63, 1  ;;  %v1852_v23 = vrot.slane %v1604_v26, 1  ;;  %v5263_v55 = vmax.f32 %v5199_v27, 0.0  ;;  %v1857_v10 = vrot.slane %v1606_v57, 1 }
 0x320   : > { %5803 = vst.msk [vmem:[%s8029_s14 + $0x28] sm:$0xf] %vm5792_vm8, %v5770_v16  ;;  %v5771_v32 = vpack.c.bf16 %v5739_v48, %v5739_v48  ;;  %v2154_v12 = vmul.f32 %v8329_v0, %v8909_v20  ;;  %v5265_v58 = vmax.f32 %v5201_v15, 0.0  ;;  %v2156_v61 = vmul.f32 %v8909_v20, %v2057_v1  ;;  %v8569_v16 = vld [vmem:[#allocation2 + $0x300] sm:$0xff] }
 0x321   : > { %v1853_v41 = vsel %vm1710_vm4, %v1851_v38, %v1852_v23  ;;  %v2401_v60 = vrot.slane %v2152_v3, 2  ;;  %v5327_v7 = vmin.f32 %v5263_v55, 6.0  ;;  %v1858_v17 = vsel %vm1710_vm4, %v1852_v23, %v1857_v10 }
 0x322   : > { %5804 = vst.msk [vmem:[%s8029_s14 + $0x2c] sm:$0xf] %vm5792_vm8, %v5771_v32  ;;  %v1991_v6 = vadd.f32 %v1853_v41, %v1377_v52  ;;  %v2402_v5 = vrot.slane %v2154_v12, 2  ;;  %v5329_v25 = vmin.f32 %v5265_v58, 6.0  ;;  %v1993_v44 = vadd.f32 %v1858_v17, %v1379_v8  ;;  %v3353_v52 = vld [vmem:[#allocation2 + $0x2f0] sm:$0x3] }
 0x323   : > { %v2407_v9 = vrot.slane %v2156_v61, 2  ;;  %v2674_v0 = vmul.f32 %v8455_v46, %v6566_v59  ;;  %v2676_v45 = vmul.f32 %v8457_v56, %v6566_v59  ;;  %v2899_v14 = vmul.f32 %v8893_v31, %v2802_v42  ;;  %v4098_v32 = vld [vmem:[#allocation2 + $0x300] sm:$0xfe]  ;;  %v4100_v61 = vld [vmem:[#allocation2 + $0x320] sm:$0x1] }
 0x324   : > { %v2403_v50 = vsel %vm2260_vm5, %v2401_v60, %v2402_v5  ;;  %v2901_v34 = vmul.f32 %v8457_v56, %v8893_v31  ;;  %v5365_v63 = vpack.c.bf16 %v5329_v25, %v5327_v7  ;;  %v2903_v27 = vmul.f32 %v8893_v31, %v2804_v47  ;;  %v4647_v60 = vld [vmem:[#allocation2 + $0x300] sm:$0xfc] }
 0x325   : > { %v2408_v26 = vsel %vm2260_vm5, %v2402_v5, %v2407_v9  ;;  %v2541_v8 = vadd.f32 %v2403_v50, %v1991_v6  ;;  %v3147_v57 = vrot.slane %v2899_v14, 1  ;;  %v3448_v15 = vmul.f32 %v8896_v30, %v3351_v19  ;;  %v4649_v9 = vld [vmem:[#allocation2 + $0x320] sm:$0x3] }
 0x326   : > { %v2543_v48 = vadd.f32 %v2408_v26, %v1993_v44  ;;  %v3148_v1 = vrot.slane %v2901_v34, 1  ;;  %6062 = vmatmul.msk.bf16.gmra.mxu3 %vm778_vm2, %v5365_v63  ;;  %v3153_v23 = vrot.slane %v2903_v27, 1  ;;  %v3450_v3 = vmul.f32 %v8457_v56, %v8896_v30 }
 0x327   : > { %v2738_v38 = vadd.f32 %v2674_v0, %v2541_v8  ;;  %v3452_v55 = vmul.f32 %v8896_v30, %v3353_v52  ;;  %v3696_v58 = vrot.slane %v3448_v15, 2  ;;  %v3970_v41 = vmul.f32 %v6645_v29, %v8569_v16 }
 0x328   : > { %v2740_v10 = vadd.f32 %v2676_v45, %v2543_v48  ;;  %v3149_v12 = vsel %vm1710_vm4, %v3147_v57, %v3148_v1  ;;  %v3154_v42 = vsel %vm1710_vm4, %v3148_v1, %v3153_v23  ;;  %v3697_v17 = vrot.slane %v3450_v3, 2  ;;  %v1506_v57 = vld [vmem:[#allocation2 + $0x2a8] sm:$0xfe]  ;;  %v1508_v3 = vld [vmem:[#allocation2 + $0x2c8] sm:$0x1] }
 0x329   : > { %v3287_v7 = vadd.f32 %v3149_v12, %v2738_v38  ;;  %v3702_v6 = vrot.slane %v3452_v55, 2  ;;  %v3972_v47 = vmul.f32 %v6645_v29, %v8299_v18  ;;  %v4195_v25 = vmul.f32 %v6647_v24, %v4098_v32  ;;  %v2056_v55 = vld [vmem:[#allocation2 + $0x2a8] sm:$0xfc] }
 0x32a   : > { %v3289_v5 = vadd.f32 %v3154_v42, %v2740_v10  ;;  %v4197_v44 = vmul.f32 %v6647_v24, %v8299_v18  ;;  %v3698_v0 = vsel %vm2260_vm5, %v3696_v58, %v3697_v17  ;;  %v4199_v50 = vmul.f32 %v6647_v24, %v4100_v61  ;;  %v2058_v42 = vld [vmem:[#allocation2 + $0x2c8] sm:$0x3] }
 0x32b   : > { %v3703_v19 = vsel %vm2260_vm5, %v3697_v17, %v3702_v6  ;;  %v4744_v45 = vmul.f32 %v6788_v39, %v4647_v60  ;;  %v3836_v14 = vadd.f32 %v3698_v0, %v3287_v7  ;;  %v4443_v52 = vrot.slane %v4195_v25, 1 }
 0x32c   : > { %v3838_v34 = vadd.f32 %v3703_v19, %v3289_v5  ;;  %v4444_v63 = vrot.slane %v4197_v44, 1  ;;  %v4449_v26 = vrot.slane %v4199_v50, 1  ;;  %v4746_v8 = vmul.f32 %v6788_v39, %v8299_v18 }
 0x32d   : > { %v4748_v27 = vmul.f32 %v6788_v39, %v4649_v9  ;;  %v4992_v48 = vrot.slane %v4744_v45, 2  ;;  %v4034_v1 = vadd.f32 %v3970_v41, %v3836_v14  ;;  %v1378_v23 = vmul.f32 %v8379_v40, %v8910_v53 }
 0x32e   : > { %v4036_v15 = vadd.f32 %v3972_v47, %v3838_v34  ;;  %v4445_v38 = vsel %vm1710_vm4, %v4443_v52, %v4444_v63  ;;  %v4450_v32 = vsel %vm1710_vm4, %v4444_v63, %v4449_v26  ;;  %v4993_v10 = vrot.slane %v4746_v8, 2  ;;  %v2803_v63 = vld [vmem:[#allocation2 + $0x2d8] sm:$0xfe] }
 0x32f   : > { %v4998_v12 = vrot.slane %v4748_v27, 2  ;;  %v1380_v18 = vmul.f32 %v8381_v22, %v8910_v53  ;;  %v4583_v58 = vadd.f32 %v4445_v38, %v4034_v1  ;;  %v1603_v60 = vmul.f32 %v6334_v43, %v1506_v57  ;;  %v2805_v38 = vld [vmem:[#allocation2 + $0x2f8] sm:$0x1] }
 0x330   : > { %v4585_v61 = vadd.f32 %v4450_v32, %v4036_v15  ;;  %v1605_v41 = vmul.f32 %v8381_v22, %v6334_v43  ;;  %v4994_v7 = vsel %vm2260_vm5, %v4992_v48, %v4993_v10  ;;  %v1607_v17 = vmul.f32 %v6334_v43, %v1508_v3  ;;  %v3352_v3 = vld [vmem:[#allocation2 + $0x2d8] sm:$0xfc] }
 0x331   : > { %v4999_v40 = vsel %vm2260_vm5, %v4993_v10, %v4998_v12  ;;  %v2153_v6 = vmul.f32 %v6350_v51, %v2056_v55  ;;  %v5132_v5 = vadd.f32 %v4994_v7, %v4583_v58  ;;  %v1854_v25 = vrot.slane %v1603_v60, 1  ;;  %v5557_v55 = vpop.f32.mrf.mxu2 }
 0x332   : > { %v5134_v47 = vadd.f32 %v4999_v40, %v4585_v61  ;;  %v1855_v44 = vrot.slane %v1605_v41, 1  ;;  %v1859_v9 = vrot.slane %v1607_v17, 1  ;;  %v2155_v0 = vmul.f32 %v8381_v22, %v6350_v51 }
 0x333   : > { %v2157_v19 = vmul.f32 %v6350_v51, %v2058_v42  ;;  %v2404_v50 = vrot.slane %v2153_v6, 2  ;;  %v5202_v45 = vadd.f32 %v6817_v35, %v5132_v5  ;;  %v2675_v52 = vmul.f32 %v8509_v37, %v8904_v21  ;;  %v8623_v6 = vld [vmem:[#allocation2 + $0x308] sm:$0xff]  ;;  %v8625_v5 = vld [vmem:[#allocation2 + $0x318] sm:$0xff] }
 0x334   : > { %v5204_v14 = vadd.f32 %v6817_v35, %v5134_v47  ;;  %v1856_v34 = vsel %vm1710_vm4, %v1854_v25, %v1855_v44  ;;  %v1860_v26 = vsel %vm1710_vm4, %v1855_v44, %v1859_v9  ;;  %v2405_v27 = vrot.slane %v2155_v0, 2  ;;  %v4099_v0 = vld [vmem:[#allocation2 + $0x308] sm:$0xfe] }
 0x335   : > { %v1992_v8 = vadd.f32 %v1856_v34, %v1378_v23  ;;  %v2409_v48 = vrot.slane %v2157_v19, 2  ;;  %v5266_v57 = vmax.f32 %v5202_v45, 0.0  ;;  %v1994_v1 = vadd.f32 %v1860_v26, %v1380_v18  ;;  %v3354_v18 = vld [vmem:[#allocation2 + $0x2f8] sm:$0x3]  ;;  %v5646_v19 = vpop.f32.mrf.mxu3  ;;  %v4648_v26 = vld [vmem:[#allocation2 + $0x308] sm:$0xfc] }
 0x336   : > { %v5268_v22 = vmax.f32 %v5204_v14, 0.0  ;;  %v2677_v15 = vmul.f32 %v8511_v54, %v8904_v21  ;;  %v2406_v32 = vsel %vm2260_vm5, %v2404_v50, %v2405_v27  ;;  %v2900_v12 = vmul.f32 %v8906_v28, %v2803_v63  ;;  %v4101_v63 = vld [vmem:[#allocation2 + $0x328] sm:$0x1] }
 0x337   : > { %v2410_v10 = vsel %vm2260_vm5, %v2405_v27, %v2409_v48  ;;  %v2902_v23 = vmul.f32 %v8511_v54, %v8906_v28  ;;  %v5330_v58 = vmin.f32 %v5266_v57, 6.0  ;;  %v2542_v60 = vadd.f32 %v2406_v32, %v1992_v8 }
 0x338   : > { %v5332_v61 = vmin.f32 %v5268_v22, 6.0  ;;  %v2544_v41 = vadd.f32 %v2410_v10, %v1994_v1  ;;  %v2904_v42 = vmul.f32 %v8906_v28, %v2805_v38  ;;  %v3150_v7 = vrot.slane %v2900_v12, 1  ;;  %v4650_v38 = vld [vmem:[#allocation2 + $0x328] sm:$0x3] }
 0x339   : > { %v3151_v40 = vrot.slane %v2902_v23, 1  ;;  %v3449_v17 = vmul.f32 %v8907_v4, %v3352_v3  ;;  %v2739_v25 = vadd.f32 %v2675_v52, %v2542_v60  ;;  %v3451_v9 = vmul.f32 %v8511_v54, %v8907_v4 }
 0x33a   : > { %v5366_v47 = vpack.c.bf16 %v5332_v61, %v5330_v58  ;;  %v2741_v44 = vadd.f32 %v2677_v15, %v2544_v41  ;;  %v3155_v45 = vrot.slane %v2904_v42, 1  ;;  %v3453_v14 = vmul.f32 %v8907_v4, %v3354_v18 }
 0x33b   : > { %v3152_v50 = vsel %vm1710_vm4, %v3150_v7, %v3151_v40  ;;  %v3699_v34 = vrot.slane %v3449_v17, 2  ;;  %v3700_v27 = vrot.slane %v3451_v9, 2  ;;  %v3971_v52 = vmul.f32 %v6588_v11, %v8623_v6  ;;  %v5559_v17 = vpop.f32.mrf.mxu2 }
 0x33c   : > { %5596 = vmatmul.bf16.gmra.mxu2 %v5366_v47  ;;  %v3288_v8 = vadd.f32 %v3152_v50, %v2739_v25  ;;  %v3973_v48 = vmul.f32 %v6588_v11, %v8625_v5  ;;  %v3156_v57 = vsel %vm1710_vm4, %v3151_v40, %v3155_v45  ;;  %v3704_v22 = vrot.slane %v3453_v14, 2  ;;  %v292_v40 = vld [vmem:[%s6212_s22 + $0x30] sm:$0xff]  }
 0x33d   : > { %v4196_v1 = vmul.f32 %v6590_v13, %v4099_v0  ;;  %v4198_v15 = vmul.f32 %v6590_v13, %v8625_v5  ;;  %v3290_v3 = vadd.f32 %v3156_v57, %v2741_v44  ;;  %v3701_v32 = vsel %vm2260_vm5, %v3699_v34, %v3700_v27 }
 0x33e   : > { %v4200_v10 = vmul.f32 %v6590_v13, %v4101_v63  ;;  %v4745_v12 = vmul.f32 %v6606_v33, %v4648_v26  ;;  %v3705_v23 = vsel %vm2260_vm5, %v3700_v27, %v3704_v22  ;;  %v3837_v58 = vadd.f32 %v3701_v32, %v3288_v8  ;;  %v1509_v27 = vld [vmem:[#allocation2 + $0x2d0] sm:$0xfe] }
 0x33f   : > { %v4446_v61 = vrot.slane %v4196_v1, 1  ;;  %v4447_v60 = vrot.slane %v4198_v15, 1  ;;  %v3839_v41 = vadd.f32 %v3705_v23, %v3290_v3  ;;  %v4747_v42 = vmul.f32 %v6606_v33, %v8625_v5  ;;  %v5648_v1 = vpop.f32.mrf.mxu3 }
 0x340   : > { %v4451_v18 = vrot.slane %v4200_v10, 1  ;;  %v4749_v7 = vmul.f32 %v6606_v33, %v4650_v38  ;;  %v4035_v47 = vadd.f32 %v3971_v52, %v3837_v58  ;;  %v4995_v44 = vrot.slane %v4745_v12, 2  ;;  %v1511_v38 = vld [vmem:[#allocation2 + $0x2f0] sm:$0x1] }
 0x341   : > { %v4448_v25 = vsel %vm1710_vm4, %v4446_v61, %v4447_v60  ;;  %v5558_v9 = vadd.f32 %v8407_v36, %v5557_v55  ;;  %v4037_v0 = vadd.f32 %v3973_v48, %v3839_v41  ;;  %v4996_v45 = vrot.slane %v4747_v42, 2 }
 0x342   : > { %v4452_v50 = vsel %vm1710_vm4, %v4447_v60, %v4451_v18  ;;  %v5000_v14 = vrot.slane %v4749_v7, 2  ;;  %v4584_v34 = vadd.f32 %v4448_v25, %v4035_v47  ;;  %v5708_v26 = vunpack.c.l.bf16 %v292_v40  ;;  %v2061_v18 = vld [vmem:[#allocation2 + $0x2f0] sm:$0x3] }
 0x343   : > { %v5647_v63 = vadd.f32 %v5646_v19, %v5558_v9  ;;  %v5560_v8 = vadd.f32 %v8407_v36, %v5559_v17  ;;  %v4586_v57 = vadd.f32 %v4452_v50, %v4037_v0  ;;  %v4997_v22 = vsel %vm2260_vm5, %v4995_v44, %v4996_v45  ;;  %v2059_v19 = vld [vmem:[#allocation2 + $0x2d0] sm:$0xfc] }
 0x344   : > { %v5001_v52 = vsel %vm2260_vm5, %v4996_v45, %v5000_v14  ;;  %v5709_v15 = vunpack.c.h.bf16 %v292_v40  ;;  %v5133_v55 = vadd.f32 %v4997_v22, %v4584_v34  ;;  %v1381_v32 = vmul.f32 %v8455_v46, %v6485_v62  ;;  %v2611_v50 = vld [vmem:[#allocation2 + $0x310] sm:$0xff]  ;;  %v2806_v45 = vld [vmem:[#allocation2 + $0x300] sm:$0xfe] }
 0x345   : > { %v5740_v48 = vadd.f32 %v5708_v26, %v5647_v63  ;;  %v5649_v3 = vadd.f32 %v5648_v1, %v5560_v8  ;;  %v5135_v10 = vadd.f32 %v5001_v52, %v4586_v57  ;;  %v1383_v36 = vmul.f32 %v8457_v56, %v6485_v62  ;;  %v2808_v8 = vld [vmem:[#allocation2 + $0x320] sm:$0x1]  ;;  %v3355_v52 = vld [vmem:[#allocation2 + $0x300] sm:$0xfc] }
 0x346   : > { %v1608_v12 = vmul.f32 %v8908_v49, %v1509_v27  ;;  %v1610_v23 = vmul.f32 %v8457_v56, %v8908_v49  ;;  %v5203_v58 = vadd.f32 %v6741_v2, %v5133_v55  ;;  %v1612_v41 = vmul.f32 %v8908_v49, %v1511_v38  ;;  %v3357_v55 = vld [vmem:[#allocation2 + $0x320] sm:$0x3] }
 0x347   : > { %v5772_v61 = vpack.c.bf16 %v5740_v48, %v5740_v48  ;;  %v5741_v60 = vadd.f32 %v5709_v15, %v5649_v3  ;;  %v5205_v46 = vadd.f32 %v6741_v2, %v5135_v10  ;;  %v2158_v40 = vmul.f32 %v8909_v20, %v2059_v19 }
 0x348   : > { %v1861_v42 = vrot.slane %v1608_v12, 1  ;;  %v1862_v7 = vrot.slane %v1610_v23, 1  ;;  %v5267_v62 = vmax.f32 %v5203_v58, 0.0  ;;  %v1867_v47 = vrot.slane %v1612_v41, 1  ;;  %v4104_v41 = vld [vmem:[#allocation2 + $0x350] sm:$0x1] }
 0x349   : > { %5805 = vst.msk [vmem:[%s8029_s14 + $0x30] sm:$0xf] %vm5792_vm8, %v5772_v61  ;;  %v5773_v17 = vpack.c.bf16 %v5741_v60, %v5741_v60  ;;  %v2160_v25 = vmul.f32 %v8457_v56, %v8909_v20  ;;  %v5269_v44 = vmax.f32 %v5205_v46, 0.0  ;;  %v2162_v49 = vmul.f32 %v8909_v20, %v2061_v18  ;;  %v4102_v60 = vld [vmem:[#allocation2 + $0x330] sm:$0xfe] }
 0x34a   : > { %v1863_v9 = vsel %vm1710_vm4, %v1861_v42, %v1862_v7  ;;  %v2411_v0 = vrot.slane %v2158_v40, 2  ;;  %v5331_v14 = vmin.f32 %v5267_v62, 6.0  ;;  %v1868_v34 = vsel %vm1710_vm4, %v1862_v7, %v1867_v47  ;;  %v4651_v40 = vld [vmem:[#allocation2 + $0x330] sm:$0xfc] }
 0x34b   : > { %5806 = vst.msk [vmem:[%s8029_s14 + $0x34] sm:$0xf] %vm5792_vm8, %v5773_v17  ;;  %v1995_v63 = vadd.f32 %v1863_v9, %v1381_v32  ;;  %v2412_v26 = vrot.slane %v2160_v25, 2  ;;  %v5333_v27 = vmin.f32 %v5269_v44, 6.0  ;;  %v1997_v57 = vadd.f32 %v1868_v34, %v1383_v36 }
 0x34c   : > { %v2417_v22 = vrot.slane %v2162_v49, 2  ;;  %v2678_v56 = vmul.f32 %v8569_v16, %v6566_v59  ;;  %v2680_v1 = vmul.f32 %v6566_v59, %v2611_v50  ;;  %v2905_v15 = vmul.f32 %v8893_v31, %v2806_v45 }
 0x34d   : > { %v2413_v20 = vsel %vm2260_vm5, %v2411_v0, %v2412_v26  ;;  %v2907_v38 = vmul.f32 %v8893_v31, %v2611_v50  ;;  %v5367_v48 = vpack.c.bf16 %v5333_v27, %v5331_v14  ;;  %v2909_v19 = vmul.f32 %v8893_v31, %v2808_v8  ;;  %v6121_v31 = vld [vmem:[#allocation2] sm:$0xff]  ;;  %v4653_v0 = vld [vmem:[#allocation2 + $0x350] sm:$0x3] }
 0x34e   : > { %v2418_v3 = vsel %vm2260_vm5, %v2412_v26, %v2417_v22  ;;  %v2545_v32 = vadd.f32 %v2413_v20, %v1995_v63  ;;  %v3157_v36 = vrot.slane %v2905_v15, 1  ;;  %v3454_v16 = vmul.f32 %v8896_v30, %v3355_v52  ;;  %v1510_v52 = vld [vmem:[#allocation2 + $0x2d8] sm:$0xfe] }
 0x34f   : > { %v2547_v10 = vadd.f32 %v2418_v3, %v1997_v57  ;;  %v3158_v12 = vrot.slane %v2907_v38, 1  ;;  %6063 = vmatmul.msk.bf16.gmra.mxu3 %vm778_vm2, %v5367_v48  ;;  %v3163_v59 = vrot.slane %v2909_v19, 1  ;;  %v3456_v58 = vmul.f32 %v8896_v30, %v2611_v50  ;;  %v1512_v38 = vld [vmem:[#allocation2 + $0x2f8] sm:$0x1] }
 0x350   : > { %v2742_v23 = vadd.f32 %v2678_v56, %v2545_v32  ;;  %v3458_v61 = vmul.f32 %v8896_v30, %v3357_v55  ;;  %v3706_v42 = vrot.slane %v3454_v16, 2  ;;  %v3974_v7 = vmul.f32 %v6121_v31, %v6645_v29  ;;  %v2060_v55 = vld [vmem:[#allocation2 + $0x2d8] sm:$0xfc]  ;;  %v2062_v16 = vld [vmem:[#allocation2 + $0x2f8] sm:$0x3] }
 0x351   : > { %v2744_v18 = vadd.f32 %v2680_v1, %v2547_v10  ;;  %v3159_v46 = vsel %vm1710_vm4, %v3157_v36, %v3158_v12  ;;  %v3164_v62 = vsel %vm1710_vm4, %v3158_v12, %v3163_v59  ;;  %v3707_v47 = vrot.slane %v3456_v58, 2 }
 0x352   : > { %v3291_v17 = vadd.f32 %v3159_v46, %v2742_v23  ;;  %v3712_v25 = vrot.slane %v3458_v61, 2  ;;  %v4201_v9 = vmul.f32 %v6647_v24, %v4102_v60  ;;  %v4203_v30 = vmul.f32 %v6121_v31, %v6647_v24  ;;  %v8706_v23 = vpop.f32.mrf.mxu2 }
 0x353   : > { %v3293_v44 = vadd.f32 %v3164_v62, %v2744_v18  ;;  %v4205_v49 = vmul.f32 %v6647_v24, %v4104_v41  ;;  %v3708_v50 = vsel %vm2260_vm5, %v3706_v42, %v3707_v47  ;;  %v4750_v29 = vmul.f32 %v6788_v39, %v4651_v40 }
 0x354   : > { %v3713_v45 = vsel %vm2260_vm5, %v3707_v47, %v3712_v25  ;;  %v4752_v14 = vmul.f32 %v6121_v31, %v6788_v39  ;;  %v3840_v34 = vadd.f32 %v3708_v50, %v3291_v17  ;;  %v4453_v26 = vrot.slane %v4201_v9, 1  ;;  %v2807_v25 = vld [vmem:[#allocation2 + $0x308] sm:$0xfe] }
 0x355   : > { %v3842_v63 = vadd.f32 %v3713_v45, %v3293_v44  ;;  %v4454_v8 = vrot.slane %v4203_v30, 1  ;;  %v4459_v27 = vrot.slane %v4205_v49, 1  ;;  %v4754_v57 = vmul.f32 %v6788_v39, %v4653_v0  ;;  %v2809_v49 = vld [vmem:[#allocation2 + $0x328] sm:$0x1] }
 0x356   : > { %v5002_v22 = vrot.slane %v4750_v29, 2  ;;  %v5003_v56 = vrot.slane %v4752_v14, 2  ;;  %v4038_v24 = vadd.f32 %v3974_v7, %v3840_v34  ;;  %v1382_v15 = vmul.f32 %v8509_v37, %v8910_v53  ;;  %v8708_v37 = vpop.f32.mrf.mxu3 }
 0x357   : > { %v4040_v20 = vadd.f32 %v3974_v7, %v3842_v63  ;;  %v4455_v1 = vsel %vm1710_vm4, %v4453_v26, %v4454_v8  ;;  %v4460_v48 = vsel %vm1710_vm4, %v4454_v8, %v4459_v27  ;;  %v5008_v32 = vrot.slane %v4754_v57, 2  ;;  %v3358_v57 = vld [vmem:[#allocation2 + $0x328] sm:$0x3] }
 0x358   : > { %v5004_v3 = vsel %vm2260_vm5, %v5002_v22, %v5003_v56  ;;  %v1384_v39 = vmul.f32 %v8511_v54, %v8910_v53  ;;  %v4587_v19 = vadd.f32 %v4455_v1, %v4038_v24  ;;  %v1609_v36 = vmul.f32 %v6334_v43, %v1510_v52  ;;  %v3906_v22 = vld [vmem:[#allocation2 + $0x338] sm:$0xff] }
 0x359   : > { %v4589_v10 = vadd.f32 %v4460_v48, %v4040_v20  ;;  %v1611_v12 = vmul.f32 %v8511_v54, %v6334_v43  ;;  %v5009_v59 = vsel %vm2260_vm5, %v5003_v56, %v5008_v32  ;;  %v1613_v58 = vmul.f32 %v6334_v43, %v1512_v38  ;;  %v4103_v32 = vld [vmem:[#allocation2 + $0x338] sm:$0xfe] }
 0x35a   : > { %v2159_v61 = vmul.f32 %v6350_v51, %v2060_v55  ;;  %v2161_v53 = vmul.f32 %v8511_v54, %v6350_v51  ;;  %v5136_v60 = vadd.f32 %v5004_v3, %v4587_v19  ;;  %v1864_v18 = vrot.slane %v1609_v36, 1  ;;  %v5564_v56 = vpop.f32.mrf.mxu2  ;;  %v4105_v36 = vld [vmem:[#allocation2 + $0x358] sm:$0x1] }
 0x35b   : > { %v5138_v41 = vadd.f32 %v5009_v59, %v4589_v10  ;;  %v1865_v46 = vrot.slane %v1611_v12, 1  ;;  %v1869_v42 = vrot.slane %v1613_v58, 1  ;;  %v2163_v31 = vmul.f32 %v6350_v51, %v2062_v16  ;;  %v4652_v12 = vld [vmem:[#allocation2 + $0x338] sm:$0xfc] }
 0x35c   : > { %v2414_v7 = vrot.slane %v2159_v61, 2  ;;  %v2415_v40 = vrot.slane %v2161_v53, 2  ;;  %v5206_v62 = vadd.f32 %v6817_v35, %v5136_v60  ;;  %v2679_v47 = vmul.f32 %v8623_v6, %v8904_v21 }
 0x35d   : > { %v5208_v17 = vadd.f32 %v6817_v35, %v5138_v41  ;;  %v1866_v43 = vsel %vm1710_vm4, %v1864_v18, %v1865_v46  ;;  %v1870_v54 = vsel %vm1710_vm4, %v1865_v46, %v1869_v42  ;;  %v2419_v30 = vrot.slane %v2163_v31, 2  ;;  %v3356_v35 = vld [vmem:[#allocation2 + $0x308] sm:$0xfc] }
 0x35e   : > { %v1996_v44 = vadd.f32 %v1866_v43, %v1382_v15  ;;  %v2416_v9 = vsel %vm2260_vm5, %v2414_v7, %v2415_v40  ;;  %v5270_v51 = vmax.f32 %v5206_v62, 0.0  ;;  %v1998_v50 = vadd.f32 %v1870_v54, %v1384_v39  ;;  %v5653_v52 = vpop.f32.mrf.mxu3  ;;  %v3908_v15 = vld [vmem:[#allocation2 + $0x348] sm:$0xff] }
 0x35f   : > { %v5272_v0 = vmax.f32 %v5208_v17, 0.0  ;;  %v2681_v45 = vmul.f32 %v8625_v5, %v8904_v21  ;;  %v2420_v29 = vsel %vm2260_vm5, %v2415_v40, %v2419_v30  ;;  %v2906_v6 = vmul.f32 %v8906_v28, %v2807_v25  ;;  %v294_v17 = vld [vmem:[%s6212_s22 + $0x38] sm:$0xff]  }
 0x360   : > { %v2546_v14 = vadd.f32 %v2416_v9, %v1996_v44  ;;  %v2908_v34 = vmul.f32 %v8625_v5, %v8906_v28  ;;  %v5334_v63 = vmin.f32 %v5270_v51, 6.0  ;;  %v2548_v8 = vadd.f32 %v2420_v29, %v1998_v50  ;;  %v8751_v51 = vld [vmem:[%s8832_s6] ss:$0 sm:$0xff] }
 0x361   : > { %v5336_v26 = vmin.f32 %v5272_v0, 6.0  ;;  %v2910_v27 = vmul.f32 %v8906_v28, %v2809_v49  ;;  %v3160_v21 = vrot.slane %v2906_v6, 1  ;;  %v3455_v1 = vmul.f32 %v8907_v4, %v3356_v35  ;;  %v296_v29 = vld [vmem:[%s6212_s22 + $0x40] sm:$0xff]  }
 0x362   : > { %v2743_v24 = vadd.f32 %v2679_v47, %v2546_v14  ;;  %v3161_v20 = vrot.slane %v2908_v34, 1  ;;  %v2745_v55 = vadd.f32 %v2681_v45, %v2548_v8  ;;  %v3457_v3 = vmul.f32 %v8625_v5, %v8907_v4  ;;  %v5567_v44 = vpop.f32.mrf.mxu2 }
 0x363   : > { %v5368_v38 = vpack.c.bf16 %v5336_v26, %v5334_v63  ;;  %v3165_v48 = vrot.slane %v2910_v27, 1  ;;  %v3459_v28 = vmul.f32 %v8907_v4, %v3358_v57  ;;  %v3709_v19 = vrot.slane %v3455_v1, 2  ;;  %v4654_v4 = vld [vmem:[#allocation2 + $0x358] sm:$0x3] }
 0x364   : > { %v3162_v39 = vsel %vm1710_vm4, %v3160_v21, %v3161_v20  ;;  %v3975_v10 = vmul.f32 %v6588_v11, %v3906_v22  ;;  %v3710_v58 = vrot.slane %v3457_v3, 2  ;;  %v3977_v61 = vmul.f32 %v6588_v11, %v3908_v15 }
 0x365   : > { %5601 = vmatmul.bf16.gmra.mxu2 %v5368_v38  ;;  %v3166_v16 = vsel %vm1710_vm4, %v3161_v20, %v3165_v48  ;;  %v3292_v59 = vadd.f32 %v3162_v39, %v2743_v24  ;;  %v3714_v5 = vrot.slane %v3459_v28, 2  ;;  %v4202_v60 = vmul.f32 %v6590_v13, %v4103_v32 }
 0x366   : > { %v3294_v53 = vadd.f32 %v3166_v16, %v2745_v55  ;;  %v4204_v41 = vmul.f32 %v6590_v13, %v3908_v15  ;;  %v3711_v18 = vsel %vm2260_vm5, %v3709_v19, %v3710_v58  ;;  %v4206_v46 = vmul.f32 %v6590_v13, %v4105_v36  ;;  %v5656_v9 = vpop.f32.mrf.mxu3 }
 0x367   : > { %v4751_v42 = vmul.f32 %v6606_v33, %v4652_v12  ;;  %v4753_v31 = vmul.f32 %v6606_v33, %v3908_v15  ;;  %v3715_v7 = vsel %vm2260_vm5, %v3710_v58, %v3714_v5  ;;  %v3841_v40 = vadd.f32 %v3711_v18, %v3292_v59  ;;  %v298_v58 = vld [vmem:[%s6212_s22 + $0x48] sm:$0xff]  }
 0x368   : > { %v4456_v62 = vrot.slane %v4202_v60, 1  ;;  %v4457_v11 = vrot.slane %v4204_v41, 1  ;;  %v3843_v43 = vadd.f32 %v3715_v7, %v3294_v53  ;;  %v4461_v47 = vrot.slane %v4206_v46, 1 }
 0x369   : > { %v4755_v25 = vmul.f32 %v6606_v33, %v4654_v4  ;;  %v5005_v54 = vrot.slane %v4751_v42, 2  ;;  %v4039_v30 = vadd.f32 %v3975_v10, %v3841_v40  ;;  %v5006_v49 = vrot.slane %v4753_v31, 2 }
 0x36a   : > { %v4458_v13 = vsel %vm1710_vm4, %v4456_v62, %v4457_v11  ;;  %v5563_v0 = vadd.f32 %v8751_v51, %v8706_v23  ;;  %v4041_v50 = vadd.f32 %v3977_v61, %v3843_v43  ;;  %v4462_v45 = vsel %vm1710_vm4, %v4457_v11, %v4461_v47  ;;  %v5569_v48 = vpop.f32.mrf.mxu2 }
 0x36b   : > { %v5010_v35 = vrot.slane %v4755_v25, 2  ;;  %v5710_v33 = vunpack.c.l.bf16 %v294_v17  ;;  %v4588_v14 = vadd.f32 %v4458_v13, %v4039_v30  ;;  %v5007_v6 = vsel %vm2260_vm5, %v5005_v54, %v5006_v49 }
 0x36c   : > { %v5652_v34 = vadd.f32 %v8708_v37, %v5563_v0  ;;  %v5565_v63 = vadd.f32 %v8751_v51, %v5564_v56  ;;  %v4590_v26 = vadd.f32 %v4462_v45, %v4041_v50  ;;  %v5711_v27 = vunpack.c.h.bf16 %v294_v17  ;;  %v300_v17 = vld [vmem:[%s6212_s22 + $0x50] sm:$0xff]  }
 0x36d   : > { %v5011_v8 = vsel %vm2260_vm5, %v5006_v49, %v5010_v35  ;;  %v5568_v23 = vadd.f32 %v8751_v51, %v5567_v44  ;;  %v5137_v57 = vadd.f32 %v5007_v6, %v4588_v14  ;;  %v5712_v21 = vunpack.c.l.bf16 %v296_v29 }
 0x36e   : > { %v5742_v22 = vadd.f32 %v5710_v33, %v5652_v34  ;;  %v5654_v24 = vadd.f32 %v5653_v52, %v5565_v63  ;;  %v5139_v20 = vadd.f32 %v5011_v8, %v4590_v26  ;;  %v5658_v3 = vpop.f32.mrf.mxu3  ;;  %v5570_v52 = vadd.f32 %v8751_v51, %v5569_v48 }
 0x36f   : > { %v5657_v1 = vadd.f32 %v5656_v9, %v5568_v23  ;;  %v5207_v15 = vadd.f32 %v6741_v2, %v5137_v57  ;;  %v5713_v28 = vunpack.c.h.bf16 %v296_v29  ;;  %v5714_v41 = vunpack.c.l.bf16 %v298_v58  ;;  %v302_v29 = vld [vmem:[%s6212_s22 + $0x58] sm:$0xff]  }
 0x370   : > { %v5774_v38 = vpack.c.bf16 %v5742_v22, %v5742_v22  ;;  %v5743_v37 = vadd.f32 %v5711_v27, %v5654_v24  ;;  %v5209_v56 = vadd.f32 %v6741_v2, %v5139_v20  ;;  %v5659_v12 = vadd.f32 %v5658_v3, %v5570_v52 }
 0x371   : > { %v5744_v55 = vadd.f32 %v5712_v21, %v5657_v1  ;;  %v5271_v32 = vmax.f32 %v5207_v15, 0.0  ;;  %v5715_v40 = vunpack.c.h.bf16 %v298_v58  ;;  %v5716_v44 = vunpack.c.l.bf16 %v300_v17  ;;  %v304_v15 = vld [vmem:[%s6212_s22 + $0x60] sm:$0xff]  }
 0x372   : > { %5807 = vst.msk [vmem:[%s8029_s14 + $0x38] sm:$0xf] %vm5792_vm8, %v5774_v38  ;;  %v5775_v39 = vpack.c.bf16 %v5743_v37, %v5743_v37  ;;  %v5273_v19 = vmax.f32 %v5209_v56, 0.0  ;;  %v5745_v2 = vadd.f32 %v5713_v28, %v5659_v12  ;;  %v5572_v53 = vpop.f32.mrf.mxu2  ;;  %v5717_v45 = vunpack.c.h.bf16 %v300_v17 }
 0x373   : > { %v5776_v10 = vpack.c.bf16 %v5744_v55, %v5744_v55  ;;  %v5335_v36 = vmin.f32 %v5271_v32, 6.0  ;;  %v5573_v60 = vadd.f32 %v8751_v51, %v5572_v53  ;;  %v5718_v26 = vunpack.c.l.bf16 %v302_v29 }
 0x374   : > { %5808 = vst.msk [vmem:[%s8029_s14 + $0x3c] sm:$0xf] %vm5792_vm8, %v5775_v39  ;;  %v5337_v16 = vmin.f32 %v5273_v19, 6.0  ;;  %v5777_v61 = vpack.c.bf16 %v5745_v2, %v5745_v2  ;;  %v5719_v21 = vunpack.c.h.bf16 %v302_v29  ;;  %v5720_v48 = vunpack.c.l.bf16 %v304_v15 }
 0x375   : > { %5809 = vst.msk [vmem:[%s8029_s14 + $0x40] sm:$0xf] %vm5792_vm8, %v5776_v10  ;;  %v5721_v10 = vunpack.c.h.bf16 %v304_v15 }
 0x376   : > { %v5369_v59 = vpack.c.bf16 %v5337_v16, %v5335_v36  ;;  %v5661_v5 = vpop.f32.mrf.mxu3  ;;  %5810 = vst.msk [vmem:[%s8029_s14 + $0x44] sm:$0xf] %vm5792_vm8, %v5777_v61  ;;  %v306_v16 = vld [vmem:[%s6212_s22 + $0x68] sm:$0xff]  }
 0x377   : > { %v5662_v4 = vadd.f32 %v5661_v5, %v5573_v60  ;;  %v5722_v53 = vunpack.c.l.bf16 %v306_v16 }
 0x378   : > { %6064 = vmatmul.msk.bf16.gmra.mxu3 %vm778_vm2, %v5369_v59 }
 0x379   : > { %v5746_v18 = vadd.f32 %v5714_v41, %v5662_v4 }
 0x37a   : > { %v5574_v42 = vpop.f32.mrf.mxu2 }
 0x37b   : > { %v5778_v46 = vpack.c.bf16 %v5746_v18, %v5746_v18  ;;  %v5575_v7 = vadd.f32 %v8751_v51, %v5574_v42 }
 0x37d   : > { %5811 = vst.msk [vmem:[%s8029_s14 + $0x48] sm:$0xf] %vm5792_vm8, %v5778_v46  ;;  %v5723_v46 = vunpack.c.h.bf16 %v306_v16 }
 0x37e   : > { %v5663_v31 = vpop.f32.mrf.mxu3 }
 0x37f   : > { %v5664_v62 = vadd.f32 %v5663_v31, %v5575_v7 }
 0x381   : > { %v5747_v11 = vadd.f32 %v5715_v40, %v5664_v62 }
 0x382   : > { %v5577_v47 = vpop.f32.mrf.mxu2 }
 0x383   : > { %v5779_v43 = vpack.c.bf16 %v5747_v11, %v5747_v11  ;;  %v5578_v54 = vadd.f32 %v8751_v51, %v5577_v47  ;;  %v308_v11 = vld [vmem:[%s6212_s22 + $0x70] sm:$0xff]  }
 0x385   : > { %5812 = vst.msk [vmem:[%s8029_s14 + $0x4c] sm:$0xf] %vm5792_vm8, %v5779_v43  ;;  %v5724_v43 = vunpack.c.l.bf16 %v308_v11 }
 0x386   : > { %v5666_v25 = vpop.f32.mrf.mxu3 }
 0x387   : > { %v5667_v9 = vadd.f32 %v5666_v25, %v5578_v54 }
 0x389   : > { %v5748_v30 = vadd.f32 %v5716_v44, %v5667_v9 }
 0x38a   : > { %v5579_v49 = vpop.f32.mrf.mxu2 }
 0x38b   : > { %v5780_v13 = vpack.c.bf16 %v5748_v30, %v5748_v30  ;;  %v5580_v50 = vadd.f32 %v8751_v51, %v5579_v49 }
 0x38d   : > { %5813 = vst.msk [vmem:[%s8029_s14 + $0x50] sm:$0xf] %vm5792_vm8, %v5780_v13  ;;  %v5725_v13 = vunpack.c.h.bf16 %v308_v11 }
 0x38e   : > { %v5668_v0 = vpop.f32.mrf.mxu3 }
 0x38f   : > { %v5669_v35 = vadd.f32 %v5668_v0, %v5580_v50 }
 0x391   : > { %v5749_v33 = vadd.f32 %v5717_v45, %v5669_v35 }
 0x392   : > { %v5582_v6 = vpop.f32.mrf.mxu2 }
 0x393   : > { %v5781_v14 = vpack.c.bf16 %v5749_v33, %v5749_v33  ;;  %v5583_v63 = vadd.f32 %v8751_v51, %v5582_v6  ;;  %v310_v33 = vld [vmem:[%s6212_s22 + $0x78] sm:$0xff]  }
 0x395   : > { %5814 = vst.msk [vmem:[%s8029_s14 + $0x54] sm:$0xf] %vm5792_vm8, %v5781_v14  ;;  %v5726_v14 = vunpack.c.l.bf16 %v310_v33 }
 0x396   : > { %v5671_v34 = vpop.f32.mrf.mxu3 }
 0x397   : > { %v5672_v8 = vadd.f32 %v5671_v34, %v5583_v63 }
 0x399   : > { %v5750_v27 = vadd.f32 %v5718_v26, %v5672_v8 }
 0x39a   : > { %v5584_v57 = vpop.f32.mrf.mxu2 }
 0x39b   : > { %v5782_v23 = vpack.c.bf16 %v5750_v27, %v5750_v27  ;;  %v5585_v24 = vadd.f32 %v8751_v51, %v5584_v57 }
 0x39d   : > { %5815 = vst.msk [vmem:[%s8029_s14 + $0x58] sm:$0xf] %vm5792_vm8, %v5782_v23  ;;  %v5727_v23 = vunpack.c.h.bf16 %v310_v33 }
 0x39e   : > { %v5673_v22 = vpop.f32.mrf.mxu3 }
 0x39f   : > { %v5674_v20 = vadd.f32 %v5673_v22, %v5585_v24 }
 0x3a1   : > { %v5751_v1 = vadd.f32 %v5719_v21, %v5674_v20 }
 0x3a2   : > { %v5587_v37 = vpop.f32.mrf.mxu2 }
 0x3a3   : > { %v5783_v38 = vpack.c.bf16 %v5751_v1, %v5751_v1  ;;  %v5588_v55 = vadd.f32 %v8751_v51, %v5587_v37 }
 0x3a5   : > { %5816 = vst.msk [vmem:[%s8029_s14 + $0x5c] sm:$0xf] %vm5792_vm8, %v5783_v38 }
 0x3a6   : > { %v5676_v56 = vpop.f32.mrf.mxu3 }
 0x3a7   : > { %v5677_v3 = vadd.f32 %v5676_v56, %v5588_v55 }
 0x3a9   : > { %v5752_v32 = vadd.f32 %v5720_v48, %v5677_v3 }
 0x3aa   : > { %v5589_v52 = vpop.f32.mrf.mxu2 }
 0x3ab   : > { %v5784_v39 = vpack.c.bf16 %v5752_v32, %v5752_v32  ;;  %v5590_v19 = vadd.f32 %v8751_v51, %v5589_v52 }
 0x3ad   : > { %5817 = vst.msk [vmem:[%s8029_s14 + $0x60] sm:$0xf] %vm5792_vm8, %v5784_v39 }
 0x3ae   : > { %v5678_v28 = vpop.f32.mrf.mxu3 }
 0x3af   : > { %v5679_v36 = vadd.f32 %v5678_v28, %v5590_v19 }
 0x3b1   : > { %v5753_v12 = vadd.f32 %v5721_v10, %v5679_v36 }
 0x3b2   : > { %v5592_v59 = vpop.f32.mrf.mxu2 }
 0x3b3   : > { %v5785_v2 = vpack.c.bf16 %v5753_v12, %v5753_v12  ;;  %v5593_v61 = vadd.f32 %v8751_v51, %v5592_v59 }
 0x3b5   : > { %5818 = vst.msk [vmem:[%s8029_s14 + $0x64] sm:$0xf] %vm5792_vm8, %v5785_v2 }
 0x3b6   : > { %v5681_v58 = vpop.f32.mrf.mxu3 }
 0x3b7   : > { %v5682_v5 = vadd.f32 %v5681_v58, %v5593_v61 }
 0x3b9   : > { %v5754_v60 = vadd.f32 %v5722_v53, %v5682_v5 }
 0x3ba   : > { %v5594_v4 = vpop.f32.mrf.mxu2 }
 0x3bb   : > { %v5786_v41 = vpack.c.bf16 %v5754_v60, %v5754_v60  ;;  %v5595_v18 = vadd.f32 %v8751_v51, %v5594_v4 }
 0x3bd   : > { %5819 = vst.msk [vmem:[%s8029_s14 + $0x68] sm:$0xf] %vm5792_vm8, %v5786_v41 }
 0x3be   : > { %v5683_v42 = vpop.f32.mrf.mxu3 }
 0x3bf   : > { %v5684_v31 = vadd.f32 %v5683_v42, %v5595_v18 }
 0x3c1   : > { %v5755_v7 = vadd.f32 %v5723_v46, %v5684_v31 }
 0x3c2   : > { %v5597_v62 = vpop.f32.mrf.mxu2 }
 0x3c3   : > { %v5787_v40 = vpack.c.bf16 %v5755_v7, %v5755_v7  ;;  %v5598_v17 = vadd.f32 %v8751_v51, %v5597_v62 }
 0x3c5   : > { %5820 = vst.msk [vmem:[%s8029_s14 + $0x6c] sm:$0xf] %vm5792_vm8, %v5787_v40 }
 0x3ca   : > { %v5599_v54 = vpop.f32.mrf.mxu2 }
 0x3cb   : > { %v5600_v30 = vadd.f32 %v8751_v51, %v5599_v54 }
 0x3d2   : > { %v5686_v47 = vpop.f32.mrf.mxu3 }
 0x3d3   : > { %v5687_v25 = vadd.f32 %v5686_v47, %v5598_v17 }
 0x3d5   : > { %v5756_v44 = vadd.f32 %v5724_v43, %v5687_v25 }
 0x3d7   : > { %v5788_v9 = vpack.c.bf16 %v5756_v44, %v5756_v44 }
 0x3d9   : > { %5821 = vst.msk [vmem:[%s8029_s14 + $0x70] sm:$0xf] %vm5792_vm8, %v5788_v9 }
 0x3da   : > { %v5688_v49 = vpop.f32.mrf.mxu3 }
 0x3db   : > { %v5689_v0 = vadd.f32 %v5688_v49, %v5600_v30 }
 0x3dd   : > { %v5757_v50 = vadd.f32 %v5725_v13, %v5689_v0 }
 0x3df   : > { %v5789_v45 = vpack.c.bf16 %v5757_v50, %v5757_v50 }
 0x3e1   : > { %5822 = vst.msk [vmem:[%s8029_s14 + $0x74] sm:$0xf] %vm5792_vm8, %v5789_v45 }
 0x3e8   : > { %v5602_v35 = vpop.f32.mrf.mxu2 }
 0x3e9   : > { %v5603_v29 = vadd.f32 %v8751_v51, %v5602_v35 }
 0x3f0   : > { %v5604_v63 = vpop.f32.mrf.mxu2 }
 0x3f1   : > { %v5605_v27 = vadd.f32 %v8751_v51, %v5604_v63 }
 0x3fb   : > { %v5691_v6 = vpop.f32.mrf.mxu3 }
 0x3fc   : > { %v5692_v34 = vadd.f32 %v5691_v6, %v5603_v29 }
 0x3fe   : > { %v5758_v26 = vadd.f32 %v5726_v14, %v5692_v34 }
 0x400   : > { %v5790_v8 = vpack.c.bf16 %v5758_v26, %v5758_v26 }
 0x402   : > { %5823 = vst.msk [vmem:[%s8029_s14 + $0x78] sm:$0xf] %vm5792_vm8, %v5790_v8 }
 0x403   : > { %v5693_v57 = vpop.f32.mrf.mxu3 }
 0x404   : > { %v5694_v22 = vadd.f32 %v5693_v57, %v5605_v27 }
 0x406   : > { %v5759_v24 = vadd.f32 %v5727_v23, %v5694_v22 }
 0x408   : > { %v5791_v21 = vpack.c.bf16 %v5759_v24, %v5759_v24 }
 0x40a   : > { %5824 = vst.msk [vmem:[%s8029_s14 + $0x7c] sm:$0xf] %vm5792_vm8, %v5791_v21 }
 0x40b PF: > { %s17_s24 = sadd.s32 1, %s6129_s24  }
 0x40c   : > { %p14_p4 = scmp.ge.s32.totalorder %s17_s24, 4  }
 0x40e   :  { %16 = sbr.rel (!%p14_p4) target bundleno = 1 (0x1), region = 80 }

</bundles_post_ra>
